<compile_context>
chip_gen: v6e
topology: v6e:2x2x1
jax: 0.10.0
libtpu: 0.0.40
codegen_flags: <defaults>
</compile_context>

<pallas_src>
import jax
import jax.numpy as jnp
import numpy as np
from jax import lax
from jax.experimental import pallas as pl
from jax.experimental.pallas import tpu as pltpu

# ----------------------- hyper-parameters (small, deterministic) -----------------------
N_COLORS = 3        # args.n_colors
N_FEATS = 8         # fe
N_RESBLOCKS = 2     # re
SCALE = 2           # args.scale[0]
RES_SCALE = 1.0     # args.res_scale
H_IMG = 16
W_IMG = 16

C_PAD = N_FEATS                 # 8  : padded channel width of every trunk activation
NT = 3 + 2 * N_RESBLOCKS        # 7  : trunk convs = input, head, 2 per resblock, body_out
CUP = N_FEATS * SCALE           # 16 : channels of each upsampler-conv row-parity half
CT = 4                          # tail output channels padded 3 -> 4 (32*4 = 128 lanes)
W2 = W_IMG * SCALE              # 32 : upsampled width


# ----------------------------------- fused Pallas kernel -------------------------------
def fused_kernel(x_ref, wt_ref, bt_ref, wu_ref, bu_ref, wl_ref, bl_ref,
                 o_ref, a_scr, p0_scr, p1_scr):
    """One grid step = the full network forward for one image.

    x_ref : (1, 16, 128)      input, flattened NHWC, channels zero-padded 3->8
    wt_ref: (7, 3, 128, 128)  trunk conv weights, banded block-diagonal per vertical tap kh
    bt_ref: (7, 128)          trunk biases, width-tiled
    wu_ref: (2, 3, 128, 256)  upsampler conv, split by output-row parity i, banded per kh
    bu_ref: (2, 256)
    wl_ref: (3, 256, 128)     tail conv on the 32x32x8 shuffled image, banded per kh
    bl_ref: (1, 128)
    o_ref : (1, 2, 16, 128)   output rows split by parity: o[0, i, m, :] = image row 2m+i
    a_scr : (18, 128)  VMEM   trunk activation + 1-row zero halo top/bottom
    p0_scr: (18, 256)  VMEM   even rows of the shuffled activation (rows 0..15, zero row 16)
    p1_scr: (18, 256)  VMEM   odd rows of the shuffled activation (rows 1..16, zero row 0)
    """
    f32 = jnp.float32
    H = H_IMG

    # Zero only the halo rows that get read as padding (interiors are fully overwritten).
    a_scr[0:1, :] = jnp.zeros((1, a_scr.shape[1]), f32)
    a_scr[H + 1:H + 2, :] = jnp.zeros((1, a_scr.shape[1]), f32)
    p1_scr[0:1, :] = jnp.zeros((1, p1_scr.shape[1]), f32)
    p0_scr[H:H + 1, :] = jnp.zeros((1, p0_scr.shape[1]), f32)

    def conv3(lhs_dn, lhs_mid, lhs_up, w0, w1, w2, bias,
              relu=False, residual=None, scale=1.0):
        # 3x3 "same" conv = 3 matmuls (one per vertical tap) against host-prebuilt banded
        # block-diagonal weights; bias / ReLU / residual / res_scale fused.
        acc = jnp.dot(lhs_dn, w0, preferred_element_type=f32)
        acc = acc + jnp.dot(lhs_mid, w1, preferred_element_type=f32)
        acc = acc + jnp.dot(lhs_up, w2, preferred_element_type=f32)
        acc = acc + bias
        if relu:
            acc = jnp.maximum(acc, 0.0)
        if residual is not None:
            if scale != 1.0:
                acc = acc * scale
            acc = acc + residual
        return acc

    def trunk_conv(x_val, l, relu=False, residual=None, scale=1.0):
        # Store once at rows 1..16; kh=1 slab is the live value (no reload),
        # kh=0 slab (rows 0..15) is sublane-aligned, only kh=2 (rows 2..17) is shifted.
        a_scr[1:H + 1, :] = x_val
        return conv3(a_scr[0:H, :], x_val, a_scr[2:H + 2, :],
                     wt_ref[l, 0], wt_ref[l, 1], wt_ref[l, 2],
                     bt_ref[l:l + 1, :],
                     relu=relu, residual=residual, scale=scale)

    # ---------------- trunk ----------------
    a = trunk_conv(x_ref[0], 0)                   # input_conv (3->4, channel-padded)
    a = trunk_conv(a, 1)                          # head (4->8)
    skip = a
    res = a
    layer = 2
    for _ in range(N_RESBLOCKS):
        t = trunk_conv(res, layer, relu=True)
        res = trunk_conv(t, layer + 1, residual=res, scale=RES_SCALE)
        layer += 2
    res = trunk_conv(res, layer, residual=skip)   # body_out + global skip

    # ------------- upsampler conv, split into the two output-row-parity halves ----------
    a_scr[1:H + 1, :] = res
    res_dn = a_scr[0:H, :]
    res_up = a_scr[2:H + 2, :]
    ups = []
    for i in range(SCALE):
        ups.append(conv3(res_dn, res, res_up,
                         wu_ref[i, 0], wu_ref[i, 1], wu_ref[i, 2],
                         bu_ref[i:i + 1, :]))
    # Pixel shuffle is free: column ordering (ow*8+c) was chosen in pack_params, rows are
    # split by parity into the two planes below.
    p0, p1 = ups                                  # (16, 256) each
    p0_scr[0:H, :] = p0                           # aligned store, zero bottom halo at row 16
    p1_scr[1:H + 1, :] = p1                       # zero top halo at row 0

    # ------------- tail conv (32x32, 8 -> 4), evaluated per output-row parity ------------
    p1_dn = p1_scr[0:H, :]        # row m -> shuffled row 2m-1 (zero for m == 0)
    p0_up = p0_scr[1:H + 1, :]    # row m -> shuffled row 2m+2 (zero for m == 15)
    wl0, wl1, wl2 = wl_ref[0], wl_ref[1], wl_ref[2]
    bl = bl_ref[0:1, :]
    out_even = conv3(p1_dn, p0, p1, wl0, wl1, wl2, bl)   # output rows 2m
    out_odd = conv3(p0, p1, p0_up, wl0, wl1, wl2, bl)    # output rows 2m+1

    o_ref[0, 0] = out_even.astype(o_ref.dtype)
    o_ref[0, 1] = out_odd.astype(o_ref.dtype)


# ------------------------------- parameter packing (host, once) -------------------------
def _band_matrices(w_pad, wd):
    """w_pad: (3, 3, cin, cout) numpy f32 (HWIO).  Returns (3, wd*cin, wd*cout): for each
    vertical tap kh, the banded block-diagonal matrix whose block at (row-block v, col-block u)
    is w_pad[kh, kw] with v = u + kw - 1 (the band also implements horizontal zero padding)."""
    cin, cout = w_pad.shape[2], w_pad.shape[3]
    out = np.zeros((3, wd * cin, wd * cout), np.float32)
    for kh in range(3):
        for u in range(wd):                       # output width block (columns)
            for kw in range(3):
                v = u + kw - 1                    # input width block (rows)
                if 0 <= v < wd:
                    out[kh, v * cin:(v + 1) * cin, u * cout:(u + 1) * cout] = w_pad[kh, kw]
    return out


def _tile_bias(b_pad, wd):
    return np.tile(b_pad, wd)


def pack_params(params):
    """Pad channels, fold kw taps + horizontal padding into banded matrices, tile biases."""
    C = C_PAD

    def to_np(a):
        return np.asarray(a, np.float32)

    def pad_w(w, cin, cout):
        w = to_np(w)
        return np.pad(w, ((0, 0), (0, 0), (0, cin - w.shape[2]), (0, cout - w.shape[3])))

    def pad_b(b, cout):
        b = to_np(b)
        return np.pad(b, (0, cout - b.shape[0]))

    trunk = [params["input"], params["head"]]
    for (w1, b1, w2, b2) in params["body"]:
        trunk += [(w1, b1), (w2, b2)]
    trunk.append(params["body_out"])

    w_trunk = np.stack([_band_matrices(pad_w(w, C, C), W_IMG) for (w, _) in trunk])  # (7,3,128,128)
    b_trunk = np.stack([_tile_bias(pad_b(b, C), W_IMG) for (_, b) in trunk])         # (7,128)

    # upsampler conv: PixelShuffle channel = c*4 + i*2 + j; split by row parity i, reorder
    # output columns to j*8 + c so that plane columns become ow*8 + c after width doubling.
    w_up, b_up = params["up"]
    r = SCALE
    wu = to_np(w_up).reshape(3, 3, C, N_FEATS, r, r)      # (kh, kw, ci, c, i, j)
    bu = to_np(b_up).reshape(N_FEATS, r, r)               # (c, i, j)
    w_up_halves, b_up_halves = [], []
    for i in range(r):
        wi = np.transpose(wu[:, :, :, :, i, :], (0, 1, 2, 4, 3)).reshape(3, 3, C, r * N_FEATS)
        bi = np.transpose(bu[:, i, :], (1, 0)).reshape(r * N_FEATS)
        w_up_halves.append(_band_matrices(wi, W_IMG))      # (3, 128, 256)
        b_up_halves.append(_tile_bias(bi, W_IMG))           # (256,)
    w_up_packed = np.stack(w_up_halves)                     # (2, 3, 128, 256)
    b_up_packed = np.stack(b_up_halves)                      # (2, 256)

    w_tail, b_tail = params["tail"]
    w_tail_packed = _band_matrices(pad_w(w_tail, C, CT), W2)        # (3, 256, 128)
    b_tail_packed = _tile_bias(pad_b(b_tail, CT), W2)[None, :]      # (1, 128)

    return dict(w_trunk=jnp.asarray(w_trunk), b_trunk=jnp.asarray(b_trunk),
                w_up=jnp.asarray(w_up_packed), b_up=jnp.asarray(b_up_packed),
                w_tail=jnp.asarray(w_tail_packed), b_tail=jnp.asarray(b_tail_packed))


# ------------------------------- ABLATION forward (Pallas) ------------------------------
def ablation_forward(packed, x_nchw):
    N = x_nchw.shape[0]
    H, W, C = H_IMG, W_IMG, C_PAD
    # NCHW -> flattened NHWC with channels zero-padded to 8 (lane-dense 16*8 = 128)
    x = jnp.transpose(x_nchw, (0, 2, 3, 1)).astype(jnp.float32)
    x = jnp.pad(x, ((0, 0), (0, 0), (0, 0), (0, C - N_COLORS)))
    x = x.reshape(N, H, W * C)

    out = pl.pallas_call(
        fused_kernel,
        out_shape=jax.ShapeDtypeStruct((N, SCALE, H, W2 * CT), jnp.float32),
        grid=(N,),
        in_specs=[
            pl.BlockSpec((1, H, W * C), lambda n: (n, 0, 0)),
            pl.BlockSpec((NT, 3, W * C, W * C), lambda n: (0, 0, 0, 0)),      # VMEM-resident
            pl.BlockSpec((NT, W * C), lambda n: (0, 0)),
            pl.BlockSpec((SCALE, 3, W * C, W * CUP), lambda n: (0, 0, 0, 0)),
            pl.BlockSpec((SCALE, W * CUP), lambda n: (0, 0)),
            pl.BlockSpec((3, W2 * C, W2 * CT), lambda n: (0, 0, 0)),
            pl.BlockSpec((1, W2 * CT), lambda n: (0, 0)),
        ],
        out_specs=pl.BlockSpec((1, SCALE, H, W2 * CT), lambda n: (n, 0, 0, 0)),
        scratch_shapes=[
            pltpu.VMEM((H + 2, W * C), jnp.float32),      # trunk activation + halo
            pltpu.VMEM((H + 2, W2 * C), jnp.float32),     # pixel-shuffle even rows
            pltpu.VMEM((H + 2, W2 * C), jnp.float32),     # pixel-shuffle odd rows
        ],
        compiler_params=pltpu.CompilerParams(dimension_semantics=("parallel",)),
    )(x, packed["w_trunk"], packed["b_trunk"], packed["w_up"], packed["b_up"],
      packed["w_tail"], packed["b_tail"])

    # (N, 2, 16, 128) -> (N, 32, 32, 4) -> drop pad channel -> NCHW
    Ho, Wo = H * SCALE, W * SCALE
    o = out.reshape(N, SCALE, H, Wo, CT)
    o = jnp.transpose(o, (0, 2, 1, 3, 4)).reshape(N, Ho, Wo, CT)
    o = o[..., :N_COLORS]
    return jnp.transpose(o, (0, 3, 1, 2))


# ------------------------------- pure-JAX reference -------------------------------------
def _ref_conv(x_nhwc, w, b, relu=False):
    y = lax.conv_general_dilated(x_nhwc, w, (1, 1), "SAME",
                                 dimension_numbers=("NHWC", "HWIO", "NHWC"),
                                 precision=lax.Precision.HIGHEST)
    y = y + b
    return jnp.maximum(y, 0.0) if relu else y


def _ref_pixel_shuffle(y_nhwc, r):
    N, Hh, Ww, Crr = y_nhwc.shape
    C = Crr // (r * r)
    y = y_nhwc.reshape(N, Hh, Ww, C, r, r).transpose(0, 1, 4, 2, 5, 3)
    return y.reshape(N, Hh * r, Ww * r, C)


def ref_forward(params, x_nchw):
    x = jnp.transpose(x_nchw, (0, 2, 3, 1))
    x = _ref_conv(x, *params["input"])
    x = _ref_conv(x, *params["head"])
    res = x
    for (w1, b1, w2, b2) in params["body"]:
        t = _ref_conv(res, w1, b1, relu=True)
        res = RES_SCALE * _ref_conv(t, w2, b2) + res
    res = _ref_conv(res, *params["body_out"]) + x
    up = _ref_conv(res, *params["up"])
    up = _ref_pixel_shuffle(up, SCALE)
    out = _ref_conv(up, *params["tail"])
    return jnp.transpose(out, (0, 3, 1, 2))


# ------------------------------- deterministic params -----------------------------------
def _init_conv(key, cin, cout):
    kw, kb = jax.random.split(key)
    w = jax.random.normal(kw, (3, 3, cin, cout), jnp.float32) / (3.0 * (cin ** 0.5))
    b = 0.01 * jax.random.normal(kb, (cout,), jnp.float32)
    return w, b


def init_params(key):
    ks = list(jax.random.split(key, 5 + 2 * N_RESBLOCKS))
    p = {}
    p["input"] = _init_conv(ks.pop(), N_COLORS, N_COLORS + 1)
    p["head"] = _init_conv(ks.pop(), N_COLORS + 1, N_FEATS)
    body = []
    for _ in range(N_RESBLOCKS):
        w1, b1 = _init_conv(ks.pop(), N_FEATS, N_FEATS)
        w2, b2 = _init_conv(ks.pop(), N_FEATS, N_FEATS)
        body.append((w1, b1, w2, b2))
    p["body"] = body
    p["body_out"] = _init_conv(ks.pop(), N_FEATS, N_FEATS)
    p["up"] = _init_conv(ks.pop(), N_FEATS, N_FEATS * SCALE * SCALE)
    p["tail"] = _init_conv(ks.pop(), N_FEATS, N_COLORS)
    return p


# ----------------------------------------- main -----------------------------------------
if __name__ == "__main__":
    key = jax.random.PRNGKey(0)
    kp, kx = jax.random.split(key)
    params = init_params(kp)
    x = jax.random.normal(kx, (2, N_COLORS, H_IMG, W_IMG), jnp.float32)   # NCHW, like PyTorch

    packed = pack_params(params)            # banded weights / bias tiling built once on host
    fwd = jax.jit(ablation_forward)
    out = jax.block_until_ready(fwd(packed, x))

    assert out.shape == (2, N_COLORS, H_IMG * SCALE, W_IMG * SCALE), out.shape

    ref = ref_forward(params, x)
    err = float(jnp.max(jnp.abs(out - ref)))
    assert err < 1e-2, f"mismatch vs reference: max abs err = {err}"

    print("KERNEL_OK")
</pallas_src>

<mosaic_0001>
module attributes {stable_mosaic.version = 11 : i64} {
  func.func @fused_kernel(%arg0: i32, %arg1: memref<1x16x128xf32, #tpu.memory_space<vmem>>, %arg2: memref<7x3x128x128xf32, #tpu.memory_space<vmem>>, %arg3: memref<7x128xf32, #tpu.memory_space<vmem>>, %arg4: memref<2x3x128x256xf32, #tpu.memory_space<vmem>>, %arg5: memref<2x256xf32, #tpu.memory_space<vmem>>, %arg6: memref<3x256x128xf32, #tpu.memory_space<vmem>>, %arg7: memref<1x128xf32, #tpu.memory_space<vmem>>, %arg8: memref<1x2x16x128xf32, #tpu.memory_space<vmem>>, %arg9: memref<18x128xf32, #tpu.memory_space<vmem>>, %arg10: memref<18x256xf32, #tpu.memory_space<vmem>>, %arg11: memref<18x256xf32, #tpu.memory_space<vmem>>) attributes {dimension_semantics = [#tpu.dimension_semantics<parallel>], iteration_bounds = array<i64: 2>, scalar_prefetch = 0 : i64, scratch_operands = 3 : i64, tpu.core_type = #tpu.core_type<tc>, window_params = [{transform_indices = @transform_0, window_bounds = array<i64: 1, 16, 128>}, {pipeline_mode = #tpu.pipeline_mode<synchronous>, transform_indices = @transform_1, window_bounds = array<i64: 7, 3, 128, 128>}, {pipeline_mode = #tpu.pipeline_mode<synchronous>, transform_indices = @transform_2, window_bounds = array<i64: 7, 128>}, {pipeline_mode = #tpu.pipeline_mode<synchronous>, transform_indices = @transform_3, window_bounds = array<i64: 2, 3, 128, 256>}, {pipeline_mode = #tpu.pipeline_mode<synchronous>, transform_indices = @transform_4, window_bounds = array<i64: 2, 256>}, {pipeline_mode = #tpu.pipeline_mode<synchronous>, transform_indices = @transform_5, window_bounds = array<i64: 3, 256, 128>}, {pipeline_mode = #tpu.pipeline_mode<synchronous>, transform_indices = @transform_6, window_bounds = array<i64: 1, 128>}, {transform_indices = @transform_7, window_bounds = array<i64: 1, 2, 16, 128>}]} {
    %cst = arith.constant 0.000000e+00 : f32
    %0 = vector.broadcast %cst : f32 to vector<1x128xf32>
    %c0 = arith.constant 0 : index
    %c0_0 = arith.constant 0 : index
    %1 = vector.load %arg9[%c0, %c0_0] : memref<18x128xf32, #tpu.memory_space<vmem>>, vector<1x128xf32>
    tpu.vector_store %arg9[%c0, %c0_0], %0 {strides = array<i32>} : memref<18x128xf32, #tpu.memory_space<vmem>>, vector<1x128xf32>,
    %cst_1 = arith.constant 0.000000e+00 : f32
    %2 = vector.broadcast %cst_1 : f32 to vector<1x128xf32>
    %c17 = arith.constant 17 : index
    %c0_2 = arith.constant 0 : index
    %3 = vector.load %arg9[%c17, %c0_2] : memref<18x128xf32, #tpu.memory_space<vmem>>, vector<1x128xf32>
    tpu.vector_store %arg9[%c17, %c0_2], %2 {strides = array<i32>} : memref<18x128xf32, #tpu.memory_space<vmem>>, vector<1x128xf32>,
    %cst_3 = arith.constant 0.000000e+00 : f32
    %4 = vector.broadcast %cst_3 : f32 to vector<1x256xf32>
    %c0_4 = arith.constant 0 : index
    %c0_5 = arith.constant 0 : index
    %5 = vector.load %arg11[%c0_4, %c0_5] : memref<18x256xf32, #tpu.memory_space<vmem>>, vector<1x256xf32>
    tpu.vector_store %arg11[%c0_4, %c0_5], %4 {strides = array<i32>} : memref<18x256xf32, #tpu.memory_space<vmem>>, vector<1x256xf32>,
    %cst_6 = arith.constant 0.000000e+00 : f32
    %6 = vector.broadcast %cst_6 : f32 to vector<1x256xf32>
    %c16 = arith.constant 16 : index
    %c0_7 = arith.constant 0 : index
    %7 = vector.load %arg10[%c16, %c0_7] : memref<18x256xf32, #tpu.memory_space<vmem>>, vector<1x256xf32>
    tpu.vector_store %arg10[%c16, %c0_7], %6 {strides = array<i32>} : memref<18x256xf32, #tpu.memory_space<vmem>>, vector<1x256xf32>,
    %c0_8 = arith.constant 0 : index
    %c0_9 = arith.constant 0 : index
    %c0_10 = arith.constant 0 : index
    %8 = vector.load %arg1[%c0_8, %c0_9, %c0_10] : memref<1x16x128xf32, #tpu.memory_space<vmem>>, vector<1x16x128xf32>
    %9 = vector.shape_cast %8 : vector<1x16x128xf32> to vector<16x128xf32>
    %c1 = arith.constant 1 : index
    %c0_11 = arith.constant 0 : index
    %10 = vector.load %arg9[%c1, %c0_11] : memref<18x128xf32, #tpu.memory_space<vmem>>, vector<16x128xf32>
    tpu.vector_store %arg9[%c1, %c0_11], %9 {strides = array<i32>} : memref<18x128xf32, #tpu.memory_space<vmem>>, vector<16x128xf32>,
    %c0_12 = arith.constant 0 : index
    %c0_13 = arith.constant 0 : index
    %11 = vector.load %arg9[%c0_12, %c0_13] : memref<18x128xf32, #tpu.memory_space<vmem>>, vector<16x128xf32>
    %c2 = arith.constant 2 : index
    %c0_14 = arith.constant 0 : index
    %12 = vector.load %arg9[%c2, %c0_14] : memref<18x128xf32, #tpu.memory_space<vmem>>, vector<16x128xf32>
    %c0_15 = arith.constant 0 : index
    %c0_16 = arith.constant 0 : index
    %c0_17 = arith.constant 0 : index
    %c0_18 = arith.constant 0 : index
    %13 = vector.load %arg2[%c0_15, %c0_16, %c0_17, %c0_18] : memref<7x3x128x128xf32, #tpu.memory_space<vmem>>, vector<1x1x128x128xf32>
    %14 = vector.shape_cast %13 : vector<1x1x128x128xf32> to vector<128x128xf32>
    %c0_19 = arith.constant 0 : index
    %c1_20 = arith.constant 1 : index
    %c0_21 = arith.constant 0 : index
    %c0_22 = arith.constant 0 : index
    %15 = vector.load %arg2[%c0_19, %c1_20, %c0_21, %c0_22] : memref<7x3x128x128xf32, #tpu.memory_space<vmem>>, vector<1x1x128x128xf32>
    %16 = vector.shape_cast %15 : vector<1x1x128x128xf32> to vector<128x128xf32>
    %c0_23 = arith.constant 0 : index
    %c2_24 = arith.constant 2 : index
    %c0_25 = arith.constant 0 : index
    %c0_26 = arith.constant 0 : index
    %17 = vector.load %arg2[%c0_23, %c2_24, %c0_25, %c0_26] : memref<7x3x128x128xf32, #tpu.memory_space<vmem>>, vector<1x1x128x128xf32>
    %18 = vector.shape_cast %17 : vector<1x1x128x128xf32> to vector<128x128xf32>
    %c0_27 = arith.constant 0 : index
    %c0_28 = arith.constant 0 : index
    %19 = vector.load %arg3[%c0_27, %c0_28] : memref<7x128xf32, #tpu.memory_space<vmem>>, vector<1x128xf32>
    %cst_29 = arith.constant dense<0.000000e+00> : vector<16x128xf32>
    %20 = tpu.matmul %11, %14, %cst_29 {dimension_numbers = #tpu.dot_dimension_numbers<[1], [0], [0], [1], [0, 0, 1, 1], [], []>} : vector<16x128xf32>, vector<128x128xf32>, vector<16x128xf32> -> vector<16x128xf32>
    %cst_30 = arith.constant dense<0.000000e+00> : vector<16x128xf32>
    %21 = tpu.matmul %9, %16, %cst_30 {dimension_numbers = #tpu.dot_dimension_numbers<[1], [0], [0], [1], [0, 0, 1, 1], [], []>} : vector<16x128xf32>, vector<128x128xf32>, vector<16x128xf32> -> vector<16x128xf32>
    %22 = arith.addf %20, %21 : vector<16x128xf32>
    %cst_31 = arith.constant dense<0.000000e+00> : vector<16x128xf32>
    %23 = tpu.matmul %12, %18, %cst_31 {dimension_numbers = #tpu.dot_dimension_numbers<[1], [0], [0], [1], [0, 0, 1, 1], [], []>} : vector<16x128xf32>, vector<128x128xf32>, vector<16x128xf32> -> vector<16x128xf32>
    %24 = arith.addf %22, %23 : vector<16x128xf32>
    %25 = vector.broadcast %19 : vector<1x128xf32> to vector<16x128xf32>
    %26 = arith.addf %24, %25 : vector<16x128xf32>
    %c1_32 = arith.constant 1 : index
    %c0_33 = arith.constant 0 : index
    %27 = vector.load %arg9[%c1_32, %c0_33] : memref<18x128xf32, #tpu.memory_space<vmem>>, vector<16x128xf32>
    tpu.vector_store %arg9[%c1_32, %c0_33], %26 {strides = array<i32>} : memref<18x128xf32, #tpu.memory_space<vmem>>, vector<16x128xf32>,
    %c0_34 = arith.constant 0 : index
    %c0_35 = arith.constant 0 : index
    %28 = vector.load %arg9[%c0_34, %c0_35] : memref<18x128xf32, #tpu.memory_space<vmem>>, vector<16x128xf32>
    %c2_36 = arith.constant 2 : index
    %c0_37 = arith.constant 0 : index
    %29 = vector.load %arg9[%c2_36, %c0_37] : memref<18x128xf32, #tpu.memory_space<vmem>>, vector<16x128xf32>
    %c1_38 = arith.constant 1 : index
    %c0_39 = arith.constant 0 : index
    %c0_40 = arith.constant 0 : index
    %c0_41 = arith.constant 0 : index
    %30 = vector.load %arg2[%c1_38, %c0_39, %c0_40, %c0_41] : memref<7x3x128x128xf32, #tpu.memory_space<vmem>>, vector<1x1x128x128xf32>
    %31 = vector.shape_cast %30 : vector<1x1x128x128xf32> to vector<128x128xf32>
    %c1_42 = arith.constant 1 : index
    %c1_43 = arith.constant 1 : index
    %c0_44 = arith.constant 0 : index
    %c0_45 = arith.constant 0 : index
    %32 = vector.load %arg2[%c1_42, %c1_43, %c0_44, %c0_45] : memref<7x3x128x128xf32, #tpu.memory_space<vmem>>, vector<1x1x128x128xf32>
    %33 = vector.shape_cast %32 : vector<1x1x128x128xf32> to vector<128x128xf32>
    %c1_46 = arith.constant 1 : index
    %c2_47 = arith.constant 2 : index
    %c0_48 = arith.constant 0 : index
    %c0_49 = arith.constant 0 : index
    %34 = vector.load %arg2[%c1_46, %c2_47, %c0_48, %c0_49] : memref<7x3x128x128xf32, #tpu.memory_space<vmem>>, vector<1x1x128x128xf32>
    %35 = vector.shape_cast %34 : vector<1x1x128x128xf32> to vector<128x128xf32>
    %c1_50 = arith.constant 1 : index
    %c0_51 = arith.constant 0 : index
    %36 = vector.load %arg3[%c1_50, %c0_51] : memref<7x128xf32, #tpu.memory_space<vmem>>, vector<1x128xf32>
    %cst_52 = arith.constant dense<0.000000e+00> : vector<16x128xf32>
    %37 = tpu.matmul %28, %31, %cst_52 {dimension_numbers = #tpu.dot_dimension_numbers<[1], [0], [0], [1], [0, 0, 1, 1], [], []>} : vector<16x128xf32>, vector<128x128xf32>, vector<16x128xf32> -> vector<16x128xf32>
    %cst_53 = arith.constant dense<0.000000e+00> : vector<16x128xf32>
    %38 = tpu.matmul %26, %33, %cst_53 {dimension_numbers = #tpu.dot_dimension_numbers<[1], [0], [0], [1], [0, 0, 1, 1], [], []>} : vector<16x128xf32>, vector<128x128xf32>, vector<16x128xf32> -> vector<16x128xf32>
    %39 = arith.addf %37, %38 : vector<16x128xf32>
    %cst_54 = arith.constant dense<0.000000e+00> : vector<16x128xf32>
    %40 = tpu.matmul %29, %35, %cst_54 {dimension_numbers = #tpu.dot_dimension_numbers<[1], [0], [0], [1], [0, 0, 1, 1], [], []>} : vector<16x128xf32>, vector<128x128xf32>, vector<16x128xf32> -> vector<16x128xf32>
    %41 = arith.addf %39, %40 : vector<16x128xf32>
    %42 = vector.broadcast %36 : vector<1x128xf32> to vector<16x128xf32>
    %43 = arith.addf %41, %42 : vector<16x128xf32>
    %c1_55 = arith.constant 1 : index
    %c0_56 = arith.constant 0 : index
    %44 = vector.load %arg9[%c1_55, %c0_56] : memref<18x128xf32, #tpu.memory_space<vmem>>, vector<16x128xf32>
    tpu.vector_store %arg9[%c1_55, %c0_56], %43 {strides = array<i32>} : memref<18x128xf32, #tpu.memory_space<vmem>>, vector<16x128xf32>,
    %c0_57 = arith.constant 0 : index
    %c0_58 = arith.constant 0 : index
    %45 = vector.load %arg9[%c0_57, %c0_58] : memref<18x128xf32, #tpu.memory_space<vmem>>, vector<16x128xf32>
    %c2_59 = arith.constant 2 : index
    %c0_60 = arith.constant 0 : index
    %46 = vector.load %arg9[%c2_59, %c0_60] : memref<18x128xf32, #tpu.memory_space<vmem>>, vector<16x128xf32>
    %c2_61 = arith.constant 2 : index
    %c0_62 = arith.constant 0 : index
    %c0_63 = arith.constant 0 : index
    %c0_64 = arith.constant 0 : index
    %47 = vector.load %arg2[%c2_61, %c0_62, %c0_63, %c0_64] : memref<7x3x128x128xf32, #tpu.memory_space<vmem>>, vector<1x1x128x128xf32>
    %48 = vector.shape_cast %47 : vector<1x1x128x128xf32> to vector<128x128xf32>
    %c2_65 = arith.constant 2 : index
    %c1_66 = arith.constant 1 : index
    %c0_67 = arith.constant 0 : index
    %c0_68 = arith.constant 0 : index
    %49 = vector.load %arg2[%c2_65, %c1_66, %c0_67, %c0_68] : memref<7x3x128x128xf32, #tpu.memory_space<vmem>>, vector<1x1x128x128xf32>
    %50 = vector.shape_cast %49 : vector<1x1x128x128xf32> to vector<128x128xf32>
    %c2_69 = arith.constant 2 : index
    %c2_70 = arith.constant 2 : index
    %c0_71 = arith.constant 0 : index
    %c0_72 = arith.constant 0 : index
    %51 = vector.load %arg2[%c2_69, %c2_70, %c0_71, %c0_72] : memref<7x3x128x128xf32, #tpu.memory_space<vmem>>, vector<1x1x128x128xf32>
    %52 = vector.shape_cast %51 : vector<1x1x128x128xf32> to vector<128x128xf32>
    %c2_73 = arith.constant 2 : index
    %c0_74 = arith.constant 0 : index
    %53 = vector.load %arg3[%c2_73, %c0_74] : memref<7x128xf32, #tpu.memory_space<vmem>>, vector<1x128xf32>
    %cst_75 = arith.constant dense<0.000000e+00> : vector<16x128xf32>
    %54 = tpu.matmul %45, %48, %cst_75 {dimension_numbers = #tpu.dot_dimension_numbers<[1], [0], [0], [1], [0, 0, 1, 1], [], []>} : vector<16x128xf32>, vector<128x128xf32>, vector<16x128xf32> -> vector<16x128xf32>
    %cst_76 = arith.constant dense<0.000000e+00> : vector<16x128xf32>
    %55 = tpu.matmul %43, %50, %cst_76 {dimension_numbers = #tpu.dot_dimension_numbers<[1], [0], [0], [1], [0, 0, 1, 1], [], []>} : vector<16x128xf32>, vector<128x128xf32>, vector<16x128xf32> -> vector<16x128xf32>
    %56 = arith.addf %54, %55 : vector<16x128xf32>
    %cst_77 = arith.constant dense<0.000000e+00> : vector<16x128xf32>
    %57 = tpu.matmul %46, %52, %cst_77 {dimension_numbers = #tpu.dot_dimension_numbers<[1], [0], [0], [1], [0, 0, 1, 1], [], []>} : vector<16x128xf32>, vector<128x128xf32>, vector<16x128xf32> -> vector<16x128xf32>
    %58 = arith.addf %56, %57 : vector<16x128xf32>
    %59 = vector.broadcast %53 : vector<1x128xf32> to vector<16x128xf32>
    %60 = arith.addf %58, %59 : vector<16x128xf32>
    %cst_78 = arith.constant 0.000000e+00 : f32
    %61 = vector.broadcast %cst_78 : f32 to vector<16x128xf32>
    %62 = arith.maximumf %60, %61 : vector<16x128xf32>
    %c1_79 = arith.constant 1 : index
    %c0_80 = arith.constant 0 : index
    %63 = vector.load %arg9[%c1_79, %c0_80] : memref<18x128xf32, #tpu.memory_space<vmem>>, vector<16x128xf32>
    tpu.vector_store %arg9[%c1_79, %c0_80], %62 {strides = array<i32>} : memref<18x128xf32, #tpu.memory_space<vmem>>, vector<16x128xf32>,
    %c0_81 = arith.constant 0 : index
    %c0_82 = arith.constant 0 : index
    %64 = vector.load %arg9[%c0_81, %c0_82] : memref<18x128xf32, #tpu.memory_space<vmem>>, vector<16x128xf32>
    %c2_83 = arith.constant 2 : index
    %c0_84 = arith.constant 0 : index
    %65 = vector.load %arg9[%c2_83, %c0_84] : memref<18x128xf32, #tpu.memory_space<vmem>>, vector<16x128xf32>
    %c3 = arith.constant 3 : index
    %c0_85 = arith.constant 0 : index
    %c0_86 = arith.constant 0 : index
    %c0_87 = arith.constant 0 : index
    %66 = vector.load %arg2[%c3, %c0_85, %c0_86, %c0_87] : memref<7x3x128x128xf32, #tpu.memory_space<vmem>>, vector<1x1x128x128xf32>
    %67 = vector.shape_cast %66 : vector<1x1x128x128xf32> to vector<128x128xf32>
    %c3_88 = arith.constant 3 : index
    %c1_89 = arith.constant 1 : index
    %c0_90 = arith.constant 0 : index
    %c0_91 = arith.constant 0 : index
    %68 = vector.load %arg2[%c3_88, %c1_89, %c0_90, %c0_91] : memref<7x3x128x128xf32, #tpu.memory_space<vmem>>, vector<1x1x128x128xf32>
    %69 = vector.shape_cast %68 : vector<1x1x128x128xf32> to vector<128x128xf32>
    %c3_92 = arith.constant 3 : index
    %c2_93 = arith.constant 2 : index
    %c0_94 = arith.constant 0 : index
    %c0_95 = arith.constant 0 : index
    %70 = vector.load %arg2[%c3_92, %c2_93, %c0_94, %c0_95] : memref<7x3x128x128xf32, #tpu.memory_space<vmem>>, vector<1x1x128x128xf32>
    %71 = vector.shape_cast %70 : vector<1x1x128x128xf32> to vector<128x128xf32>
    %c3_96 = arith.constant 3 : index
    %c0_97 = arith.constant 0 : index
    %72 = vector.load %arg3[%c3_96, %c0_97] : memref<7x128xf32, #tpu.memory_space<vmem>>, vector<1x128xf32>
    %cst_98 = arith.constant dense<0.000000e+00> : vector<16x128xf32>
    %73 = tpu.matmul %64, %67, %cst_98 {dimension_numbers = #tpu.dot_dimension_numbers<[1], [0], [0], [1], [0, 0, 1, 1], [], []>} : vector<16x128xf32>, vector<128x128xf32>, vector<16x128xf32> -> vector<16x128xf32>
    %cst_99 = arith.constant dense<0.000000e+00> : vector<16x128xf32>
    %74 = tpu.matmul %62, %69, %cst_99 {dimension_numbers = #tpu.dot_dimension_numbers<[1], [0], [0], [1], [0, 0, 1, 1], [], []>} : vector<16x128xf32>, vector<128x128xf32>, vector<16x128xf32> -> vector<16x128xf32>
    %75 = arith.addf %73, %74 : vector<16x128xf32>
    %cst_100 = arith.constant dense<0.000000e+00> : vector<16x128xf32>
    %76 = tpu.matmul %65, %71, %cst_100 {dimension_numbers = #tpu.dot_dimension_numbers<[1], [0], [0], [1], [0, 0, 1, 1], [], []>} : vector<16x128xf32>, vector<128x128xf32>, vector<16x128xf32> -> vector<16x128xf32>
    %77 = arith.addf %75, %76 : vector<16x128xf32>
    %78 = vector.broadcast %72 : vector<1x128xf32> to vector<16x128xf32>
    %79 = arith.addf %77, %78 : vector<16x128xf32>
    %80 = arith.addf %79, %43 : vector<16x128xf32>
    %c1_101 = arith.constant 1 : index
    %c0_102 = arith.constant 0 : index
    %81 = vector.load %arg9[%c1_101, %c0_102] : memref<18x128xf32, #tpu.memory_space<vmem>>, vector<16x128xf32>
    tpu.vector_store %arg9[%c1_101, %c0_102], %80 {strides = array<i32>} : memref<18x128xf32, #tpu.memory_space<vmem>>, vector<16x128xf32>,
    %c0_103 = arith.constant 0 : index
    %c0_104 = arith.constant 0 : index
    %82 = vector.load %arg9[%c0_103, %c0_104] : memref<18x128xf32, #tpu.memory_space<vmem>>, vector<16x128xf32>
    %c2_105 = arith.constant 2 : index
    %c0_106 = arith.constant 0 : index
    %83 = vector.load %arg9[%c2_105, %c0_106] : memref<18x128xf32, #tpu.memory_space<vmem>>, vector<16x128xf32>
    %c4 = arith.constant 4 : index
    %c0_107 = arith.constant 0 : index
    %c0_108 = arith.constant 0 : index
    %c0_109 = arith.constant 0 : index
    %84 = vector.load %arg2[%c4, %c0_107, %c0_108, %c0_109] : memref<7x3x128x128xf32, #tpu.memory_space<vmem>>, vector<1x1x128x128xf32>
    %85 = vector.shape_cast %84 : vector<1x1x128x128xf32> to vector<128x128xf32>
    %c4_110 = arith.constant 4 : index
    %c1_111 = arith.constant 1 : index
    %c0_112 = arith.constant 0 : index
    %c0_113 = arith.constant 0 : index
    %86 = vector.load %arg2[%c4_110, %c1_111, %c0_112, %c0_113] : memref<7x3x128x128xf32, #tpu.memory_space<vmem>>, vector<1x1x128x128xf32>
    %87 = vector.shape_cast %86 : vector<1x1x128x128xf32> to vector<128x128xf32>
    %c4_114 = arith.constant 4 : index
    %c2_115 = arith.constant 2 : index
    %c0_116 = arith.constant 0 : index
    %c0_117 = arith.constant 0 : index
    %88 = vector.load %arg2[%c4_114, %c2_115, %c0_116, %c0_117] : memref<7x3x128x128xf32, #tpu.memory_space<vmem>>, vector<1x1x128x128xf32>
    %89 = vector.shape_cast %88 : vector<1x1x128x128xf32> to vector<128x128xf32>
    %c4_118 = arith.constant 4 : index
    %c0_119 = arith.constant 0 : index
    %90 = vector.load %arg3[%c4_118, %c0_119] : memref<7x128xf32, #tpu.memory_space<vmem>>, vector<1x128xf32>
    %cst_120 = arith.constant dense<0.000000e+00> : vector<16x128xf32>
    %91 = tpu.matmul %82, %85, %cst_120 {dimension_numbers = #tpu.dot_dimension_numbers<[1], [0], [0], [1], [0, 0, 1, 1], [], []>} : vector<16x128xf32>, vector<128x128xf32>, vector<16x128xf32> -> vector<16x128xf32>
    %cst_121 = arith.constant dense<0.000000e+00> : vector<16x128xf32>
    %92 = tpu.matmul %80, %87, %cst_121 {dimension_numbers = #tpu.dot_dimension_numbers<[1], [0], [0], [1], [0, 0, 1, 1], [], []>} : vector<16x128xf32>, vector<128x128xf32>, vector<16x128xf32> -> vector<16x128xf32>
    %93 = arith.addf %91, %92 : vector<16x128xf32>
    %cst_122 = arith.constant dense<0.000000e+00> : vector<16x128xf32>
    %94 = tpu.matmul %83, %89, %cst_122 {dimension_numbers = #tpu.dot_dimension_numbers<[1], [0], [0], [1], [0, 0, 1, 1], [], []>} : vector<16x128xf32>, vector<128x128xf32>, vector<16x128xf32> -> vector<16x128xf32>
    %95 = arith.addf %93, %94 : vector<16x128xf32>
    %96 = vector.broadcast %90 : vector<1x128xf32> to vector<16x128xf32>
    %97 = arith.addf %95, %96 : vector<16x128xf32>
    %cst_123 = arith.constant 0.000000e+00 : f32
    %98 = vector.broadcast %cst_123 : f32 to vector<16x128xf32>
    %99 = arith.maximumf %97, %98 : vector<16x128xf32>
    %c1_124 = arith.constant 1 : index
    %c0_125 = arith.constant 0 : index
    %100 = vector.load %arg9[%c1_124, %c0_125] : memref<18x128xf32, #tpu.memory_space<vmem>>, vector<16x128xf32>
    tpu.vector_store %arg9[%c1_124, %c0_125], %99 {strides = array<i32>} : memref<18x128xf32, #tpu.memory_space<vmem>>, vector<16x128xf32>,
    %c0_126 = arith.constant 0 : index
    %c0_127 = arith.constant 0 : index
    %101 = vector.load %arg9[%c0_126, %c0_127] : memref<18x128xf32, #tpu.memory_space<vmem>>, vector<16x128xf32>
    %c2_128 = arith.constant 2 : index
    %c0_129 = arith.constant 0 : index
    %102 = vector.load %arg9[%c2_128, %c0_129] : memref<18x128xf32, #tpu.memory_space<vmem>>, vector<16x128xf32>
    %c5 = arith.constant 5 : index
    %c0_130 = arith.constant 0 : index
    %c0_131 = arith.constant 0 : index
    %c0_132 = arith.constant 0 : index
    %103 = vector.load %arg2[%c5, %c0_130, %c0_131, %c0_132] : memref<7x3x128x128xf32, #tpu.memory_space<vmem>>, vector<1x1x128x128xf32>
    %104 = vector.shape_cast %103 : vector<1x1x128x128xf32> to vector<128x128xf32>
    %c5_133 = arith.constant 5 : index
    %c1_134 = arith.constant 1 : index
    %c0_135 = arith.constant 0 : index
    %c0_136 = arith.constant 0 : index
    %105 = vector.load %arg2[%c5_133, %c1_134, %c0_135, %c0_136] : memref<7x3x128x128xf32, #tpu.memory_space<vmem>>, vector<1x1x128x128xf32>
    %106 = vector.shape_cast %105 : vector<1x1x128x128xf32> to vector<128x128xf32>
    %c5_137 = arith.constant 5 : index
    %c2_138 = arith.constant 2 : index
    %c0_139 = arith.constant 0 : index
    %c0_140 = arith.constant 0 : index
    %107 = vector.load %arg2[%c5_137, %c2_138, %c0_139, %c0_140] : memref<7x3x128x128xf32, #tpu.memory_space<vmem>>, vector<1x1x128x128xf32>
    %108 = vector.shape_cast %107 : vector<1x1x128x128xf32> to vector<128x128xf32>
    %c5_141 = arith.constant 5 : index
    %c0_142 = arith.constant 0 : index
    %109 = vector.load %arg3[%c5_141, %c0_142] : memref<7x128xf32, #tpu.memory_space<vmem>>, vector<1x128xf32>
    %cst_143 = arith.constant dense<0.000000e+00> : vector<16x128xf32>
    %110 = tpu.matmul %101, %104, %cst_143 {dimension_numbers = #tpu.dot_dimension_numbers<[1], [0], [0], [1], [0, 0, 1, 1], [], []>} : vector<16x128xf32>, vector<128x128xf32>, vector<16x128xf32> -> vector<16x128xf32>
    %cst_144 = arith.constant dense<0.000000e+00> : vector<16x128xf32>
    %111 = tpu.matmul %99, %106, %cst_144 {dimension_numbers = #tpu.dot_dimension_numbers<[1], [0], [0], [1], [0, 0, 1, 1], [], []>} : vector<16x128xf32>, vector<128x128xf32>, vector<16x128xf32> -> vector<16x128xf32>
    %112 = arith.addf %110, %111 : vector<16x128xf32>
    %cst_145 = arith.constant dense<0.000000e+00> : vector<16x128xf32>
    %113 = tpu.matmul %102, %108, %cst_145 {dimension_numbers = #tpu.dot_dimension_numbers<[1], [0], [0], [1], [0, 0, 1, 1], [], []>} : vector<16x128xf32>, vector<128x128xf32>, vector<16x128xf32> -> vector<16x128xf32>
    %114 = arith.addf %112, %113 : vector<16x128xf32>
    %115 = vector.broadcast %109 : vector<1x128xf32> to vector<16x128xf32>
    %116 = arith.addf %114, %115 : vector<16x128xf32>
    %117 = arith.addf %116, %80 : vector<16x128xf32>
    %c1_146 = arith.constant 1 : index
    %c0_147 = arith.constant 0 : index
    %118 = vector.load %arg9[%c1_146, %c0_147] : memref<18x128xf32, #tpu.memory_space<vmem>>, vector<16x128xf32>
    tpu.vector_store %arg9[%c1_146, %c0_147], %117 {strides = array<i32>} : memref<18x128xf32, #tpu.memory_space<vmem>>, vector<16x128xf32>,
    %c0_148 = arith.constant 0 : index
    %c0_149 = arith.constant 0 : index
    %119 = vector.load %arg9[%c0_148, %c0_149] : memref<18x128xf32, #tpu.memory_space<vmem>>, vector<16x128xf32>
    %c2_150 = arith.constant 2 : index
    %c0_151 = arith.constant 0 : index
    %120 = vector.load %arg9[%c2_150, %c0_151] : memref<18x128xf32, #tpu.memory_space<vmem>>, vector<16x128xf32>
    %c6 = arith.constant 6 : index
    %c0_152 = arith.constant 0 : index
    %c0_153 = arith.constant 0 : index
    %c0_154 = arith.constant 0 : index
    %121 = vector.load %arg2[%c6, %c0_152, %c0_153, %c0_154] : memref<7x3x128x128xf32, #tpu.memory_space<vmem>>, vector<1x1x128x128xf32>
    %122 = vector.shape_cast %121 : vector<1x1x128x128xf32> to vector<128x128xf32>
    %c6_155 = arith.constant 6 : index
    %c1_156 = arith.constant 1 : index
    %c0_157 = arith.constant 0 : index
    %c0_158 = arith.constant 0 : index
    %123 = vector.load %arg2[%c6_155, %c1_156, %c0_157, %c0_158] : memref<7x3x128x128xf32, #tpu.memory_space<vmem>>, vector<1x1x128x128xf32>
    %124 = vector.shape_cast %123 : vector<1x1x128x128xf32> to vector<128x128xf32>
    %c6_159 = arith.constant 6 : index
    %c2_160 = arith.constant 2 : index
    %c0_161 = arith.constant 0 : index
    %c0_162 = arith.constant 0 : index
    %125 = vector.load %arg2[%c6_159, %c2_160, %c0_161, %c0_162] : memref<7x3x128x128xf32, #tpu.memory_space<vmem>>, vector<1x1x128x128xf32>
    %126 = vector.shape_cast %125 : vector<1x1x128x128xf32> to vector<128x128xf32>
    %c6_163 = arith.constant 6 : index
    %c0_164 = arith.constant 0 : index
    %127 = vector.load %arg3[%c6_163, %c0_164] : memref<7x128xf32, #tpu.memory_space<vmem>>, vector<1x128xf32>
    %cst_165 = arith.constant dense<0.000000e+00> : vector<16x128xf32>
    %128 = tpu.matmul %119, %122, %cst_165 {dimension_numbers = #tpu.dot_dimension_numbers<[1], [0], [0], [1], [0, 0, 1, 1], [], []>} : vector<16x128xf32>, vector<128x128xf32>, vector<16x128xf32> -> vector<16x128xf32>
    %cst_166 = arith.constant dense<0.000000e+00> : vector<16x128xf32>
    %129 = tpu.matmul %117, %124, %cst_166 {dimension_numbers = #tpu.dot_dimension_numbers<[1], [0], [0], [1], [0, 0, 1, 1], [], []>} : vector<16x128xf32>, vector<128x128xf32>, vector<16x128xf32> -> vector<16x128xf32>
    %130 = arith.addf %128, %129 : vector<16x128xf32>
    %cst_167 = arith.constant dense<0.000000e+00> : vector<16x128xf32>
    %131 = tpu.matmul %120, %126, %cst_167 {dimension_numbers = #tpu.dot_dimension_numbers<[1], [0], [0], [1], [0, 0, 1, 1], [], []>} : vector<16x128xf32>, vector<128x128xf32>, vector<16x128xf32> -> vector<16x128xf32>
    %132 = arith.addf %130, %131 : vector<16x128xf32>
    %133 = vector.broadcast %127 : vector<1x128xf32> to vector<16x128xf32>
    %134 = arith.addf %132, %133 : vector<16x128xf32>
    %135 = arith.addf %134, %43 : vector<16x128xf32>
    %c1_168 = arith.constant 1 : index
    %c0_169 = arith.constant 0 : index
    %136 = vector.load %arg9[%c1_168, %c0_169] : memref<18x128xf32, #tpu.memory_space<vmem>>, vector<16x128xf32>
    tpu.vector_store %arg9[%c1_168, %c0_169], %135 {strides = array<i32>} : memref<18x128xf32, #tpu.memory_space<vmem>>, vector<16x128xf32>,
    %c0_170 = arith.constant 0 : index
    %c0_171 = arith.constant 0 : index
    %137 = vector.load %arg9[%c0_170, %c0_171] : memref<18x128xf32, #tpu.memory_space<vmem>>, vector<16x128xf32>
    %c2_172 = arith.constant 2 : index
    %c0_173 = arith.constant 0 : index
    %138 = vector.load %arg9[%c2_172, %c0_173] : memref<18x128xf32, #tpu.memory_space<vmem>>, vector<16x128xf32>
    %c0_174 = arith.constant 0 : index
    %c0_175 = arith.constant 0 : index
    %c0_176 = arith.constant 0 : index
    %c0_177 = arith.constant 0 : index
    %139 = vector.load %arg4[%c0_174, %c0_175, %c0_176, %c0_177] : memref<2x3x128x256xf32, #tpu.memory_space<vmem>>, vector<1x1x128x256xf32>
    %140 = vector.shape_cast %139 : vector<1x1x128x256xf32> to vector<128x256xf32>
    %c0_178 = arith.constant 0 : index
    %c1_179 = arith.constant 1 : index
    %c0_180 = arith.constant 0 : index
    %c0_181 = arith.constant 0 : index
    %141 = vector.load %arg4[%c0_178, %c1_179, %c0_180, %c0_181] : memref<2x3x128x256xf32, #tpu.memory_space<vmem>>, vector<1x1x128x256xf32>
    %142 = vector.shape_cast %141 : vector<1x1x128x256xf32> to vector<128x256xf32>
    %c0_182 = arith.constant 0 : index
    %c2_183 = arith.constant 2 : index
    %c0_184 = arith.constant 0 : index
    %c0_185 = arith.constant 0 : index
    %143 = vector.load %arg4[%c0_182, %c2_183, %c0_184, %c0_185] : memref<2x3x128x256xf32, #tpu.memory_space<vmem>>, vector<1x1x128x256xf32>
    %144 = vector.shape_cast %143 : vector<1x1x128x256xf32> to vector<128x256xf32>
    %c0_186 = arith.constant 0 : index
    %c0_187 = arith.constant 0 : index
    %145 = vector.load %arg5[%c0_186, %c0_187] : memref<2x256xf32, #tpu.memory_space<vmem>>, vector<1x256xf32>
    %cst_188 = arith.constant dense<0.000000e+00> : vector<16x256xf32>
    %146 = tpu.matmul %137, %140, %cst_188 {dimension_numbers = #tpu.dot_dimension_numbers<[1], [0], [0], [1], [0, 0, 1, 1], [], []>} : vector<16x128xf32>, vector<128x256xf32>, vector<16x256xf32> -> vector<16x256xf32>
    %cst_189 = arith.constant dense<0.000000e+00> : vector<16x256xf32>
    %147 = tpu.matmul %135, %142, %cst_189 {dimension_numbers = #tpu.dot_dimension_numbers<[1], [0], [0], [1], [0, 0, 1, 1], [], []>} : vector<16x128xf32>, vector<128x256xf32>, vector<16x256xf32> -> vector<16x256xf32>
    %148 = arith.addf %146, %147 : vector<16x256xf32>
    %cst_190 = arith.constant dense<0.000000e+00> : vector<16x256xf32>
    %149 = tpu.matmul %138, %144, %cst_190 {dimension_numbers = #tpu.dot_dimension_numbers<[1], [0], [0], [1], [0, 0, 1, 1], [], []>} : vector<16x128xf32>, vector<128x256xf32>, vector<16x256xf32> -> vector<16x256xf32>
    %150 = arith.addf %148, %149 : vector<16x256xf32>
    %151 = vector.broadcast %145 : vector<1x256xf32> to vector<16x256xf32>
    %152 = arith.addf %150, %151 : vector<16x256xf32>
    %c1_191 = arith.constant 1 : index
    %c0_192 = arith.constant 0 : index
    %c0_193 = arith.constant 0 : index
    %c0_194 = arith.constant 0 : index
    %153 = vector.load %arg4[%c1_191, %c0_192, %c0_193, %c0_194] : memref<2x3x128x256xf32, #tpu.memory_space<vmem>>, vector<1x1x128x256xf32>
    %154 = vector.shape_cast %153 : vector<1x1x128x256xf32> to vector<128x256xf32>
    %c1_195 = arith.constant 1 : index
    %c1_196 = arith.constant 1 : index
    %c0_197 = arith.constant 0 : index
    %c0_198 = arith.constant 0 : index
    %155 = vector.load %arg4[%c1_195, %c1_196, %c0_197, %c0_198] : memref<2x3x128x256xf32, #tpu.memory_space<vmem>>, vector<1x1x128x256xf32>
    %156 = vector.shape_cast %155 : vector<1x1x128x256xf32> to vector<128x256xf32>
    %c1_199 = arith.constant 1 : index
    %c2_200 = arith.constant 2 : index
    %c0_201 = arith.constant 0 : index
    %c0_202 = arith.constant 0 : index
    %157 = vector.load %arg4[%c1_199, %c2_200, %c0_201, %c0_202] : memref<2x3x128x256xf32, #tpu.memory_space<vmem>>, vector<1x1x128x256xf32>
    %158 = vector.shape_cast %157 : vector<1x1x128x256xf32> to vector<128x256xf32>
    %c1_203 = arith.constant 1 : index
    %c0_204 = arith.constant 0 : index
    %159 = vector.load %arg5[%c1_203, %c0_204] : memref<2x256xf32, #tpu.memory_space<vmem>>, vector<1x256xf32>
    %cst_205 = arith.constant dense<0.000000e+00> : vector<16x256xf32>
    %160 = tpu.matmul %137, %154, %cst_205 {dimension_numbers = #tpu.dot_dimension_numbers<[1], [0], [0], [1], [0, 0, 1, 1], [], []>} : vector<16x128xf32>, vector<128x256xf32>, vector<16x256xf32> -> vector<16x256xf32>
    %cst_206 = arith.constant dense<0.000000e+00> : vector<16x256xf32>
    %161 = tpu.matmul %135, %156, %cst_206 {dimension_numbers = #tpu.dot_dimension_numbers<[1], [0], [0], [1], [0, 0, 1, 1], [], []>} : vector<16x128xf32>, vector<128x256xf32>, vector<16x256xf32> -> vector<16x256xf32>
    %162 = arith.addf %160, %161 : vector<16x256xf32>
    %cst_207 = arith.constant dense<0.000000e+00> : vector<16x256xf32>
    %163 = tpu.matmul %138, %158, %cst_207 {dimension_numbers = #tpu.dot_dimension_numbers<[1], [0], [0], [1], [0, 0, 1, 1], [], []>} : vector<16x128xf32>, vector<128x256xf32>, vector<16x256xf32> -> vector<16x256xf32>
    %164 = arith.addf %162, %163 : vector<16x256xf32>
    %165 = vector.broadcast %159 : vector<1x256xf32> to vector<16x256xf32>
    %166 = arith.addf %164, %165 : vector<16x256xf32>
    %c0_208 = arith.constant 0 : index
    %c0_209 = arith.constant 0 : index
    %167 = vector.load %arg10[%c0_208, %c0_209] : memref<18x256xf32, #tpu.memory_space<vmem>>, vector<16x256xf32>
    tpu.vector_store %arg10[%c0_208, %c0_209], %152 {strides = array<i32>} : memref<18x256xf32, #tpu.memory_space<vmem>>, vector<16x256xf32>,
    %c1_210 = arith.constant 1 : index
    %c0_211 = arith.constant 0 : index
    %168 = vector.load %arg11[%c1_210, %c0_211] : memref<18x256xf32, #tpu.memory_space<vmem>>, vector<16x256xf32>
    tpu.vector_store %arg11[%c1_210, %c0_211], %166 {strides = array<i32>} : memref<18x256xf32, #tpu.memory_space<vmem>>, vector<16x256xf32>,
    %c0_212 = arith.constant 0 : index
    %c0_213 = arith.constant 0 : index
    %169 = vector.load %arg11[%c0_212, %c0_213] : memref<18x256xf32, #tpu.memory_space<vmem>>, vector<16x256xf32>
    %c1_214 = arith.constant 1 : index
    %c0_215 = arith.constant 0 : index
    %170 = vector.load %arg10[%c1_214, %c0_215] : memref<18x256xf32, #tpu.memory_space<vmem>>, vector<16x256xf32>
    %c0_216 = arith.constant 0 : index
    %c0_217 = arith.constant 0 : index
    %c0_218 = arith.constant 0 : index
    %171 = vector.load %arg6[%c0_216, %c0_217, %c0_218] : memref<3x256x128xf32, #tpu.memory_space<vmem>>, vector<1x256x128xf32>
    %172 = vector.shape_cast %171 : vector<1x256x128xf32> to vector<256x128xf32>
    %c1_219 = arith.constant 1 : index
    %c0_220 = arith.constant 0 : index
    %c0_221 = arith.constant 0 : index
    %173 = vector.load %arg6[%c1_219, %c0_220, %c0_221] : memref<3x256x128xf32, #tpu.memory_space<vmem>>, vector<1x256x128xf32>
    %174 = vector.shape_cast %173 : vector<1x256x128xf32> to vector<256x128xf32>
    %c2_222 = arith.constant 2 : index
    %c0_223 = arith.constant 0 : index
    %c0_224 = arith.constant 0 : index
    %175 = vector.load %arg6[%c2_222, %c0_223, %c0_224] : memref<3x256x128xf32, #tpu.memory_space<vmem>>, vector<1x256x128xf32>
    %176 = vector.shape_cast %175 : vector<1x256x128xf32> to vector<256x128xf32>
    %c0_225 = arith.constant 0 : index
    %c0_226 = arith.constant 0 : index
    %177 = vector.load %arg7[%c0_225, %c0_226] : memref<1x128xf32, #tpu.memory_space<vmem>>, vector<1x128xf32>
    %cst_227 = arith.constant dense<0.000000e+00> : vector<16x128xf32>
    %178 = tpu.matmul %169, %172, %cst_227 {dimension_numbers = #tpu.dot_dimension_numbers<[1], [0], [0], [1], [0, 0, 1, 1], [], []>} : vector<16x256xf32>, vector<256x128xf32>, vector<16x128xf32> -> vector<16x128xf32>
    %cst_228 = arith.constant dense<0.000000e+00> : vector<16x128xf32>
    %179 = tpu.matmul %152, %174, %cst_228 {dimension_numbers = #tpu.dot_dimension_numbers<[1], [0], [0], [1], [0, 0, 1, 1], [], []>} : vector<16x256xf32>, vector<256x128xf32>, vector<16x128xf32> -> vector<16x128xf32>
    %180 = arith.addf %178, %179 : vector<16x128xf32>
    %cst_229 = arith.constant dense<0.000000e+00> : vector<16x128xf32>
    %181 = tpu.matmul %166, %176, %cst_229 {dimension_numbers = #tpu.dot_dimension_numbers<[1], [0], [0], [1], [0, 0, 1, 1], [], []>} : vector<16x256xf32>, vector<256x128xf32>, vector<16x128xf32> -> vector<16x128xf32>
    %182 = arith.addf %180, %181 : vector<16x128xf32>
    %183 = vector.broadcast %177 : vector<1x128xf32> to vector<16x128xf32>
    %184 = arith.addf %182, %183 : vector<16x128xf32>
    %cst_230 = arith.constant dense<0.000000e+00> : vector<16x128xf32>
    %185 = tpu.matmul %152, %172, %cst_230 {dimension_numbers = #tpu.dot_dimension_numbers<[1], [0], [0], [1], [0, 0, 1, 1], [], []>} : vector<16x256xf32>, vector<256x128xf32>, vector<16x128xf32> -> vector<16x128xf32>
    %cst_231 = arith.constant dense<0.000000e+00> : vector<16x128xf32>
    %186 = tpu.matmul %166, %174, %cst_231 {dimension_numbers = #tpu.dot_dimension_numbers<[1], [0], [0], [1], [0, 0, 1, 1], [], []>} : vector<16x256xf32>, vector<256x128xf32>, vector<16x128xf32> -> vector<16x128xf32>
    %187 = arith.addf %185, %186 : vector<16x128xf32>
    %cst_232 = arith.constant dense<0.000000e+00> : vector<16x128xf32>
    %188 = tpu.matmul %170, %176, %cst_232 {dimension_numbers = #tpu.dot_dimension_numbers<[1], [0], [0], [1], [0, 0, 1, 1], [], []>} : vector<16x256xf32>, vector<256x128xf32>, vector<16x128xf32> -> vector<16x128xf32>
    %189 = arith.addf %187, %188 : vector<16x128xf32>
    %190 = vector.broadcast %177 : vector<1x128xf32> to vector<16x128xf32>
    %191 = arith.addf %189, %190 : vector<16x128xf32>
    %c0_233 = arith.constant 0 : index
    %c0_234 = arith.constant 0 : index
    %c0_235 = arith.constant 0 : index
    %c0_236 = arith.constant 0 : index
    %192 = vector.load %arg8[%c0_233, %c0_234, %c0_235, %c0_236] : memref<1x2x16x128xf32, #tpu.memory_space<vmem>>, vector<1x1x16x128xf32>
    %193 = vector.shape_cast %192 : vector<1x1x16x128xf32> to vector<16x128xf32>
    %194 = vector.shape_cast %184 : vector<16x128xf32> to vector<1x1x16x128xf32>
    tpu.vector_store %arg8[%c0_233, %c0_234, %c0_235, %c0_236], %194 {strides = array<i32>} : memref<1x2x16x128xf32, #tpu.memory_space<vmem>>, vector<1x1x16x128xf32>,
    %c0_237 = arith.constant 0 : index
    %c1_238 = arith.constant 1 : index
    %c0_239 = arith.constant 0 : index
    %c0_240 = arith.constant 0 : index
    %195 = vector.load %arg8[%c0_237, %c1_238, %c0_239, %c0_240] : memref<1x2x16x128xf32, #tpu.memory_space<vmem>>, vector<1x1x16x128xf32>
    %196 = vector.shape_cast %195 : vector<1x1x16x128xf32> to vector<16x128xf32>
    %197 = vector.shape_cast %191 : vector<16x128xf32> to vector<1x1x16x128xf32>
    tpu.vector_store %arg8[%c0_237, %c1_238, %c0_239, %c0_240], %197 {strides = array<i32>} : memref<1x2x16x128xf32, #tpu.memory_space<vmem>>, vector<1x1x16x128xf32>,
    return
  }
  func.func @transform_0(%arg0: i32) -> (i32, i32, i32) {
    %c0_i32 = arith.constant 0 : i32
    %c0_i32_0 = arith.constant 0 : i32
    %c0_i32_1 = arith.constant 0 : i32
    return %arg0, %c0_i32, %c0_i32_0 : i32, i32, i32
  }
  func.func @transform_1(%arg0: i32) -> (i32, i32, i32, i32) {
    %c0_i32 = arith.constant 0 : i32
    %c0_i32_0 = arith.constant 0 : i32
    %c0_i32_1 = arith.constant 0 : i32
    %c0_i32_2 = arith.constant 0 : i32
    %c0_i32_3 = arith.constant 0 : i32
    return %c0_i32, %c0_i32_0, %c0_i32_1, %c0_i32_2 : i32, i32, i32, i32
  }
  func.func @transform_2(%arg0: i32) -> (i32, i32) {
    %c0_i32 = arith.constant 0 : i32
    %c0_i32_0 = arith.constant 0 : i32
    %c0_i32_1 = arith.constant 0 : i32
    return %c0_i32, %c0_i32_0 : i32, i32
  }
  func.func @transform_3(%arg0: i32) -> (i32, i32, i32, i32) {
    %c0_i32 = arith.constant 0 : i32
    %c0_i32_0 = arith.constant 0 : i32
    %c0_i32_1 = arith.constant 0 : i32
    %c0_i32_2 = arith.constant 0 : i32
    %c0_i32_3 = arith.constant 0 : i32
    return %c0_i32, %c0_i32_0, %c0_i32_1, %c0_i32_2 : i32, i32, i32, i32
  }
  func.func @transform_4(%arg0: i32) -> (i32, i32) {
    %c0_i32 = arith.constant 0 : i32
    %c0_i32_0 = arith.constant 0 : i32
    %c0_i32_1 = arith.constant 0 : i32
    return %c0_i32, %c0_i32_0 : i32, i32
  }
  func.func @transform_5(%arg0: i32) -> (i32, i32, i32) {
    %c0_i32 = arith.constant 0 : i32
    %c0_i32_0 = arith.constant 0 : i32
    %c0_i32_1 = arith.constant 0 : i32
    %c0_i32_2 = arith.constant 0 : i32
    return %c0_i32, %c0_i32_0, %c0_i32_1 : i32, i32, i32
  }
  func.func @transform_6(%arg0: i32) -> (i32, i32) {
    %c0_i32 = arith.constant 0 : i32
    %c0_i32_0 = arith.constant 0 : i32
    %c0_i32_1 = arith.constant 0 : i32
    return %c0_i32, %c0_i32_0 : i32, i32
  }
  func.func @transform_7(%arg0: i32) -> (i32, i32, i32, i32) {
    %c0_i32 = arith.constant 0 : i32
    %c0_i32_0 = arith.constant 0 : i32
    %c0_i32_1 = arith.constant 0 : i32
    %c0_i32_2 = arith.constant 0 : i32
    return %arg0, %c0_i32, %c0_i32_0, %c0_i32_1 : i32, i32, i32, i32
  }
}

</mosaic_0001>

<bundles_post_ra>
// kernel: ablation_forward.1
= control target key start
LH: loop header
LB: loop body
LE: loop exit
PB: predicated region body
PF: predicated region fallthrough
CT: control target
= control target key end

     0   :  { %12 = vsyncpa [#allocation6], 0  ;;  %s6247_s0 = inlined_call_operand.vmem [shape: f32[2,16,128], index: 0, kind: input, shape index: {}]   ;;  %s6248_s1 = inlined_call_operand.hbm [shape: f32[7,3,128,128], index: 1, kind: input, shape index: {}]   ;;  %s6249_s2 = inlined_call_operand.hbm [shape: f32[7,128], index: 2, kind: input, shape index: {}]   ;;  %s6250_s3 = inlined_call_operand.hbm [shape: f32[2,3,128,256], index: 3, kind: input, shape index: {}]   ;;  %s6251_s4 = inlined_call_operand.hbm [shape: f32[2,256], index: 4, kind: input, shape index: {}]   ;;  %s6252_s5 = inlined_call_operand.hbm [shape: f32[3,256,128], index: 5, kind: input, shape index: {}]   ;;  %s6253_s6 = inlined_call_operand.hbm [shape: f32[1,128], index: 6, kind: input, shape index: {}]   ;;  %s6254_s7 = inlined_call_operand.vmem [shape: f32[2,2,16,128], index: 7, kind: output, shape index: {}]  }
   0x1   :  { %13 = vsyncpa [#allocation8], 0 }
   0x2   :  { %14 = vsyncpa [#allocation11], 0 }
   0x3   :  { %15 = vsyncpa [#allocation14], 0  ;;  %s5580_s24 = smov 0  }
   0x4 LB: > { %s5529_s25 = smov [#allocation7]   ;;  %s5586_s27 = sadd.s32 4294967295, %s5527_s24   ;;  %s5527_s24 = sphi %s5580_s24, %s21_s24  }
   0x5   : > { %s230_s26 = sshll.u32 %s5529_s25, 4  ;;  %p3869_p0 = scmp.ge.s32.totalorder %s5527_s24, 1  ;;  %s231_s26 = int_to_ptr.vmem [resolvable:$true] %s230_s26 }
   0x6   : > { %p204_p1 = scmp.lt.s32.totalorder %s5527_s24, 3  ;;  %p6255_p2 = scmp.eq.s32.totalorder %s5586_s27, 0 }
   0x7   : > { %s5530_s29 = smov [#allocation10]   ;;  %s5531_s8 = smov [#allocation5]  }
   0x8   : > { %p5591_p3 = pnand %p3869_p0, %p204_p1  ;;  %s254_s30 = sshll.u32 %s5530_s29, 4  ;;  %s255_s30 = int_to_ptr.vmem [resolvable:$true] %s254_s30 }
   0x9   : > { %s216_s9 = sshll.u32 %s5531_s8, 4  ;;  %s5532_s11 = smov [#allocation9]   ;;  %s5603_s9 = int_to_ptr.vmem [resolvable:$true] %s216_s9 }
   0xa   : > { %s6354_s28 = scalar_select %p5591_p3, 1, 0 }
   0xb   : > { %p5299_p4 = pneg %p5591_p3  ;;  %s5605_s12 = sshll.u32 %s5532_s11, 4  ;;  %s241_s12 = int_to_ptr.vmem [resolvable:$true] %s5605_s12 }
   0xc   : > { %s5360_s14 = scalar_lea.vmem %s231_s26, 128  ;;  %p5368_p10 = scmp.lt.s32.totalorder %s231_s26, %s231_s26 }
   0xd   : > { %p5599_p5 = pnand %p6255_p2, %p5299_p4  ;;  %p5361_p7 = scmp.ne.s32.totalorder %s231_s26, %s5360_s14 }
   0xe   : > { %p5369_p11 = scmp.lt.s32.totalorder %s5360_s14, %s5360_s14 }
   0xf   : > { %p5609_p6 = pneg %p5599_p5 }
  0x10   : > { %p5370_p12 = por %p5369_p11, %p5368_p10 }
  0x11   : > { %p5363_p8 = pnand %p5361_p7, %p5609_p6 }
  0x13   : > { %p5364_p9 = pneg %p5363_p8 }
  0x15   : > { %p5371_p13 = pnand %p5370_p12, %p5364_p9 }
  0x17   : > { %5374 = shalt.err (!%p5371_p13)
}
  0x18   : > { %5305 = dma.hbm_to_vmem [thread:$0]  (!%p5599_p5), %s6249_s2, 128, %s231_s26, [#allocation8]  }
  0x19   : > { %s5386_s17 = scalar_lea.vmem %s255_s30, 64  ;;  %p5394_p2 = scmp.lt.s32.totalorder %s255_s30, %s255_s30 }
  0x1a   : > { %p5387_p0 = scmp.ne.s32.totalorder %s255_s30, %s5386_s17  ;;  %p5395_p7 = scmp.lt.s32.totalorder %s5386_s17, %s5386_s17 }
  0x1c   : > { %p5389_p1 = pnand %p5387_p0, %p5609_p6  ;;  %p5396_p8 = por %p5395_p7, %p5394_p2 }
  0x1e   : > { %p5390_p4 = pneg %p5389_p1 }
  0x20   : > { %p5397_p3 = pnand %p5396_p8, %p5390_p4 }
  0x22   : > { %5400 = shalt.err (!%p5397_p3)
}
  0x23   : > { %5311 = dma.hbm_to_vmem [thread:$0]  (!%p5599_p5), %s6251_s4, 64, %s255_s30, [#allocation11]  }
  0x24   : > { %s5412_s20 = scalar_lea.vmem %s5603_s9, 43008  ;;  %p5420_p12 = scmp.lt.s32.totalorder %s5603_s9, %s5603_s9 }
  0x25   : > { %p5413_p9 = scmp.ne.s32.totalorder %s5603_s9, %s5412_s20  ;;  %p5421_p2 = scmp.lt.s32.totalorder %s5412_s20, %s5412_s20 }
  0x27   : > { %p5415_p10 = pnand %p5413_p9, %p5609_p6  ;;  %p5422_p13 = por %p5421_p2, %p5420_p12 }
  0x29   : > { %p5416_p11 = pneg %p5415_p10 }
  0x2b   : > { %p5423_p3 = pnand %p5422_p13, %p5416_p11 }
  0x2d   : > { %5426 = shalt.err (!%p5423_p3)
}
  0x2e   : > { %s5533_s21 = smov 128   ;;  %s5534_s22 = smov 8  }
  0x2f   : > { %5302 = dma.hbm_to_vmem [thread:$0]  (!%p5599_p5), %s6248_s1, 43008, %s5603_s9, [#allocation6], %s5533_s21, %s5533_s21, %s5534_s22  }
  0x30   : > { %s5438_s26 = scalar_lea.vmem %s241_s12, 24576  ;;  %p5446_p7 = scmp.lt.s32.totalorder %s241_s12, %s241_s12 }
  0x31   : > { %p5439_p0 = scmp.ne.s32.totalorder %s241_s12, %s5438_s26  ;;  %p5447_p8 = scmp.lt.s32.totalorder %s5438_s26, %s5438_s26 }
  0x33   : > { %p5441_p1 = pnand %p5439_p0, %p5609_p6  ;;  %p5448_p9 = por %p5447_p8, %p5446_p7 }
  0x35   : > { %p5442_p4 = pneg %p5441_p1 }
  0x37   : > { %p5449_p10 = pnand %p5448_p9, %p5442_p4 }
  0x39   : > { %5452 = shalt.err (!%p5449_p10)
}
  0x3a   : > { %s5535_s29 = smov 256   ;;  %s5536_s30 = smov 16  }
  0x3b   : > { %5308 = dma.hbm_to_vmem [thread:$0]  (!%p5599_p5), %s6250_s3, 24576, %s241_s12, [#allocation8], %s5535_s29, %s5535_s29, %s5536_s30  }
  0x3c   : > { %s5537_s9 = smov [#allocation12]   ;;  %s5538_s15 = smov [#allocation13]  }
  0x3d   : > { %s264_s14 = sshll.u32 %s5537_s9, 4  ;;  %s278_s16 = sshll.u32 %s5538_s15, 4  ;;  %s265_s14 = int_to_ptr.vmem [resolvable:$true] %s264_s14  ;;  %s279_s16 = int_to_ptr.vmem [resolvable:$true] %s278_s16 }
  0x3e   : > { %s5464_s17 = scalar_lea.vmem %s265_s14, 12288  ;;  %p5472_p13 = scmp.lt.s32.totalorder %s265_s14, %s265_s14 }
  0x3f   : > { %p5465_p11 = scmp.ne.s32.totalorder %s265_s14, %s5464_s17  ;;  %p5473_p3 = scmp.lt.s32.totalorder %s5464_s17, %s5464_s17 }
  0x41   : > { %p5467_p12 = pnand %p5465_p11, %p5609_p6  ;;  %p5474_p0 = por %p5473_p3, %p5472_p13 }
  0x43   : > { %p5468_p2 = pneg %p5467_p12 }
  0x45   : > { %p5475_p1 = pnand %p5474_p0, %p5468_p2 }
  0x47   : > { %5478 = shalt.err (!%p5475_p1)
}
  0x48   : > { %5314 = dma.hbm_to_vmem [thread:$0]  (!%p5599_p5), %s6252_s5, 12288, %s265_s14, [#allocation11], %s5533_s21, %s5533_s21, %s5534_s22  }
  0x49   : > { %s5490_s19 = scalar_lea.vmem %s279_s16, 16  ;;  %s5497_s20 = scalar_lea.vmem %s279_s16, 32 }
  0x4a   : > { %p5491_p4 = scmp.ne.s32.totalorder %s279_s16, %s5490_s19  ;;  %p5498_p9 = scmp.lt.s32.totalorder %s279_s16, %s279_s16 }
  0x4b   : > { %p5499_p10 = scmp.lt.s32.totalorder %s5497_s20, %s5490_s19 }
  0x4c   : > { %p5493_p7 = pnand %p5491_p4, %p5609_p6 }
  0x4d   : > { %p5500_p11 = por %p5499_p10, %p5498_p9 }
  0x4e   : > { %p5494_p8 = pneg %p5493_p7 }
  0x50   : > { %p5501_p12 = pnand %p5500_p11, %p5494_p8 }
  0x52   : > { %5504 = shalt.err (!%p5501_p12)
}
  0x53   : > { %5317 = dma.hbm_to_vmem [thread:$0]  (!%p5599_p5), %s6253_s6, 16, %s279_s16, [#allocation14]  }
  0x54   : > { %p6357_p2 = scmp.ne.s32.totalorder %s6354_s28, 0 }
  0x56   : > { %299 = sbr.rel (%p6357_p2) target bundleno = 2331 (0x91b), region = 48 }
  0x5b   : > { %p6358_p13 = scmp.eq.s32.totalorder %s5586_s27, 0 }
  0x5d   : > { %5510 = dma.done.wait (%p6358_p13), [#allocation6], 43008   ;;  %p6359_p6 = pmov %p6358_p13 }
  0x5f   : > { %5512 = vsyncadd (%p6359_p6), [#allocation6], 4294924288  ;;  %p6360_p3 = pmov %p6359_p6 }
  0x61   : > { %5514 = dma.done.wait (%p6360_p3), [#allocation8], 24704   ;;  %p6361_p0 = pmov %p6360_p3 }
  0x63   : > { %5516 = vsyncadd (%p6361_p0), [#allocation8], 4294942592  ;;  %p6362_p1 = pmov %p6361_p0 }
  0x64   : > { %p6363_p5 = pmov %p6361_p0 }
  0x65   : > { %5518 = dma.done.wait (%p6362_p1), [#allocation11], 12352  }
  0x66   : > { %5520 = vsyncadd (%p6363_p5), [#allocation11], 4294954944  ;;  %p6364_p4 = pmov %p6361_p0 }
  0x67   : > { %p6365_p7 = pmov %p6361_p0 }
  0x68   : > { %5522 = dma.done.wait (%p6364_p4), [#allocation14], 16  }
  0x69   : > { %5524 = vsyncadd (%p6365_p7), [#allocation14], 4294967280  ;;  %v5539_v0 = vmov 0.0   ;;  %p351_p8 = scmp.lt.s32.totalorder %s5586_s27, 1  ;;  %v412_v1 = vld [vmem:[#allocation5 + $0xf8] sm:$0xff]  ;;  %v411_v3 = vld [vmem:[#allocation5 + $0xf0] sm:$0xff] }
  0x6a   : > { %361 = vst [vmem:[#allocation2] sm:$0x1] %v5539_v0  ;;  %362 = vst [vmem:[#allocation2 + $0x11] sm:$0x1] %v5539_v0  ;;  %v395_v2 = vld [vmem:[#allocation5 + $0x78] sm:$0xff]  ;;  %4508 = vmatprep.subr.mxu0 %v412_v1  ;;  %v394_v4 = vld [vmem:[#allocation5 + $0x70] sm:$0xff] }
  0x6b   : > { %s6490_s27 = smov (!%p351_p8, %s5586_s27), 1  ;;  %4543 = vmatprep.subr.mxu1 %v395_v2  ;;  %4509 = vmatpush3.msra.mxu0 %v412_v1  ;;  %v410_v5 = vld [vmem:[#allocation5 + $0xe8] sm:$0xff]  ;;  %v409_v7 = vld [vmem:[#allocation5 + $0xe0] sm:$0xff]  ;;  %v408_v9 = vld [vmem:[#allocation5 + $0xd8] sm:$0xff]  ;;  %vm3134_vm1 = vcmask 1040384   ;;  %vm3653_vm2 = vcmask 1046528  }
  0x6c   : > { %4544 = vmatpush3.msra.mxu1 %v395_v2  ;;  %v393_v6 = vld [vmem:[#allocation5 + $0x68] sm:$0xff]  ;;  %4510 = vmatprep.subr.mxu0 %v411_v3  ;;  %v392_v8 = vld [vmem:[#allocation5 + $0x60] sm:$0xff]  ;;  %s3900_s28 = sshll.u32 %s6490_s27, 4  ;;  %v391_v10 = vld [vmem:[#allocation5 + $0x58] sm:$0xff]  ;;  %s3901_s22 = sshll.u32 %s6490_s27, 5 }
  0x6d   : > { %4545 = vmatprep.subr.mxu1 %v394_v4  ;;  %4511 = vmatpush3.msra.mxu0 %v411_v3  ;;  %s355_s21 = scalar_lea.vmem %s6247_s0, %s3900_s28  ;;  %v407_v11 = vld [vmem:[#allocation5 + $0xd0] sm:$0xff]  ;;  %v406_v13 = vld [vmem:[#allocation5 + $0xc8] sm:$0xff]  ;;  %v405_v17 = vld [vmem:[#allocation5 + $0xc0] sm:$0xff]  ;;  %s6238_s30 = scalar_lea.vmem %s6254_s7, %s3901_s22 }
  0x6e   : > { %4546 = vmatpush3.msra.mxu1 %v394_v4  ;;  %4512 = vmatprep.subr.mxu0 %v410_v5  ;;  %v390_v12 = vld [vmem:[#allocation5 + $0x50] sm:$0xff]  ;;  %v389_v14 = vld [vmem:[#allocation5 + $0x48] sm:$0xff]  ;;  %v388_v18 = vld [vmem:[#allocation5 + $0x40] sm:$0xff] }
  0x6f   : > { %4547 = vmatprep.subr.mxu1 %v393_v6  ;;  %4513 = vmatpush3.msra.mxu0 %v410_v5  ;;  %v5695_v15 = vld [vmem:[%s355_s21] sm:$0xff]  ;;  %v5698_v16 = vld [vmem:[%s355_s21 + $0x8] sm:$0xff]  ;;  %v404_v19 = vld [vmem:[#allocation5 + $0xb8] sm:$0xff] }
  0x70   : > { %4548 = vmatpush3.msra.mxu1 %v393_v6  ;;  %4514 = vmatprep.subr.mxu0 %v409_v7  ;;  %374 = vst [vmem:[#allocation2 + $0x1] sm:$0xff] %v5695_v15  ;;  %375 = vst [vmem:[#allocation2 + $0x9] sm:$0xff] %v5698_v16  ;;  %v387_v20 = vld [vmem:[#allocation5 + $0x38] sm:$0xff]  ;;  %v403_v21 = vld [vmem:[#allocation5 + $0xb0] sm:$0xff] }
  0x71   : > { %4549 = vmatprep.subr.mxu1 %v392_v8  ;;  %4515 = vmatpush3.msra.mxu0 %v409_v7  ;;  %v386_v22 = vld [vmem:[#allocation5 + $0x30] sm:$0xff]  ;;  %v402_v23 = vld [vmem:[#allocation5 + $0xa8] sm:$0xff]  ;;  %v401_v25 = vld [vmem:[#allocation5 + $0xa0] sm:$0xff] }
  0x72   : > { %4550 = vmatpush3.msra.mxu1 %v392_v8  ;;  %4516 = vmatprep.subr.mxu0 %v408_v9  ;;  %v385_v24 = vld [vmem:[#allocation5 + $0x28] sm:$0xff]  ;;  %v384_v26 = vld [vmem:[#allocation5 + $0x20] sm:$0xff]  ;;  %v400_v27 = vld [vmem:[#allocation5 + $0x98] sm:$0xff] }
  0x73   : > { %4551 = vmatprep.subr.mxu1 %v391_v10  ;;  %4517 = vmatpush3.msra.mxu0 %v408_v9  ;;  %v383_v28 = vld [vmem:[#allocation5 + $0x18] sm:$0xff]  ;;  %v399_v29 = vld [vmem:[#allocation5 + $0x90] sm:$0xff]  ;;  %v398_v31 = vld [vmem:[#allocation5 + $0x88] sm:$0xff] }
  0x74   : > { %4552 = vmatpush3.msra.mxu1 %v391_v10  ;;  %4518 = vmatprep.subr.mxu0 %v407_v11  ;;  %v382_v30 = vld [vmem:[#allocation5 + $0x10] sm:$0xff]  ;;  %v381_v32 = vld [vmem:[#allocation5 + $0x8] sm:$0xff]  ;;  %v397_v33 = vld [vmem:[#allocation5 + $0x80] sm:$0xff] }
  0x75   : > { %4553 = vmatprep.subr.mxu1 %v390_v12  ;;  %4519 = vmatpush3.msra.mxu0 %v407_v11  ;;  %v380_v34 = vld [vmem:[#allocation5] sm:$0xff]  ;;  %v429_v38 = vld [vmem:[#allocation5 + $0x178] sm:$0xff]  ;;  %v428_v39 = vld [vmem:[#allocation5 + $0x170] sm:$0xff] }
  0x76   : > { %4554 = vmatpush3.msra.mxu1 %v390_v12  ;;  %4520 = vmatprep.subr.mxu0 %v406_v13  ;;  %v427_v40 = vld [vmem:[#allocation5 + $0x168] sm:$0xff]  ;;  %v426_v41 = vld [vmem:[#allocation5 + $0x160] sm:$0xff]  ;;  %v425_v42 = vld [vmem:[#allocation5 + $0x158] sm:$0xff] }
  0x77   : > { %4555 = vmatprep.subr.mxu1 %v389_v14  ;;  %4521 = vmatpush3.msra.mxu0 %v406_v13  ;;  %v376_v35 = vld [vmem:[#allocation2] sm:$0xff]  ;;  %v377_v36 = vld [vmem:[#allocation2 + $0x8] sm:$0xff]  ;;  %v422_v45 = vld [vmem:[#allocation5 + $0x140] sm:$0xff] }
  0x78   : > { %4556 = vmatpush3.msra.mxu1 %v389_v14  ;;  %4522 = vmatprep.subr.mxu0 %v405_v17  ;;  %v378_v37 = vld [vmem:[#allocation2 + $0x2] sm:$0xff]  ;;  %v421_v46 = vld [vmem:[#allocation5 + $0x138] sm:$0xff]  ;;  %v418_v49 = vld [vmem:[#allocation5 + $0x120] sm:$0xff] }
  0x79   : > { %4557 = vmatprep.subr.mxu1 %v388_v18  ;;  %4523 = vmatpush3.msra.mxu0 %v405_v17  ;;  %v424_v43 = vld [vmem:[#allocation5 + $0x150] sm:$0xff]  ;;  %v423_v44 = vld [vmem:[#allocation5 + $0x148] sm:$0xff]  ;;  %v417_v50 = vld [vmem:[#allocation5 + $0x118] sm:$0xff] }
  0x7a   : > { %4558 = vmatpush3.msra.mxu1 %v388_v18  ;;  %4524 = vmatprep.subr.mxu0 %v404_v19  ;;  %v420_v47 = vld [vmem:[#allocation5 + $0x130] sm:$0xff]  ;;  %v419_v48 = vld [vmem:[#allocation5 + $0x128] sm:$0xff]  ;;  %v414_v53 = vld [vmem:[#allocation5 + $0x100] sm:$0xff] }
  0x7b   : > { %4559 = vmatprep.subr.mxu1 %v387_v20  ;;  %4525 = vmatpush3.msra.mxu0 %v404_v19  ;;  %v416_v51 = vld [vmem:[#allocation5 + $0x110] sm:$0xff]  ;;  %v415_v52 = vld [vmem:[#allocation5 + $0x108] sm:$0xff]  ;;  %v703_v55 = vld [vmem:[#allocation5 + $0x278] sm:$0xff] }
  0x7c   : > { %4560 = vmatpush3.msra.mxu1 %v387_v20  ;;  %4526 = vmatprep.subr.mxu0 %v403_v21  ;;  %v379_v54 = vld [vmem:[#allocation2 + $0xa] sm:$0xff]  ;;  %v701_v58 = vld [vmem:[#allocation5 + $0x268] sm:$0xff]  ;;  %v700_v61 = vld [vmem:[#allocation5 + $0x260] sm:$0xff] }
  0x7d   : > { %4561 = vmatprep.subr.mxu1 %v386_v22  ;;  %4527 = vmatpush3.msra.mxu0 %v403_v21  ;;  %v702_v56 = vld [vmem:[#allocation5 + $0x270] sm:$0xff]  ;;  %v686_v57 = vld [vmem:[#allocation5 + $0x1f8] sm:$0xff]  ;;  %v684_v60 = vld [vmem:[#allocation5 + $0x1e8] sm:$0xff] }
  0x7e   : > { %4562 = vmatpush3.msra.mxu1 %v386_v22  ;;  %4528 = vmatprep.subr.mxu0 %v402_v23  ;;  %v685_v59 = vld [vmem:[#allocation5 + $0x1f0] sm:$0xff]  ;;  %v683_v62 = vld [vmem:[#allocation5 + $0x1e0] sm:$0xff]  ;;  %v699_v63 = vld [vmem:[#allocation5 + $0x258] sm:$0xff] }
  0x7f   : > { %4563 = vmatprep.subr.mxu1 %v385_v24  ;;  %4529 = vmatpush3.msra.mxu0 %v402_v23  ;;  %v682_v1 = vld [vmem:[#allocation5 + $0x1d8] sm:$0xff]  ;;  %v698_v2 = vld [vmem:[#allocation5 + $0x250] sm:$0xff]  ;;  %v697_v4 = vld [vmem:[#allocation5 + $0x248] sm:$0xff] }
  0x80   : > { %4564 = vmatpush3.msra.mxu1 %v385_v24  ;;  %4530 = vmatprep.subr.mxu0 %v401_v25  ;;  %v681_v3 = vld [vmem:[#allocation5 + $0x1d0] sm:$0xff]  ;;  %v680_v5 = vld [vmem:[#allocation5 + $0x1c8] sm:$0xff]  ;;  %v696_v6 = vld [vmem:[#allocation5 + $0x240] sm:$0xff] }
  0x81   : > { %4565 = vmatprep.subr.mxu1 %v384_v26  ;;  %4531 = vmatpush3.msra.mxu0 %v401_v25  ;;  %v679_v7 = vld [vmem:[#allocation5 + $0x1c0] sm:$0xff]  ;;  %v695_v8 = vld [vmem:[#allocation5 + $0x238] sm:$0xff]  ;;  %v694_v9 = vld [vmem:[#allocation5 + $0x230] sm:$0xff] }
  0x82   : > { %4566 = vmatpush3.msra.mxu1 %v384_v26  ;;  %4532 = vmatprep.subr.mxu0 %v400_v27  ;;  %v693_v10 = vld [vmem:[#allocation5 + $0x228] sm:$0xff]  ;;  %v692_v11 = vld [vmem:[#allocation5 + $0x220] sm:$0xff]  ;;  %v691_v12 = vld [vmem:[#allocation5 + $0x218] sm:$0xff] }
  0x83   : > { %4567 = vmatprep.subr.mxu1 %v383_v28  ;;  %4533 = vmatpush3.msra.mxu0 %v400_v27  ;;  %v678_v13 = vld [vmem:[#allocation5 + $0x1b8] sm:$0xff]  ;;  %v690_v14 = vld [vmem:[#allocation5 + $0x210] sm:$0xff]  ;;  %v676_v17 = vld [vmem:[#allocation5 + $0x1a8] sm:$0xff] }
  0x84   : > { %4568 = vmatpush3.msra.mxu1 %v383_v28  ;;  %4534 = vmatprep.subr.mxu0 %v399_v29  ;;  %v688_v18 = vld [vmem:[#allocation5 + $0x200] sm:$0xff]  ;;  %v720_v20 = vld [vmem:[#allocation5 + $0x2f8] sm:$0xff]  ;;  %v673_v22 = vld [vmem:[#allocation5 + $0x190] sm:$0xff] }
  0x85   : > { %4569 = vmatprep.subr.mxu1 %v382_v30  ;;  %4535 = vmatpush3.msra.mxu0 %v399_v29  ;;  %v675_v19 = vld [vmem:[#allocation5 + $0x1a0] sm:$0xff]  ;;  %v674_v21 = vld [vmem:[#allocation5 + $0x198] sm:$0xff]  ;;  %v672_v23 = vld [vmem:[#allocation5 + $0x188] sm:$0xff] }
  0x86   : > { %4570 = vmatpush3.msra.mxu1 %v382_v30  ;;  %4536 = vmatprep.subr.mxu0 %v398_v31  ;;  %v671_v24 = vld [vmem:[#allocation5 + $0x180] sm:$0xff] }
  0x87   : > { %4571 = vmatprep.subr.mxu1 %v381_v32  ;;  %4537 = vmatpush3.msra.mxu0 %v398_v31  ;;  %v3888_v30 = vld [vmem:[#allocation7] ss:$0 sm:$0xff] }
  0x88   : > { %4572 = vmatpush3.msra.mxu1 %v381_v32  ;;  %4538 = vmatprep.subr.mxu0 %v397_v33 }
  0x89   : > { %4573 = vmatprep.subr.mxu1 %v380_v34  ;;  %4539 = vmatpush3.msra.mxu0 %v397_v33 }
  0x8a   : > { %4540 = vmatprep.mubr.f32.mxu0 %v5695_v15  ;;  %4574 = vmatpush3.msra.mxu1 %v380_v34  ;;  %v677_v15 = vld [vmem:[#allocation5 + $0x1b0] sm:$0xff] }
  0x8b   : > { %4575 = vmatprep.mubr.f32.mxu1 %v376_v35  ;;  %4541 = vmatmul.mubr.f32.vlgmr.msra.gmra.mxu0 %v5698_v16  ;;  %v689_v16 = vld [vmem:[#allocation5 + $0x208] sm:$0xff] }
  0x8c   : > { %4576 = vmatmul.mubr.f32.vlgmr.msra.gmra.mxu1 %v377_v36  ;;  %4578 = vmatprep.subr.mxu0 %v429_v38 }
  0x8d   : > { %4610 = vmatprep.mubr.f32.mxu0 %v378_v37  ;;  %4579 = vmatpush3.msra.mxu0 %v429_v38  ;;  %v719_v38 = vld [vmem:[#allocation5 + $0x2f0] sm:$0xff] }
  0x8e   : > { %4580 = vmatprep.subr.mxu0 %v428_v39  ;;  %4613 = vmatprep.subr.mxu1 %v703_v55 }
  0x8f   : > { %4581 = vmatpush3.msra.mxu0 %v428_v39  ;;  %4614 = vmatpush3.msra.mxu1 %v703_v55  ;;  %v718_v39 = vld [vmem:[#allocation5 + $0x2e8] sm:$0xff]  ;;  %v705_v55 = vld [vmem:[#allocation5 + $0x280] sm:$0xff] }
  0x90   : > { %4582 = vmatprep.subr.mxu0 %v427_v40  ;;  %4615 = vmatprep.subr.mxu1 %v702_v56 }
  0x91   : > { %4583 = vmatpush3.msra.mxu0 %v427_v40  ;;  %4616 = vmatpush3.msra.mxu1 %v702_v56  ;;  %v717_v40 = vld [vmem:[#allocation5 + $0x2e0] sm:$0xff] }
  0x92   : > { %4584 = vmatprep.subr.mxu0 %v426_v41  ;;  %4617 = vmatprep.subr.mxu1 %v701_v58 }
  0x93   : > { %4585 = vmatpush3.msra.mxu0 %v426_v41  ;;  %4618 = vmatpush3.msra.mxu1 %v701_v58  ;;  %v716_v41 = vld [vmem:[#allocation5 + $0x2d8] sm:$0xff]  ;;  %v993_v58 = vld [vmem:[#allocation5 + $0x3f0] sm:$0xff] }
  0x94   : > { %4586 = vmatprep.subr.mxu0 %v425_v42  ;;  %4619 = vmatprep.subr.mxu1 %v700_v61 }
  0x95   : > { %4587 = vmatpush3.msra.mxu0 %v425_v42  ;;  %4620 = vmatpush3.msra.mxu1 %v700_v61  ;;  %v990_v61 = vld [vmem:[#allocation5 + $0x3d8] sm:$0xff] }
  0x96   : > { %4588 = vmatprep.subr.mxu0 %v424_v43  ;;  %4621 = vmatprep.subr.mxu1 %v699_v63 }
  0x97   : > { %4589 = vmatpush3.msra.mxu0 %v424_v43  ;;  %4622 = vmatpush3.msra.mxu1 %v699_v63  ;;  %v976_v63 = vld [vmem:[#allocation5 + $0x370] sm:$0xff] }
  0x98   : > { %4590 = vmatprep.subr.mxu0 %v423_v44  ;;  %4623 = vmatprep.subr.mxu1 %v698_v2 }
  0x99   : > { %4591 = vmatpush3.msra.mxu0 %v423_v44  ;;  %4624 = vmatpush3.msra.mxu1 %v698_v2  ;;  %v975_v2 = vld [vmem:[#allocation5 + $0x368] sm:$0xff] }
  0x9a   : > { %4592 = vmatprep.subr.mxu0 %v422_v45  ;;  %4625 = vmatprep.subr.mxu1 %v697_v4 }
  0x9b   : > { %4593 = vmatpush3.msra.mxu0 %v422_v45  ;;  %4626 = vmatpush3.msra.mxu1 %v697_v4  ;;  %v715_v45 = vld [vmem:[#allocation5 + $0x2d0] sm:$0xff]  ;;  %v974_v4 = vld [vmem:[#allocation5 + $0x360] sm:$0xff] }
  0x9c   : > { %4594 = vmatprep.subr.mxu0 %v421_v46  ;;  %4627 = vmatprep.subr.mxu1 %v696_v6 }
  0x9d   : > { %4595 = vmatpush3.msra.mxu0 %v421_v46  ;;  %4628 = vmatpush3.msra.mxu1 %v696_v6  ;;  %v714_v46 = vld [vmem:[#allocation5 + $0x2c8] sm:$0xff]  ;;  %v973_v6 = vld [vmem:[#allocation5 + $0x358] sm:$0xff] }
  0x9e   : > { %4596 = vmatprep.subr.mxu0 %v420_v47  ;;  %4629 = vmatprep.subr.mxu1 %v695_v8 }
  0x9f   : > { %4597 = vmatpush3.msra.mxu0 %v420_v47  ;;  %4630 = vmatpush3.msra.mxu1 %v695_v8  ;;  %v713_v47 = vld [vmem:[#allocation5 + $0x2c0] sm:$0xff]  ;;  %v972_v8 = vld [vmem:[#allocation5 + $0x350] sm:$0xff] }
  0xa0   : > { %4598 = vmatprep.subr.mxu0 %v419_v48  ;;  %4631 = vmatprep.subr.mxu1 %v694_v9 }
  0xa1   : > { %4599 = vmatpush3.msra.mxu0 %v419_v48  ;;  %4632 = vmatpush3.msra.mxu1 %v694_v9  ;;  %v712_v48 = vld [vmem:[#allocation5 + $0x2b8] sm:$0xff]  ;;  %v985_v9 = vld [vmem:[#allocation5 + $0x3b0] sm:$0xff] }
  0xa2   : > { %4600 = vmatprep.subr.mxu0 %v418_v49  ;;  %4633 = vmatprep.subr.mxu1 %v693_v10 }
  0xa3   : > { %4601 = vmatpush3.msra.mxu0 %v418_v49  ;;  %4634 = vmatpush3.msra.mxu1 %v693_v10  ;;  %v711_v49 = vld [vmem:[#allocation5 + $0x2b0] sm:$0xff]  ;;  %v971_v10 = vld [vmem:[#allocation5 + $0x348] sm:$0xff] }
  0xa4   : > { %4602 = vmatprep.subr.mxu0 %v417_v50  ;;  %4635 = vmatprep.subr.mxu1 %v692_v11 }
  0xa5   : > { %4603 = vmatpush3.msra.mxu0 %v417_v50  ;;  %4636 = vmatpush3.msra.mxu1 %v692_v11  ;;  %v710_v50 = vld [vmem:[#allocation5 + $0x2a8] sm:$0xff] }
  0xa6   : > { %4604 = vmatprep.subr.mxu0 %v416_v51  ;;  %4637 = vmatprep.subr.mxu1 %v691_v12  ;;  %v984_v11 = vld [vmem:[#allocation5 + $0x3a8] sm:$0xff] }
  0xa7   : > { %4605 = vmatpush3.msra.mxu0 %v416_v51  ;;  %4638 = vmatpush3.msra.mxu1 %v691_v12  ;;  %v709_v51 = vld [vmem:[#allocation5 + $0x2a0] sm:$0xff] }
  0xa8   : > { %4606 = vmatprep.subr.mxu0 %v415_v52  ;;  %4639 = vmatprep.subr.mxu1 %v690_v14  ;;  %v970_v12 = vld [vmem:[#allocation5 + $0x340] sm:$0xff] }
  0xa9   : > { %4607 = vmatpush3.msra.mxu0 %v415_v52  ;;  %4640 = vmatpush3.msra.mxu1 %v690_v14  ;;  %v708_v52 = vld [vmem:[#allocation5 + $0x298] sm:$0xff] }
  0xaa   : > { %4608 = vmatprep.subr.mxu0 %v414_v53  ;;  %4641 = vmatprep.subr.mxu1 %v689_v16  ;;  %v982_v14 = vld [vmem:[#allocation5 + $0x398] sm:$0xff] }
  0xab   : > { %4609 = vmatpush3.msra.mxu0 %v414_v53  ;;  %4642 = vmatpush3.msra.mxu1 %v689_v16  ;;  %v707_v53 = vld [vmem:[#allocation5 + $0x290] sm:$0xff] }
  0xac   : > { %4611 = vmatmul.mubr.f32.vlgmr.msra.gmra.mxu0 %v379_v54  ;;  %4648 = vmatprep.subr.mxu0 %v686_v57  ;;  %v706_v54 = vld [vmem:[#allocation5 + $0x288] sm:$0xff]  ;;  %v981_v16 = vld [vmem:[#allocation5 + $0x390] sm:$0xff] }
  0xad   : > { %4649 = vmatpush3.msra.mxu0 %v686_v57  ;;  %4643 = vmatprep.subr.mxu1 %v688_v18  ;;  %v994_v57 = vld [vmem:[#allocation5 + $0x3f8] sm:$0xff] }
  0xae   : > { %4650 = vmatprep.subr.mxu0 %v685_v59  ;;  %4644 = vmatpush3.msra.mxu1 %v688_v18  ;;  %v980_v18 = vld [vmem:[#allocation5 + $0x388] sm:$0xff] }
  0xaf   : > { %4651 = vmatpush3.msra.mxu0 %v685_v59  ;;  %4683 = vmatprep.subr.mxu1 %v720_v20  ;;  %v992_v59 = vld [vmem:[#allocation5 + $0x3e8] sm:$0xff] }
  0xb0   : > { %4652 = vmatprep.subr.mxu0 %v684_v60 }
  0xb1   : > { %4653 = vmatpush3.msra.mxu0 %v684_v60  ;;  %v991_v60 = vld [vmem:[#allocation5 + $0x3e0] sm:$0xff] }
  0xb2   : > { %4654 = vmatprep.subr.mxu0 %v683_v62 }
  0xb3   : > { %4655 = vmatpush3.msra.mxu0 %v683_v62  ;;  %v977_v62 = vld [vmem:[#allocation5 + $0x378] sm:$0xff] }
  0xb4   : > { %4656 = vmatprep.subr.mxu0 %v682_v1 }
  0xb5   : > { %4657 = vmatpush3.msra.mxu0 %v682_v1  ;;  %v989_v1 = vld [vmem:[#allocation5 + $0x3d0] sm:$0xff] }
  0xb6   : > { %4658 = vmatprep.subr.mxu0 %v681_v3 }
  0xb7   : > { %4659 = vmatpush3.msra.mxu0 %v681_v3  ;;  %v988_v3 = vld [vmem:[#allocation5 + $0x3c8] sm:$0xff] }
  0xb8   : > { %4660 = vmatprep.subr.mxu0 %v680_v5 }
  0xb9   : > { %4661 = vmatpush3.msra.mxu0 %v680_v5  ;;  %v987_v5 = vld [vmem:[#allocation5 + $0x3c0] sm:$0xff] }
  0xba   : > { %4662 = vmatprep.subr.mxu0 %v679_v7 }
  0xbb   : > { %4663 = vmatpush3.msra.mxu0 %v679_v7  ;;  %v986_v7 = vld [vmem:[#allocation5 + $0x3b8] sm:$0xff] }
  0xbc   : > { %4664 = vmatprep.subr.mxu0 %v678_v13 }
  0xbd   : > { %4665 = vmatpush3.msra.mxu0 %v678_v13  ;;  %v983_v13 = vld [vmem:[#allocation5 + $0x3a0] sm:$0xff] }
  0xbe   : > { %4666 = vmatprep.subr.mxu0 %v677_v15 }
  0xbf   : > { %4667 = vmatpush3.msra.mxu0 %v677_v15  ;;  %v969_v15 = vld [vmem:[#allocation5 + $0x338] sm:$0xff] }
  0xc0   : > { %4668 = vmatprep.subr.mxu0 %v676_v17 }
  0xc1   : > { %4669 = vmatpush3.msra.mxu0 %v676_v17  ;;  %v968_v17 = vld [vmem:[#allocation5 + $0x330] sm:$0xff] }
  0xc2   : > { %4670 = vmatprep.subr.mxu0 %v675_v19 }
  0xc3   : > { %4671 = vmatpush3.msra.mxu0 %v675_v19  ;;  %v967_v19 = vld [vmem:[#allocation5 + $0x328] sm:$0xff] }
  0xc4   : > { %4672 = vmatprep.subr.mxu0 %v674_v21 }
  0xc5   : > { %4673 = vmatpush3.msra.mxu0 %v674_v21  ;;  %v966_v21 = vld [vmem:[#allocation5 + $0x320] sm:$0xff] }
  0xc6   : > { %4674 = vmatprep.subr.mxu0 %v673_v22 }
  0xc7   : > { %4675 = vmatpush3.msra.mxu0 %v673_v22  ;;  %v1011_v22 = vld [vmem:[#allocation5 + $0x478] sm:$0xff] }
  0xc8   : > { %4676 = vmatprep.subr.mxu0 %v672_v23 }
  0xc9   : > { %4677 = vmatpush3.msra.mxu0 %v672_v23  ;;  %v965_v23 = vld [vmem:[#allocation5 + $0x318] sm:$0xff] }
  0xca   : > { %4678 = vmatprep.subr.mxu0 %v671_v24 }
  0xcb   : > { %4679 = vmatpush3.msra.mxu0 %v671_v24  ;;  %v964_v24 = vld [vmem:[#allocation5 + $0x310] sm:$0xff] }
  0xcc   : > { %4718 = vmatprep.subr.mxu0 %v994_v57 }
 0x14b   : > { %v4542_v25 = vpop.f32.mrf.mxu0 }
 0x14c   : > { %v4577_v26 = vpop.f32.mrf.mxu1 }
 0x14d   : > { %v497_v27 = vpop.f32.mrf.mxu0  ;;  %v578_v29 = vadd.f32 %v4577_v26, %v4542_v25  ;;  %v963_v25 = vld [vmem:[#allocation5 + $0x308] sm:$0xff]  ;;  %v962_v26 = vld [vmem:[#allocation5 + $0x300] sm:$0xff] }
 0x14e   : > { %v572_v28 = vpop.f32.mrf.mxu1 }
 0x14f   : > { %v573_v32 = vadd.f32 %v572_v28, %v497_v27 }
 0x16c   : > { %v4612_v31 = vpop.f32.mrf.mxu0 }
 0x16d   : > { %v657_v33 = vadd.f32 %v4612_v31, %v578_v29 }
 0x16e   : > { %v647_v34 = vpop.f32.mrf.mxu0 }
 0x16f   : > { %v663_v35 = vadd.f32 %v3888_v30, %v657_v33  ;;  %v656_v36 = vadd.f32 %v647_v34, %v573_v32  ;;  %v3889_v32 = vld [vmem:[#allocation7 + $0x1] ss:$0 sm:$0xff] }
 0x171   : > { %665 = vst [vmem:[#allocation2 + $0x9] sm:$0xff] %v663_v35  ;;  %v662_v37 = vadd.f32 %v3888_v30, %v656_v36 }
 0x173   : > { %664 = vst [vmem:[#allocation2 + $0x1] sm:$0xff] %v662_v37  ;;  %4645 = vmatprep.mubr.f32.mxu1 %v662_v37 }
 0x174   : > { %4646 = vmatmul.mubr.f32.vlgmr.msra.gmra.mxu1 %v663_v35 }
 0x175   : > { %4684 = vmatpush3.msra.mxu1 %v720_v20  ;;  %v979_v20 = vld [vmem:[#allocation5 + $0x380] sm:$0xff] }
 0x176   : > { %4685 = vmatprep.subr.mxu1 %v719_v38 }
 0x177   : > { %4686 = vmatpush3.msra.mxu1 %v719_v38 }
 0x178   : > { %4687 = vmatprep.subr.mxu1 %v718_v39  ;;  %v669_v56 = vld [vmem:[#allocation2 + $0xa] sm:$0xff] }
 0x179   : > { %4688 = vmatpush3.msra.mxu1 %v718_v39 }
 0x17a   : > { %4689 = vmatprep.subr.mxu1 %v717_v40  ;;  %v666_v42 = vld [vmem:[#allocation2] sm:$0xff]  ;;  %v667_v44 = vld [vmem:[#allocation2 + $0x8] sm:$0xff] }
 0x17b   : > { %v668_v43 = vld [vmem:[#allocation2 + $0x2] sm:$0xff]  ;;  %4690 = vmatpush3.msra.mxu1 %v717_v40  ;;  %4680 = vmatprep.mubr.f32.mxu0 %v666_v42  ;;  %v1008_v42 = vld [vmem:[#allocation5 + $0x460] sm:$0xff] }
 0x17c   : > { %4691 = vmatprep.subr.mxu1 %v716_v41  ;;  %4715 = vmatprep.mubr.f32.mxu1 %v668_v43  ;;  %v1010_v40 = vld [vmem:[#allocation5 + $0x470] sm:$0xff]  ;;  %v1007_v43 = vld [vmem:[#allocation5 + $0x458] sm:$0xff] }
 0x17d   : > { %4681 = vmatmul.mubr.f32.vlgmr.msra.gmra.mxu0 %v667_v44  ;;  %4692 = vmatpush3.msra.mxu1 %v716_v41  ;;  %v1009_v41 = vld [vmem:[#allocation5 + $0x468] sm:$0xff] }
 0x17e   : > { %4693 = vmatprep.subr.mxu1 %v715_v45  ;;  %4719 = vmatpush3.msra.mxu0 %v994_v57  ;;  %v996_v57 = vld [vmem:[#allocation5 + $0x400] sm:$0xff] }
 0x17f   : > { %4694 = vmatpush3.msra.mxu1 %v715_v45  ;;  %4720 = vmatprep.subr.mxu0 %v993_v58 }
 0x180   : > { %4695 = vmatprep.subr.mxu1 %v714_v46  ;;  %4721 = vmatpush3.msra.mxu0 %v993_v58 }
 0x181   : > { %4696 = vmatpush3.msra.mxu1 %v714_v46  ;;  %4722 = vmatprep.subr.mxu0 %v992_v59 }
 0x182   : > { %4697 = vmatprep.subr.mxu1 %v713_v47  ;;  %4723 = vmatpush3.msra.mxu0 %v992_v59  ;;  %v1287_v59 = vld [vmem:[#allocation5 + $0x578] sm:$0xff] }
 0x183   : > { %4698 = vmatpush3.msra.mxu1 %v713_v47  ;;  %4724 = vmatprep.subr.mxu0 %v991_v60  ;;  %v1006_v47 = vld [vmem:[#allocation5 + $0x450] sm:$0xff] }
 0x184   : > { %4699 = vmatprep.subr.mxu1 %v712_v48  ;;  %4725 = vmatpush3.msra.mxu0 %v991_v60  ;;  %v1286_v60 = vld [vmem:[#allocation5 + $0x570] sm:$0xff] }
 0x185   : > { %4700 = vmatpush3.msra.mxu1 %v712_v48  ;;  %4726 = vmatprep.subr.mxu0 %v990_v61  ;;  %v1005_v48 = vld [vmem:[#allocation5 + $0x448] sm:$0xff] }
 0x186   : > { %4701 = vmatprep.subr.mxu1 %v711_v49  ;;  %4727 = vmatpush3.msra.mxu0 %v990_v61  ;;  %v1285_v61 = vld [vmem:[#allocation5 + $0x568] sm:$0xff] }
 0x187   : > { %4702 = vmatpush3.msra.mxu1 %v711_v49  ;;  %4728 = vmatprep.subr.mxu0 %v989_v1  ;;  %v1004_v49 = vld [vmem:[#allocation5 + $0x440] sm:$0xff] }
 0x188   : > { %4703 = vmatprep.subr.mxu1 %v710_v50  ;;  %4729 = vmatpush3.msra.mxu0 %v989_v1  ;;  %v1269_v1 = vld [vmem:[#allocation5 + $0x4f0] sm:$0xff] }
 0x189   : > { %4704 = vmatpush3.msra.mxu1 %v710_v50  ;;  %4730 = vmatprep.subr.mxu0 %v988_v3  ;;  %v1003_v50 = vld [vmem:[#allocation5 + $0x438] sm:$0xff] }
 0x18a   : > { %4705 = vmatprep.subr.mxu1 %v709_v51  ;;  %4731 = vmatpush3.msra.mxu0 %v988_v3  ;;  %v1268_v3 = vld [vmem:[#allocation5 + $0x4e8] sm:$0xff] }
 0x18b   : > { %4706 = vmatpush3.msra.mxu1 %v709_v51  ;;  %4732 = vmatprep.subr.mxu0 %v987_v5  ;;  %v1002_v51 = vld [vmem:[#allocation5 + $0x430] sm:$0xff] }
 0x18c   : > { %4707 = vmatprep.subr.mxu1 %v708_v52  ;;  %4733 = vmatpush3.msra.mxu0 %v987_v5  ;;  %v1267_v5 = vld [vmem:[#allocation5 + $0x4e0] sm:$0xff] }
 0x18d   : > { %4708 = vmatpush3.msra.mxu1 %v708_v52  ;;  %4734 = vmatprep.subr.mxu0 %v986_v7  ;;  %v1001_v52 = vld [vmem:[#allocation5 + $0x428] sm:$0xff] }
 0x18e   : > { %4709 = vmatprep.subr.mxu1 %v707_v53  ;;  %4735 = vmatpush3.msra.mxu0 %v986_v7  ;;  %v1266_v7 = vld [vmem:[#allocation5 + $0x4d8] sm:$0xff] }
 0x18f   : > { %4710 = vmatpush3.msra.mxu1 %v707_v53  ;;  %4736 = vmatprep.subr.mxu0 %v985_v9  ;;  %v1000_v53 = vld [vmem:[#allocation5 + $0x420] sm:$0xff] }
 0x190   : > { %4711 = vmatprep.subr.mxu1 %v706_v54  ;;  %4737 = vmatpush3.msra.mxu0 %v985_v9  ;;  %v1265_v9 = vld [vmem:[#allocation5 + $0x4d0] sm:$0xff] }
 0x191   : > { %4712 = vmatpush3.msra.mxu1 %v706_v54  ;;  %4738 = vmatprep.subr.mxu0 %v984_v11  ;;  %v999_v54 = vld [vmem:[#allocation5 + $0x418] sm:$0xff] }
 0x192   : > { %4713 = vmatprep.subr.mxu1 %v705_v55  ;;  %4739 = vmatpush3.msra.mxu0 %v984_v11  ;;  %v1264_v11 = vld [vmem:[#allocation5 + $0x4c8] sm:$0xff] }
 0x193   : > { %4714 = vmatpush3.msra.mxu1 %v705_v55  ;;  %4740 = vmatprep.subr.mxu0 %v983_v13  ;;  %v998_v55 = vld [vmem:[#allocation5 + $0x410] sm:$0xff] }
 0x194   : > { %4716 = vmatmul.mubr.f32.vlgmr.msra.gmra.mxu1 %v669_v56  ;;  %4753 = vmatprep.subr.mxu1 %v977_v62  ;;  %v997_v56 = vld [vmem:[#allocation5 + $0x408] sm:$0xff] }
 0x195   : > { %4754 = vmatpush3.msra.mxu1 %v977_v62  ;;  %4741 = vmatpush3.msra.mxu0 %v983_v13  ;;  %v1284_v62 = vld [vmem:[#allocation5 + $0x560] sm:$0xff]  ;;  %v1277_v13 = vld [vmem:[#allocation5 + $0x528] sm:$0xff] }
 0x196   : > { %4755 = vmatprep.subr.mxu1 %v976_v63  ;;  %4742 = vmatprep.subr.mxu0 %v982_v14 }
 0x197   : > { %4756 = vmatpush3.msra.mxu1 %v976_v63  ;;  %4743 = vmatpush3.msra.mxu0 %v982_v14  ;;  %v1270_v63 = vld [vmem:[#allocation5 + $0x4f8] sm:$0xff]  ;;  %v1276_v14 = vld [vmem:[#allocation5 + $0x520] sm:$0xff] }
 0x198   : > { %4757 = vmatprep.subr.mxu1 %v975_v2  ;;  %4744 = vmatprep.subr.mxu0 %v981_v16 }
 0x199   : > { %4758 = vmatpush3.msra.mxu1 %v975_v2  ;;  %4745 = vmatpush3.msra.mxu0 %v981_v16  ;;  %v1283_v2 = vld [vmem:[#allocation5 + $0x558] sm:$0xff] }
 0x19a   : > { %4759 = vmatprep.subr.mxu1 %v974_v4  ;;  %4746 = vmatprep.subr.mxu0 %v980_v18  ;;  %v1275_v16 = vld [vmem:[#allocation5 + $0x518] sm:$0xff] }
 0x19b   : > { %4760 = vmatpush3.msra.mxu1 %v974_v4  ;;  %4747 = vmatpush3.msra.mxu0 %v980_v18  ;;  %v1282_v4 = vld [vmem:[#allocation5 + $0x550] sm:$0xff] }
 0x19c   : > { %4761 = vmatprep.subr.mxu1 %v973_v6  ;;  %4748 = vmatprep.subr.mxu0 %v979_v20  ;;  %v1274_v18 = vld [vmem:[#allocation5 + $0x510] sm:$0xff] }
 0x19d   : > { %4762 = vmatpush3.msra.mxu1 %v973_v6  ;;  %4749 = vmatpush3.msra.mxu0 %v979_v20  ;;  %v1281_v6 = vld [vmem:[#allocation5 + $0x548] sm:$0xff] }
 0x19e   : > { %4763 = vmatprep.subr.mxu1 %v972_v8  ;;  %4788 = vmatprep.subr.mxu0 %v1011_v22  ;;  %v1273_v20 = vld [vmem:[#allocation5 + $0x508] sm:$0xff] }
 0x19f   : > { %4764 = vmatpush3.msra.mxu1 %v972_v8  ;;  %v1280_v8 = vld [vmem:[#allocation5 + $0x540] sm:$0xff] }
 0x1a0   : > { %4765 = vmatprep.subr.mxu1 %v971_v10 }
 0x1a1   : > { %4766 = vmatpush3.msra.mxu1 %v971_v10  ;;  %v1279_v10 = vld [vmem:[#allocation5 + $0x538] sm:$0xff] }
 0x1a2   : > { %4767 = vmatprep.subr.mxu1 %v970_v12 }
 0x1a3   : > { %4768 = vmatpush3.msra.mxu1 %v970_v12  ;;  %v1278_v12 = vld [vmem:[#allocation5 + $0x530] sm:$0xff] }
 0x1a4   : > { %4769 = vmatprep.subr.mxu1 %v969_v15 }
 0x1a5   : > { %4770 = vmatpush3.msra.mxu1 %v969_v15  ;;  %v1263_v15 = vld [vmem:[#allocation5 + $0x4c0] sm:$0xff] }
 0x1a6   : > { %4771 = vmatprep.subr.mxu1 %v968_v17 }
 0x1a7   : > { %4772 = vmatpush3.msra.mxu1 %v968_v17  ;;  %v1262_v17 = vld [vmem:[#allocation5 + $0x4b8] sm:$0xff] }
 0x1a8   : > { %4773 = vmatprep.subr.mxu1 %v967_v19 }
 0x1a9   : > { %4774 = vmatpush3.msra.mxu1 %v967_v19  ;;  %v1261_v19 = vld [vmem:[#allocation5 + $0x4b0] sm:$0xff] }
 0x1aa   : > { %4775 = vmatprep.subr.mxu1 %v966_v21 }
 0x1ab   : > { %4776 = vmatpush3.msra.mxu1 %v966_v21  ;;  %v1260_v21 = vld [vmem:[#allocation5 + $0x4a8] sm:$0xff] }
 0x1ac   : > { %4777 = vmatprep.subr.mxu1 %v965_v23 }
 0x1ad   : > { %4778 = vmatpush3.msra.mxu1 %v965_v23  ;;  %v1259_v23 = vld [vmem:[#allocation5 + $0x4a0] sm:$0xff] }
 0x1ae   : > { %4779 = vmatprep.subr.mxu1 %v964_v24 }
 0x1af   : > { %4780 = vmatpush3.msra.mxu1 %v964_v24  ;;  %v1304_v24 = vld [vmem:[#allocation5 + $0x5f8] sm:$0xff] }
 0x1b0   : > { %4781 = vmatprep.subr.mxu1 %v963_v25 }
 0x1b1   : > { %4782 = vmatpush3.msra.mxu1 %v963_v25  ;;  %v1258_v25 = vld [vmem:[#allocation5 + $0x498] sm:$0xff] }
 0x1b2   : > { %4783 = vmatprep.subr.mxu1 %v962_v26 }
 0x1b3   : > { %4784 = vmatpush3.msra.mxu1 %v962_v26  ;;  %v1257_v26 = vld [vmem:[#allocation5 + $0x490] sm:$0xff] }
 0x1b4   : > { %4823 = vmatprep.subr.mxu1 %v1287_v59 }
 0x234   : > { %v4647_v27 = vpop.f32.mrf.mxu1 }
 0x236   : > { %v788_v29 = vpop.f32.mrf.mxu1 }
 0x23d   : > { %v4682_v28 = vpop.f32.mrf.mxu0 }
 0x23e   : > { %v869_v31 = vadd.f32 %v4682_v28, %v4647_v27  ;;  %v1256_v27 = vld [vmem:[#allocation5 + $0x488] sm:$0xff]  ;;  %v1255_v28 = vld [vmem:[#allocation5 + $0x480] sm:$0xff] }
 0x23f   : > { %v863_v30 = vpop.f32.mrf.mxu0 }
 0x240   : > { %v864_v34 = vadd.f32 %v863_v30, %v788_v29 }
 0x254   : > { %v4717_v33 = vpop.f32.mrf.mxu1 }
 0x255   : > { %v948_v35 = vadd.f32 %v4717_v33, %v869_v31 }
 0x256   : > { %v938_v36 = vpop.f32.mrf.mxu1 }
 0x257   : > { %v5703_v37 = vadd.f32 %v3889_v32, %v948_v35  ;;  %v947_v38 = vadd.f32 %v938_v36, %v864_v34  ;;  %v3890_v34 = vld [vmem:[#allocation7 + $0x2] ss:$0 sm:$0xff] }
 0x259   : > { %956 = vst [vmem:[#allocation2 + $0x9] sm:$0xff] %v5703_v37  ;;  %v5706_v39 = vadd.f32 %v3889_v32, %v947_v38 }
 0x25b   : > { %955 = vst [vmem:[#allocation2 + $0x1] sm:$0xff] %v5706_v39  ;;  %4750 = vmatprep.mubr.f32.mxu0 %v5706_v39 }
 0x25c   : > { %4751 = vmatmul.mubr.f32.vlgmr.msra.gmra.mxu0 %v5703_v37 }
 0x25d   : > { %4789 = vmatpush3.msra.mxu0 %v1011_v22  ;;  %v1272_v22 = vld [vmem:[#allocation5 + $0x500] sm:$0xff] }
 0x25e   : > { %4790 = vmatprep.subr.mxu0 %v1010_v40 }
 0x25f   : > { %4791 = vmatpush3.msra.mxu0 %v1010_v40 }
 0x260   : > { %4792 = vmatprep.subr.mxu0 %v1009_v41  ;;  %v960_v58 = vld [vmem:[#allocation2 + $0xa] sm:$0xff] }
 0x261   : > { %4793 = vmatpush3.msra.mxu0 %v1009_v41 }
 0x262   : > { %4794 = vmatprep.subr.mxu0 %v1008_v42  ;;  %v957_v44 = vld [vmem:[#allocation2] sm:$0xff]  ;;  %v958_v46 = vld [vmem:[#allocation2 + $0x8] sm:$0xff] }
 0x263   : > { %v959_v45 = vld [vmem:[#allocation2 + $0x2] sm:$0xff]  ;;  %4795 = vmatpush3.msra.mxu0 %v1008_v42  ;;  %4785 = vmatprep.mubr.f32.mxu1 %v957_v44 }
 0x264   : > { %4796 = vmatprep.subr.mxu0 %v1007_v43  ;;  %4820 = vmatprep.mubr.f32.mxu0 %v959_v45 }
 0x265   : > { %4786 = vmatmul.mubr.f32.vlgmr.msra.gmra.mxu1 %v958_v46  ;;  %4797 = vmatpush3.msra.mxu0 %v1007_v43  ;;  %v1303_v46 = vld [vmem:[#allocation5 + $0x5f0] sm:$0xff] }
 0x266   : > { %4798 = vmatprep.subr.mxu0 %v1006_v47  ;;  %4824 = vmatpush3.msra.mxu1 %v1287_v59  ;;  %v1293_v59 = vld [vmem:[#allocation5 + $0x5a0] sm:$0xff] }
 0x267   : > { %4799 = vmatpush3.msra.mxu0 %v1006_v47  ;;  %4825 = vmatprep.subr.mxu1 %v1286_v60  ;;  %v1302_v47 = vld [vmem:[#allocation5 + $0x5e8] sm:$0xff] }
 0x268   : > { %4800 = vmatprep.subr.mxu0 %v1005_v48  ;;  %4826 = vmatpush3.msra.mxu1 %v1286_v60  ;;  %v1292_v60 = vld [vmem:[#allocation5 + $0x598] sm:$0xff] }
 0x269   : > { %4801 = vmatpush3.msra.mxu0 %v1005_v48  ;;  %4827 = vmatprep.subr.mxu1 %v1285_v61  ;;  %v1301_v48 = vld [vmem:[#allocation5 + $0x5e0] sm:$0xff] }
 0x26a   : > { %4802 = vmatprep.subr.mxu0 %v1004_v49  ;;  %4828 = vmatpush3.msra.mxu1 %v1285_v61  ;;  %v1291_v61 = vld [vmem:[#allocation5 + $0x590] sm:$0xff] }
 0x26b   : > { %4803 = vmatpush3.msra.mxu0 %v1004_v49  ;;  %4829 = vmatprep.subr.mxu1 %v1284_v62  ;;  %v1300_v49 = vld [vmem:[#allocation5 + $0x5d8] sm:$0xff] }
 0x26c   : > { %4804 = vmatprep.subr.mxu0 %v1003_v50  ;;  %4830 = vmatpush3.msra.mxu1 %v1284_v62  ;;  %v1290_v62 = vld [vmem:[#allocation5 + $0x588] sm:$0xff] }
 0x26d   : > { %4805 = vmatpush3.msra.mxu0 %v1003_v50  ;;  %4831 = vmatprep.subr.mxu1 %v1283_v2 }
 0x26e   : > { %4806 = vmatprep.subr.mxu0 %v1002_v51  ;;  %4832 = vmatpush3.msra.mxu1 %v1283_v2  ;;  %v1580_v2 = vld [vmem:[#allocation5 + $0x6f8] sm:$0xff] }
 0x26f   : > { %4807 = vmatpush3.msra.mxu0 %v1002_v51  ;;  %4833 = vmatprep.subr.mxu1 %v1282_v4 }
 0x270   : > { %4808 = vmatprep.subr.mxu0 %v1001_v52  ;;  %4834 = vmatpush3.msra.mxu1 %v1282_v4  ;;  %v1578_v4 = vld [vmem:[#allocation5 + $0x6e8] sm:$0xff] }
 0x271   : > { %4809 = vmatpush3.msra.mxu0 %v1001_v52  ;;  %4835 = vmatprep.subr.mxu1 %v1281_v6 }
 0x272   : > { %4810 = vmatprep.subr.mxu0 %v1000_v53  ;;  %4836 = vmatpush3.msra.mxu1 %v1281_v6  ;;  %v1563_v6 = vld [vmem:[#allocation5 + $0x678] sm:$0xff] }
 0x273   : > { %4811 = vmatpush3.msra.mxu0 %v1000_v53  ;;  %4837 = vmatprep.subr.mxu1 %v1280_v8  ;;  %v1299_v53 = vld [vmem:[#allocation5 + $0x5d0] sm:$0xff] }
 0x274   : > { %4812 = vmatprep.subr.mxu0 %v999_v54  ;;  %4838 = vmatpush3.msra.mxu1 %v1280_v8  ;;  %v1576_v8 = vld [vmem:[#allocation5 + $0x6d8] sm:$0xff] }
 0x275   : > { %4813 = vmatpush3.msra.mxu0 %v999_v54  ;;  %4839 = vmatprep.subr.mxu1 %v1279_v10  ;;  %v1298_v54 = vld [vmem:[#allocation5 + $0x5c8] sm:$0xff] }
 0x276   : > { %4814 = vmatprep.subr.mxu0 %v998_v55  ;;  %4840 = vmatpush3.msra.mxu1 %v1279_v10  ;;  %v1575_v10 = vld [vmem:[#allocation5 + $0x6d0] sm:$0xff] }
 0x277   : > { %4815 = vmatpush3.msra.mxu0 %v998_v55  ;;  %4841 = vmatprep.subr.mxu1 %v1278_v12  ;;  %v1297_v55 = vld [vmem:[#allocation5 + $0x5c0] sm:$0xff] }
 0x278   : > { %4816 = vmatprep.subr.mxu0 %v997_v56  ;;  %4842 = vmatpush3.msra.mxu1 %v1278_v12  ;;  %v1574_v12 = vld [vmem:[#allocation5 + $0x6c8] sm:$0xff] }
 0x279   : > { %4817 = vmatpush3.msra.mxu0 %v997_v56  ;;  %4843 = vmatprep.subr.mxu1 %v1277_v13  ;;  %v1296_v56 = vld [vmem:[#allocation5 + $0x5b8] sm:$0xff] }
 0x27a   : > { %4818 = vmatprep.subr.mxu0 %v996_v57  ;;  %4844 = vmatpush3.msra.mxu1 %v1277_v13  ;;  %v1559_v13 = vld [vmem:[#allocation5 + $0x658] sm:$0xff] }
 0x27b   : > { %4819 = vmatpush3.msra.mxu0 %v996_v57  ;;  %4845 = vmatprep.subr.mxu1 %v1276_v14  ;;  %v1295_v57 = vld [vmem:[#allocation5 + $0x5b0] sm:$0xff] }
 0x27c   : > { %4821 = vmatmul.mubr.f32.vlgmr.msra.gmra.mxu0 %v960_v58  ;;  %4858 = vmatprep.subr.mxu0 %v1270_v63  ;;  %v1294_v58 = vld [vmem:[#allocation5 + $0x5a8] sm:$0xff] }
 0x27d   : > { %4859 = vmatpush3.msra.mxu0 %v1270_v63  ;;  %4846 = vmatpush3.msra.mxu1 %v1276_v14  ;;  %v1289_v63 = vld [vmem:[#allocation5 + $0x580] sm:$0xff] }
 0x27e   : > { %4860 = vmatprep.subr.mxu0 %v1269_v1  ;;  %4847 = vmatprep.subr.mxu1 %v1275_v16  ;;  %v1573_v14 = vld [vmem:[#allocation5 + $0x6c0] sm:$0xff] }
 0x27f   : > { %4861 = vmatpush3.msra.mxu0 %v1269_v1  ;;  %4848 = vmatpush3.msra.mxu1 %v1275_v16  ;;  %v1572_v16 = vld [vmem:[#allocation5 + $0x6b8] sm:$0xff] }
 0x280   : > { %4862 = vmatprep.subr.mxu0 %v1268_v3  ;;  %4849 = vmatprep.subr.mxu1 %v1274_v18 }
 0x281   : > { %4863 = vmatpush3.msra.mxu0 %v1268_v3  ;;  %4850 = vmatpush3.msra.mxu1 %v1274_v18  ;;  %v1579_v3 = vld [vmem:[#allocation5 + $0x6f0] sm:$0xff] }
 0x282   : > { %4864 = vmatprep.subr.mxu0 %v1267_v5  ;;  %4851 = vmatprep.subr.mxu1 %v1273_v20  ;;  %v1571_v18 = vld [vmem:[#allocation5 + $0x6b0] sm:$0xff] }
 0x283   : > { %4865 = vmatpush3.msra.mxu0 %v1267_v5  ;;  %4852 = vmatpush3.msra.mxu1 %v1273_v20  ;;  %v1577_v5 = vld [vmem:[#allocation5 + $0x6e0] sm:$0xff] }
 0x284   : > { %4866 = vmatprep.subr.mxu0 %v1266_v7  ;;  %4853 = vmatprep.subr.mxu1 %v1272_v22  ;;  %v1569_v20 = vld [vmem:[#allocation5 + $0x6a0] sm:$0xff] }
 0x285   : > { %4867 = vmatpush3.msra.mxu0 %v1266_v7  ;;  %4854 = vmatpush3.msra.mxu1 %v1272_v22  ;;  %v1562_v7 = vld [vmem:[#allocation5 + $0x670] sm:$0xff]  ;;  %v1568_v22 = vld [vmem:[#allocation5 + $0x698] sm:$0xff] }
 0x286   : > { %4868 = vmatprep.subr.mxu0 %v1265_v9  ;;  %4893 = vmatprep.subr.mxu1 %v1304_v24 }
 0x287   : > { %4869 = vmatpush3.msra.mxu0 %v1265_v9  ;;  %v1561_v9 = vld [vmem:[#allocation5 + $0x668] sm:$0xff] }
 0x288   : > { %4870 = vmatprep.subr.mxu0 %v1264_v11 }
 0x289   : > { %4871 = vmatpush3.msra.mxu0 %v1264_v11  ;;  %v1560_v11 = vld [vmem:[#allocation5 + $0x660] sm:$0xff] }
 0x28a   : > { %4872 = vmatprep.subr.mxu0 %v1263_v15 }
 0x28b   : > { %4873 = vmatpush3.msra.mxu0 %v1263_v15  ;;  %v1558_v15 = vld [vmem:[#allocation5 + $0x650] sm:$0xff] }
 0x28c   : > { %4874 = vmatprep.subr.mxu0 %v1262_v17 }
 0x28d   : > { %4875 = vmatpush3.msra.mxu0 %v1262_v17  ;;  %v1557_v17 = vld [vmem:[#allocation5 + $0x648] sm:$0xff] }
 0x28e   : > { %4876 = vmatprep.subr.mxu0 %v1261_v19 }
 0x28f   : > { %4877 = vmatpush3.msra.mxu0 %v1261_v19  ;;  %v1570_v19 = vld [vmem:[#allocation5 + $0x6a8] sm:$0xff] }
 0x290   : > { %4878 = vmatprep.subr.mxu0 %v1260_v21 }
 0x291   : > { %4879 = vmatpush3.msra.mxu0 %v1260_v21  ;;  %v1556_v21 = vld [vmem:[#allocation5 + $0x640] sm:$0xff] }
 0x292   : > { %4880 = vmatprep.subr.mxu0 %v1259_v23 }
 0x293   : > { %4881 = vmatpush3.msra.mxu0 %v1259_v23  ;;  %v1555_v23 = vld [vmem:[#allocation5 + $0x638] sm:$0xff] }
 0x294   : > { %4882 = vmatprep.subr.mxu0 %v1258_v25 }
 0x295   : > { %4883 = vmatpush3.msra.mxu0 %v1258_v25  ;;  %v1554_v25 = vld [vmem:[#allocation5 + $0x630] sm:$0xff] }
 0x296   : > { %4884 = vmatprep.subr.mxu0 %v1257_v26 }
 0x297   : > { %4885 = vmatpush3.msra.mxu0 %v1257_v26  ;;  %v1566_v26 = vld [vmem:[#allocation5 + $0x688] sm:$0xff] }
 0x298   : > { %4886 = vmatprep.subr.mxu0 %v1256_v27 }
 0x299   : > { %4887 = vmatpush3.msra.mxu0 %v1256_v27  ;;  %v1553_v27 = vld [vmem:[#allocation5 + $0x628] sm:$0xff] }
 0x29a   : > { %4888 = vmatprep.subr.mxu0 %v1255_v28 }
 0x29b   : > { %4889 = vmatpush3.msra.mxu0 %v1255_v28  ;;  %v1565_v28 = vld [vmem:[#allocation5 + $0x680] sm:$0xff] }
 0x29c   : > { %4928 = vmatprep.subr.mxu0 %v1580_v2 }
 0x31c   : > { %v4752_v29 = vpop.f32.mrf.mxu0 }
 0x31e   : > { %v1079_v31 = vpop.f32.mrf.mxu0 }
 0x325   : > { %v4787_v30 = vpop.f32.mrf.mxu1 }
 0x326   : > { %v1160_v33 = vadd.f32 %v4787_v30, %v4752_v29  ;;  %v1552_v29 = vld [vmem:[#allocation5 + $0x620] sm:$0xff]  ;;  %v1597_v30 = vld [vmem:[#allocation5 + $0x778] sm:$0xff] }
 0x327   : > { %v1154_v32 = vpop.f32.mrf.mxu1 }
 0x328   : > { %v1155_v36 = vadd.f32 %v1154_v32, %v1079_v31  ;;  %v1551_v31 = vld [vmem:[#allocation5 + $0x618] sm:$0xff]  ;;  %v1550_v32 = vld [vmem:[#allocation5 + $0x610] sm:$0xff] }
 0x33c   : > { %v4822_v35 = vpop.f32.mrf.mxu0 }
 0x33d   : > { %v1239_v38 = vadd.f32 %v4822_v35, %v1160_v33  ;;  %v1549_v33 = vld [vmem:[#allocation5 + $0x608] sm:$0xff] }
 0x33e   : > { %v1229_v40 = vpop.f32.mrf.mxu0 }
 0x33f   : > { %v1245_v41 = vadd.f32 %v3890_v34, %v1239_v38  ;;  %v1238_v42 = vadd.f32 %v1229_v40, %v1155_v36 }
 0x341   : > { %v1247_v43 = vmax.f32 %v1245_v41, 0.0  ;;  %v1244_v44 = vadd.f32 %v3890_v34, %v1238_v42  ;;  %v1548_v34 = vld [vmem:[#allocation5 + $0x600] sm:$0xff] }
 0x342   : > { %v3891_v42 = vld [vmem:[#allocation7 + $0x3] ss:$0 sm:$0xff] }
 0x343   : > { %1249 = vst [vmem:[#allocation2 + $0x9] sm:$0xff] %v1247_v43  ;;  %v1246_v45 = vmax.f32 %v1244_v44, 0.0 }
 0x345   : > { %1248 = vst [vmem:[#allocation2 + $0x1] sm:$0xff] %v1246_v45  ;;  %4855 = vmatprep.mubr.f32.mxu1 %v1246_v45 }
 0x346   : > { %4856 = vmatmul.mubr.f32.vlgmr.msra.gmra.mxu1 %v1247_v43 }
 0x347   : > { %4894 = vmatpush3.msra.mxu1 %v1304_v24  ;;  %v1567_v24 = vld [vmem:[#allocation5 + $0x690] sm:$0xff] }
 0x348   : > { %4895 = vmatprep.subr.mxu1 %v1303_v46 }
 0x349   : > { %4896 = vmatpush3.msra.mxu1 %v1303_v46 }
 0x34a   : > { %4897 = vmatprep.subr.mxu1 %v1302_v47  ;;  %v1253_v1 = vld [vmem:[#allocation2 + $0xa] sm:$0xff] }
 0x34b   : > { %4898 = vmatpush3.msra.mxu1 %v1302_v47 }
 0x34c   : > { %4899 = vmatprep.subr.mxu1 %v1301_v48  ;;  %v1250_v50 = vld [vmem:[#allocation2] sm:$0xff]  ;;  %v1251_v52 = vld [vmem:[#allocation2 + $0x8] sm:$0xff] }
 0x34d   : > { %v1252_v51 = vld [vmem:[#allocation2 + $0x2] sm:$0xff]  ;;  %4900 = vmatpush3.msra.mxu1 %v1301_v48  ;;  %4890 = vmatprep.mubr.f32.mxu0 %v1250_v50 }
 0x34e   : > { %4901 = vmatprep.subr.mxu1 %v1300_v49  ;;  %4925 = vmatprep.mubr.f32.mxu1 %v1252_v51 }
 0x34f   : > { %4891 = vmatmul.mubr.f32.vlgmr.msra.gmra.mxu0 %v1251_v52  ;;  %4902 = vmatpush3.msra.mxu1 %v1300_v49  ;;  %v1596_v52 = vld [vmem:[#allocation5 + $0x770] sm:$0xff] }
 0x350   : > { %4903 = vmatprep.subr.mxu1 %v1299_v53  ;;  %4929 = vmatpush3.msra.mxu0 %v1580_v2  ;;  %v1586_v2 = vld [vmem:[#allocation5 + $0x720] sm:$0xff] }
 0x351   : > { %4904 = vmatpush3.msra.mxu1 %v1299_v53  ;;  %4930 = vmatprep.subr.mxu0 %v1579_v3  ;;  %v1595_v53 = vld [vmem:[#allocation5 + $0x768] sm:$0xff] }
 0x352   : > { %4905 = vmatprep.subr.mxu1 %v1298_v54  ;;  %4931 = vmatpush3.msra.mxu0 %v1579_v3  ;;  %v1585_v3 = vld [vmem:[#allocation5 + $0x718] sm:$0xff] }
 0x353   : > { %4906 = vmatpush3.msra.mxu1 %v1298_v54  ;;  %4932 = vmatprep.subr.mxu0 %v1578_v4  ;;  %v1594_v54 = vld [vmem:[#allocation5 + $0x760] sm:$0xff] }
 0x354   : > { %4907 = vmatprep.subr.mxu1 %v1297_v55  ;;  %4933 = vmatpush3.msra.mxu0 %v1578_v4  ;;  %v1584_v4 = vld [vmem:[#allocation5 + $0x710] sm:$0xff] }
 0x355   : > { %4908 = vmatpush3.msra.mxu1 %v1297_v55  ;;  %4934 = vmatprep.subr.mxu0 %v1577_v5  ;;  %v1593_v55 = vld [vmem:[#allocation5 + $0x758] sm:$0xff] }
 0x356   : > { %4909 = vmatprep.subr.mxu1 %v1296_v56  ;;  %4935 = vmatpush3.msra.mxu0 %v1577_v5  ;;  %v1583_v5 = vld [vmem:[#allocation5 + $0x708] sm:$0xff] }
 0x357   : > { %4910 = vmatpush3.msra.mxu1 %v1296_v56  ;;  %4936 = vmatprep.subr.mxu0 %v1576_v8 }
 0x358   : > { %4911 = vmatprep.subr.mxu1 %v1295_v57  ;;  %4937 = vmatpush3.msra.mxu0 %v1576_v8  ;;  %v1873_v8 = vld [vmem:[#allocation5 + $0x878] sm:$0xff] }
 0x359   : > { %4912 = vmatpush3.msra.mxu1 %v1295_v57  ;;  %4938 = vmatprep.subr.mxu0 %v1575_v10 }
 0x35a   : > { %4913 = vmatprep.subr.mxu1 %v1294_v58  ;;  %4939 = vmatpush3.msra.mxu0 %v1575_v10  ;;  %v1871_v10 = vld [vmem:[#allocation5 + $0x868] sm:$0xff] }
 0x35b   : > { %4914 = vmatpush3.msra.mxu1 %v1294_v58  ;;  %4940 = vmatprep.subr.mxu0 %v1574_v12 }
 0x35c   : > { %4915 = vmatprep.subr.mxu1 %v1293_v59  ;;  %4941 = vmatpush3.msra.mxu0 %v1574_v12  ;;  %v1856_v12 = vld [vmem:[#allocation5 + $0x7f8] sm:$0xff] }
 0x35d   : > { %4916 = vmatpush3.msra.mxu1 %v1293_v59  ;;  %4942 = vmatprep.subr.mxu0 %v1573_v14  ;;  %v1592_v59 = vld [vmem:[#allocation5 + $0x750] sm:$0xff] }
 0x35e   : > { %4917 = vmatprep.subr.mxu1 %v1292_v60  ;;  %4943 = vmatpush3.msra.mxu0 %v1573_v14  ;;  %v1869_v14 = vld [vmem:[#allocation5 + $0x858] sm:$0xff] }
 0x35f   : > { %4918 = vmatpush3.msra.mxu1 %v1292_v60  ;;  %4944 = vmatprep.subr.mxu0 %v1572_v16  ;;  %v1591_v60 = vld [vmem:[#allocation5 + $0x748] sm:$0xff] }
 0x360   : > { %4919 = vmatprep.subr.mxu1 %v1291_v61  ;;  %4945 = vmatpush3.msra.mxu0 %v1572_v16  ;;  %v1868_v16 = vld [vmem:[#allocation5 + $0x850] sm:$0xff] }
 0x361   : > { %4920 = vmatpush3.msra.mxu1 %v1291_v61  ;;  %4946 = vmatprep.subr.mxu0 %v1571_v18  ;;  %v1590_v61 = vld [vmem:[#allocation5 + $0x740] sm:$0xff] }
 0x362   : > { %4921 = vmatprep.subr.mxu1 %v1290_v62  ;;  %4947 = vmatpush3.msra.mxu0 %v1571_v18  ;;  %v1867_v18 = vld [vmem:[#allocation5 + $0x848] sm:$0xff] }
 0x363   : > { %4922 = vmatpush3.msra.mxu1 %v1290_v62  ;;  %4948 = vmatprep.subr.mxu0 %v1570_v19  ;;  %v1589_v62 = vld [vmem:[#allocation5 + $0x738] sm:$0xff] }
 0x364   : > { %4923 = vmatprep.subr.mxu1 %v1289_v63  ;;  %4949 = vmatpush3.msra.mxu0 %v1570_v19  ;;  %v1852_v19 = vld [vmem:[#allocation5 + $0x7d8] sm:$0xff] }
 0x365   : > { %4924 = vmatpush3.msra.mxu1 %v1289_v63  ;;  %4950 = vmatprep.subr.mxu0 %v1569_v20  ;;  %v1588_v63 = vld [vmem:[#allocation5 + $0x730] sm:$0xff] }
 0x366   : > { %4926 = vmatmul.mubr.f32.vlgmr.msra.gmra.mxu1 %v1253_v1  ;;  %4963 = vmatprep.subr.mxu1 %v1563_v6  ;;  %v1587_v1 = vld [vmem:[#allocation5 + $0x728] sm:$0xff] }
 0x367   : > { %4964 = vmatpush3.msra.mxu1 %v1563_v6  ;;  %4951 = vmatpush3.msra.mxu0 %v1569_v20  ;;  %v1582_v6 = vld [vmem:[#allocation5 + $0x700] sm:$0xff] }
 0x368   : > { %4965 = vmatprep.subr.mxu1 %v1562_v7  ;;  %4952 = vmatprep.subr.mxu0 %v1568_v22  ;;  %v1866_v20 = vld [vmem:[#allocation5 + $0x840] sm:$0xff] }
 0x369   : > { %4966 = vmatpush3.msra.mxu1 %v1562_v7  ;;  %4953 = vmatpush3.msra.mxu0 %v1568_v22  ;;  %v1865_v22 = vld [vmem:[#allocation5 + $0x838] sm:$0xff] }
 0x36a   : > { %4967 = vmatprep.subr.mxu1 %v1561_v9  ;;  %4954 = vmatprep.subr.mxu0 %v1567_v24 }
 0x36b   : > { %4968 = vmatpush3.msra.mxu1 %v1561_v9  ;;  %4955 = vmatpush3.msra.mxu0 %v1567_v24  ;;  %v1872_v9 = vld [vmem:[#allocation5 + $0x870] sm:$0xff] }
 0x36c   : > { %4969 = vmatprep.subr.mxu1 %v1560_v11  ;;  %4956 = vmatprep.subr.mxu0 %v1566_v26  ;;  %v1864_v24 = vld [vmem:[#allocation5 + $0x830] sm:$0xff] }
 0x36d   : > { %4970 = vmatpush3.msra.mxu1 %v1560_v11  ;;  %4957 = vmatpush3.msra.mxu0 %v1566_v26  ;;  %v1870_v11 = vld [vmem:[#allocation5 + $0x860] sm:$0xff] }
 0x36e   : > { %4971 = vmatprep.subr.mxu1 %v1559_v13  ;;  %4958 = vmatprep.subr.mxu0 %v1565_v28  ;;  %v1862_v26 = vld [vmem:[#allocation5 + $0x820] sm:$0xff] }
 0x36f   : > { %4972 = vmatpush3.msra.mxu1 %v1559_v13  ;;  %4959 = vmatpush3.msra.mxu0 %v1565_v28  ;;  %v1855_v13 = vld [vmem:[#allocation5 + $0x7f0] sm:$0xff]  ;;  %v1861_v28 = vld [vmem:[#allocation5 + $0x818] sm:$0xff] }
 0x370   : > { %4973 = vmatprep.subr.mxu1 %v1558_v15  ;;  %4998 = vmatprep.subr.mxu0 %v1597_v30 }
 0x371   : > { %4974 = vmatpush3.msra.mxu1 %v1558_v15  ;;  %v1854_v15 = vld [vmem:[#allocation5 + $0x7e8] sm:$0xff] }
 0x372   : > { %4975 = vmatprep.subr.mxu1 %v1557_v17 }
 0x373   : > { %4976 = vmatpush3.msra.mxu1 %v1557_v17  ;;  %v1853_v17 = vld [vmem:[#allocation5 + $0x7e0] sm:$0xff] }
 0x374   : > { %4977 = vmatprep.subr.mxu1 %v1556_v21 }
 0x375   : > { %4978 = vmatpush3.msra.mxu1 %v1556_v21  ;;  %v1851_v21 = vld [vmem:[#allocation5 + $0x7d0] sm:$0xff] }
 0x376   : > { %4979 = vmatprep.subr.mxu1 %v1555_v23 }
 0x377   : > { %4980 = vmatpush3.msra.mxu1 %v1555_v23  ;;  %v1850_v23 = vld [vmem:[#allocation5 + $0x7c8] sm:$0xff] }
 0x378   : > { %4981 = vmatprep.subr.mxu1 %v1554_v25 }
 0x379   : > { %4982 = vmatpush3.msra.mxu1 %v1554_v25  ;;  %v1863_v25 = vld [vmem:[#allocation5 + $0x828] sm:$0xff] }
 0x37a   : > { %4983 = vmatprep.subr.mxu1 %v1553_v27 }
 0x37b   : > { %4984 = vmatpush3.msra.mxu1 %v1553_v27  ;;  %v1849_v27 = vld [vmem:[#allocation5 + $0x7c0] sm:$0xff] }
 0x37c   : > { %4985 = vmatprep.subr.mxu1 %v1552_v29 }
 0x37d   : > { %4986 = vmatpush3.msra.mxu1 %v1552_v29  ;;  %v1848_v29 = vld [vmem:[#allocation5 + $0x7b8] sm:$0xff] }
 0x37e   : > { %4987 = vmatprep.subr.mxu1 %v1551_v31 }
 0x37f   : > { %4988 = vmatpush3.msra.mxu1 %v1551_v31  ;;  %v1847_v31 = vld [vmem:[#allocation5 + $0x7b0] sm:$0xff] }
 0x380   : > { %4989 = vmatprep.subr.mxu1 %v1550_v32 }
 0x381   : > { %4990 = vmatpush3.msra.mxu1 %v1550_v32  ;;  %v1859_v32 = vld [vmem:[#allocation5 + $0x808] sm:$0xff] }
 0x382   : > { %4991 = vmatprep.subr.mxu1 %v1549_v33 }
 0x383   : > { %4992 = vmatpush3.msra.mxu1 %v1549_v33  ;;  %v1846_v33 = vld [vmem:[#allocation5 + $0x7a8] sm:$0xff] }
 0x384   : > { %4993 = vmatprep.subr.mxu1 %v1548_v34 }
 0x385   : > { %4994 = vmatpush3.msra.mxu1 %v1548_v34  ;;  %v1858_v34 = vld [vmem:[#allocation5 + $0x800] sm:$0xff] }
 0x386   : > { %5033 = vmatprep.subr.mxu1 %v1873_v8 }
 0x406   : > { %v4857_v35 = vpop.f32.mrf.mxu1 }
 0x408   : > { %v1372_v38 = vpop.f32.mrf.mxu1 }
 0x40f   : > { %v4892_v36 = vpop.f32.mrf.mxu0 }
 0x410   : > { %v1453_v41 = vadd.f32 %v4892_v36, %v4857_v35  ;;  %v1845_v35 = vld [vmem:[#allocation5 + $0x7a0] sm:$0xff]  ;;  %v1890_v36 = vld [vmem:[#allocation5 + $0x8f8] sm:$0xff] }
 0x411   : > { %v1447_v40 = vpop.f32.mrf.mxu0 }
 0x412   : > { %v1448_v44 = vadd.f32 %v1447_v40, %v1372_v38  ;;  %v1844_v38 = vld [vmem:[#allocation5 + $0x798] sm:$0xff]  ;;  %v1843_v40 = vld [vmem:[#allocation5 + $0x790] sm:$0xff] }
 0x426   : > { %v4927_v43 = vpop.f32.mrf.mxu1 }
 0x427   : > { %v1532_v45 = vadd.f32 %v4927_v43, %v1453_v41  ;;  %v1842_v41 = vld [vmem:[#allocation5 + $0x788] sm:$0xff] }
 0x428   : > { %v1522_v46 = vpop.f32.mrf.mxu1 }
 0x429   : > { %v1538_v47 = vadd.f32 %v3891_v42, %v1532_v45  ;;  %v1531_v48 = vadd.f32 %v1522_v46, %v1448_v44 }
 0x42b   : > { %v5712_v49 = vadd.f32 %v1538_v47, %v5703_v37  ;;  %v1537_v50 = vadd.f32 %v3891_v42, %v1531_v48  ;;  %v1841_v42 = vld [vmem:[#allocation5 + $0x780] sm:$0xff] }
 0x42c   : > { %v3892_v48 = vld [vmem:[#allocation7 + $0x4] ss:$0 sm:$0xff] }
 0x42d   : > { %1542 = vst [vmem:[#allocation2 + $0x9] sm:$0xff] %v5712_v49  ;;  %v5716_v51 = vadd.f32 %v1537_v50, %v5706_v39 }
 0x42f   : > { %4960 = vmatprep.mubr.f32.mxu0 %v5716_v51  ;;  %1541 = vst [vmem:[#allocation2 + $0x1] sm:$0xff] %v5716_v51 }
 0x430   : > { %4961 = vmatmul.mubr.f32.vlgmr.msra.gmra.mxu0 %v5712_v49 }
 0x431   : > { %4999 = vmatpush3.msra.mxu0 %v1597_v30  ;;  %v1860_v30 = vld [vmem:[#allocation5 + $0x810] sm:$0xff] }
 0x432   : > { %5000 = vmatprep.subr.mxu0 %v1596_v52 }
 0x433   : > { %5001 = vmatpush3.msra.mxu0 %v1596_v52 }
 0x434   : > { %5002 = vmatprep.subr.mxu0 %v1595_v53  ;;  %v1546_v7 = vld [vmem:[#allocation2 + $0xa] sm:$0xff] }
 0x435   : > { %5003 = vmatpush3.msra.mxu0 %v1595_v53 }
 0x436   : > { %5004 = vmatprep.subr.mxu0 %v1594_v54  ;;  %v1543_v56 = vld [vmem:[#allocation2] sm:$0xff]  ;;  %v1544_v58 = vld [vmem:[#allocation2 + $0x8] sm:$0xff] }
 0x437   : > { %v1545_v57 = vld [vmem:[#allocation2 + $0x2] sm:$0xff]  ;;  %5005 = vmatpush3.msra.mxu0 %v1594_v54  ;;  %4995 = vmatprep.mubr.f32.mxu1 %v1543_v56 }
 0x438   : > { %5006 = vmatprep.subr.mxu0 %v1593_v55  ;;  %5030 = vmatprep.mubr.f32.mxu0 %v1545_v57 }
 0x439   : > { %4996 = vmatmul.mubr.f32.vlgmr.msra.gmra.mxu1 %v1544_v58  ;;  %5007 = vmatpush3.msra.mxu0 %v1593_v55 }
 0x43a   : > { %5008 = vmatprep.subr.mxu0 %v1592_v59  ;;  %5034 = vmatpush3.msra.mxu1 %v1873_v8  ;;  %v1881_v8 = vld [vmem:[#allocation5 + $0x8b0] sm:$0xff] }
 0x43b   : > { %5009 = vmatpush3.msra.mxu0 %v1592_v59  ;;  %5035 = vmatprep.subr.mxu1 %v1872_v9 }
 0x43c   : > { %5010 = vmatprep.subr.mxu0 %v1591_v60  ;;  %5036 = vmatpush3.msra.mxu1 %v1872_v9  ;;  %v1880_v9 = vld [vmem:[#allocation5 + $0x8a8] sm:$0xff] }
 0x43d   : > { %5011 = vmatpush3.msra.mxu0 %v1591_v60  ;;  %5037 = vmatprep.subr.mxu1 %v1871_v10  ;;  %v1889_v60 = vld [vmem:[#allocation5 + $0x8f0] sm:$0xff] }
 0x43e   : > { %5012 = vmatprep.subr.mxu0 %v1590_v61  ;;  %5038 = vmatpush3.msra.mxu1 %v1871_v10  ;;  %v1879_v10 = vld [vmem:[#allocation5 + $0x8a0] sm:$0xff] }
 0x43f   : > { %5013 = vmatpush3.msra.mxu0 %v1590_v61  ;;  %5039 = vmatprep.subr.mxu1 %v1870_v11  ;;  %v1888_v61 = vld [vmem:[#allocation5 + $0x8e8] sm:$0xff] }
 0x440   : > { %5014 = vmatprep.subr.mxu0 %v1589_v62  ;;  %5040 = vmatpush3.msra.mxu1 %v1870_v11  ;;  %v1878_v11 = vld [vmem:[#allocation5 + $0x898] sm:$0xff] }
 0x441   : > { %5015 = vmatpush3.msra.mxu0 %v1589_v62  ;;  %5041 = vmatprep.subr.mxu1 %v1869_v14  ;;  %v1887_v62 = vld [vmem:[#allocation5 + $0x8e0] sm:$0xff] }
 0x442   : > { %5016 = vmatprep.subr.mxu0 %v1588_v63  ;;  %5042 = vmatpush3.msra.mxu1 %v1869_v14  ;;  %v1875_v14 = vld [vmem:[#allocation5 + $0x880] sm:$0xff] }
 0x443   : > { %5017 = vmatpush3.msra.mxu0 %v1588_v63  ;;  %5043 = vmatprep.subr.mxu1 %v1868_v16  ;;  %v1886_v63 = vld [vmem:[#allocation5 + $0x8d8] sm:$0xff] }
 0x444   : > { %5018 = vmatprep.subr.mxu0 %v1587_v1  ;;  %5044 = vmatpush3.msra.mxu1 %v1868_v16  ;;  %v2166_v16 = vld [vmem:[#allocation5 + $0x9f8] sm:$0xff] }
 0x445   : > { %5019 = vmatpush3.msra.mxu0 %v1587_v1  ;;  %5045 = vmatprep.subr.mxu1 %v1867_v18 }
 0x446   : > { %5020 = vmatprep.subr.mxu0 %v1586_v2  ;;  %5046 = vmatpush3.msra.mxu1 %v1867_v18  ;;  %v2164_v18 = vld [vmem:[#allocation5 + $0x9e8] sm:$0xff] }
 0x447   : > { %5021 = vmatpush3.msra.mxu0 %v1586_v2  ;;  %5047 = vmatprep.subr.mxu1 %v1866_v20 }
 0x448   : > { %5022 = vmatprep.subr.mxu0 %v1585_v3  ;;  %5048 = vmatpush3.msra.mxu1 %v1866_v20  ;;  %v2149_v20 = vld [vmem:[#allocation5 + $0x978] sm:$0xff] }
 0x449   : > { %5023 = vmatpush3.msra.mxu0 %v1585_v3  ;;  %5049 = vmatprep.subr.mxu1 %v1865_v22 }
 0x44a   : > { %5024 = vmatprep.subr.mxu0 %v1584_v4  ;;  %5050 = vmatpush3.msra.mxu1 %v1865_v22  ;;  %v2162_v22 = vld [vmem:[#allocation5 + $0x9d8] sm:$0xff] }
 0x44b   : > { %5025 = vmatpush3.msra.mxu0 %v1584_v4  ;;  %5051 = vmatprep.subr.mxu1 %v1864_v24  ;;  %v1885_v4 = vld [vmem:[#allocation5 + $0x8d0] sm:$0xff] }
 0x44c   : > { %5026 = vmatprep.subr.mxu0 %v1583_v5  ;;  %5052 = vmatpush3.msra.mxu1 %v1864_v24  ;;  %v2161_v24 = vld [vmem:[#allocation5 + $0x9d0] sm:$0xff] }
 0x44d   : > { %5027 = vmatpush3.msra.mxu0 %v1583_v5  ;;  %5053 = vmatprep.subr.mxu1 %v1863_v25  ;;  %v1884_v5 = vld [vmem:[#allocation5 + $0x8c8] sm:$0xff] }
 0x44e   : > { %5028 = vmatprep.subr.mxu0 %v1582_v6  ;;  %5054 = vmatpush3.msra.mxu1 %v1863_v25  ;;  %v2146_v25 = vld [vmem:[#allocation5 + $0x960] sm:$0xff] }
 0x44f   : > { %5029 = vmatpush3.msra.mxu0 %v1582_v6  ;;  %5055 = vmatprep.subr.mxu1 %v1862_v26  ;;  %v1883_v6 = vld [vmem:[#allocation5 + $0x8c0] sm:$0xff] }
 0x450   : > { %5031 = vmatmul.mubr.f32.vlgmr.msra.gmra.mxu0 %v1546_v7  ;;  %5068 = vmatprep.subr.mxu0 %v1856_v12  ;;  %v1882_v7 = vld [vmem:[#allocation5 + $0x8b8] sm:$0xff] }
 0x451   : > { %5069 = vmatpush3.msra.mxu0 %v1856_v12  ;;  %5056 = vmatpush3.msra.mxu1 %v1862_v26  ;;  %v1877_v12 = vld [vmem:[#allocation5 + $0x890] sm:$0xff]  ;;  %v2160_v26 = vld [vmem:[#allocation5 + $0x9c8] sm:$0xff] }
 0x452   : > { %5070 = vmatprep.subr.mxu0 %v1855_v13  ;;  %5057 = vmatprep.subr.mxu1 %v1861_v28 }
 0x453   : > { %5071 = vmatpush3.msra.mxu0 %v1855_v13  ;;  %5058 = vmatpush3.msra.mxu1 %v1861_v28  ;;  %v1876_v13 = vld [vmem:[#allocation5 + $0x888] sm:$0xff]  ;;  %v2159_v28 = vld [vmem:[#allocation5 + $0x9c0] sm:$0xff] }
 0x454   : > { %5072 = vmatprep.subr.mxu0 %v1854_v15  ;;  %5059 = vmatprep.subr.mxu1 %v1860_v30 }
 0x455   : > { %5073 = vmatpush3.msra.mxu0 %v1854_v15  ;;  %5060 = vmatpush3.msra.mxu1 %v1860_v30  ;;  %v2158_v30 = vld [vmem:[#allocation5 + $0x9b8] sm:$0xff] }
 0x456   : > { %5074 = vmatprep.subr.mxu0 %v1853_v17  ;;  %5061 = vmatprep.subr.mxu1 %v1859_v32 }
 0x457   : > { %5075 = vmatpush3.msra.mxu0 %v1853_v17  ;;  %5062 = vmatpush3.msra.mxu1 %v1859_v32  ;;  %v2165_v17 = vld [vmem:[#allocation5 + $0x9f0] sm:$0xff] }
 0x458   : > { %5076 = vmatprep.subr.mxu0 %v1852_v19  ;;  %5063 = vmatprep.subr.mxu1 %v1858_v34  ;;  %v2157_v32 = vld [vmem:[#allocation5 + $0x9b0] sm:$0xff] }
 0x459   : > { %5077 = vmatpush3.msra.mxu0 %v1852_v19  ;;  %5064 = vmatpush3.msra.mxu1 %v1858_v34  ;;  %v2163_v19 = vld [vmem:[#allocation5 + $0x9e0] sm:$0xff] }
 0x45a   : > { %5078 = vmatprep.subr.mxu0 %v1851_v21  ;;  %5103 = vmatprep.subr.mxu1 %v1890_v36  ;;  %v2155_v34 = vld [vmem:[#allocation5 + $0x9a0] sm:$0xff] }
 0x45b   : > { %5079 = vmatpush3.msra.mxu0 %v1851_v21  ;;  %v2148_v21 = vld [vmem:[#allocation5 + $0x970] sm:$0xff] }
 0x45c   : > { %5080 = vmatprep.subr.mxu0 %v1850_v23 }
 0x45d   : > { %5081 = vmatpush3.msra.mxu0 %v1850_v23  ;;  %v2147_v23 = vld [vmem:[#allocation5 + $0x968] sm:$0xff] }
 0x45e   : > { %5082 = vmatprep.subr.mxu0 %v1849_v27 }
 0x45f   : > { %5083 = vmatpush3.msra.mxu0 %v1849_v27  ;;  %v2145_v27 = vld [vmem:[#allocation5 + $0x958] sm:$0xff] }
 0x460   : > { %5084 = vmatprep.subr.mxu0 %v1848_v29 }
 0x461   : > { %5085 = vmatpush3.msra.mxu0 %v1848_v29  ;;  %v2144_v29 = vld [vmem:[#allocation5 + $0x950] sm:$0xff] }
 0x462   : > { %5086 = vmatprep.subr.mxu0 %v1847_v31 }
 0x463   : > { %5087 = vmatpush3.msra.mxu0 %v1847_v31  ;;  %v2143_v31 = vld [vmem:[#allocation5 + $0x948] sm:$0xff] }
 0x464   : > { %5088 = vmatprep.subr.mxu0 %v1846_v33 }
 0x465   : > { %5089 = vmatpush3.msra.mxu0 %v1846_v33  ;;  %v2156_v33 = vld [vmem:[#allocation5 + $0x9a8] sm:$0xff] }
 0x466   : > { %5090 = vmatprep.subr.mxu0 %v1845_v35 }
 0x467   : > { %5091 = vmatpush3.msra.mxu0 %v1845_v35  ;;  %v2142_v35 = vld [vmem:[#allocation5 + $0x940] sm:$0xff] }
 0x468   : > { %5092 = vmatprep.subr.mxu0 %v1844_v38 }
 0x469   : > { %5093 = vmatpush3.msra.mxu0 %v1844_v38  ;;  %v2141_v38 = vld [vmem:[#allocation5 + $0x938] sm:$0xff] }
 0x46a   : > { %5094 = vmatprep.subr.mxu0 %v1843_v40 }
 0x46b   : > { %5095 = vmatpush3.msra.mxu0 %v1843_v40  ;;  %v2153_v40 = vld [vmem:[#allocation5 + $0x990] sm:$0xff] }
 0x46c   : > { %5096 = vmatprep.subr.mxu0 %v1842_v41 }
 0x46d   : > { %5097 = vmatpush3.msra.mxu0 %v1842_v41  ;;  %v2140_v41 = vld [vmem:[#allocation5 + $0x930] sm:$0xff] }
 0x46e   : > { %5098 = vmatprep.subr.mxu0 %v1841_v42 }
 0x46f   : > { %5099 = vmatpush3.msra.mxu0 %v1841_v42  ;;  %v2152_v42 = vld [vmem:[#allocation5 + $0x988] sm:$0xff] }
 0x470   : > { %5138 = vmatprep.subr.mxu0 %v2166_v16 }
 0x4f0   : > { %v4962_v43 = vpop.f32.mrf.mxu0 }
 0x4f2   : > { %v1665_v45 = vpop.f32.mrf.mxu0 }
 0x4f9   : > { %v4997_v44 = vpop.f32.mrf.mxu1 }
 0x4fa   : > { %v1746_v47 = vadd.f32 %v4997_v44, %v4962_v43  ;;  %v2139_v43 = vld [vmem:[#allocation5 + $0x928] sm:$0xff]  ;;  %v2151_v44 = vld [vmem:[#allocation5 + $0x980] sm:$0xff] }
 0x4fb   : > { %v1740_v46 = vpop.f32.mrf.mxu1 }
 0x4fc   : > { %v1741_v52 = vadd.f32 %v1740_v46, %v1665_v45  ;;  %v2138_v45 = vld [vmem:[#allocation5 + $0x920] sm:$0xff]  ;;  %v2183_v46 = vld [vmem:[#allocation5 + $0xa78] sm:$0xff] }
 0x510   : > { %v5032_v50 = vpop.f32.mrf.mxu0 }
 0x511   : > { %v1825_v53 = vadd.f32 %v5032_v50, %v1746_v47  ;;  %v2137_v47 = vld [vmem:[#allocation5 + $0x918] sm:$0xff]  ;;  %v2135_v50 = vld [vmem:[#allocation5 + $0x908] sm:$0xff] }
 0x512   : > { %v1815_v54 = vpop.f32.mrf.mxu0 }
 0x513   : > { %v1831_v55 = vadd.f32 %v3892_v48, %v1825_v53  ;;  %v1824_v56 = vadd.f32 %v1815_v54, %v1741_v52  ;;  %v2134_v52 = vld [vmem:[#allocation5 + $0x900] sm:$0xff] }
 0x515   : > { %v1833_v57 = vmax.f32 %v1831_v55, 0.0  ;;  %v1830_v58 = vadd.f32 %v3892_v48, %v1824_v56  ;;  %v2136_v48 = vld [vmem:[#allocation5 + $0x910] sm:$0xff] }
 0x517   : > { %1835 = vst [vmem:[#allocation2 + $0x9] sm:$0xff] %v1833_v57  ;;  %v1832_v59 = vmax.f32 %v1830_v58, 0.0  ;;  %v3893_v58 = vld [vmem:[#allocation7 + $0x5] ss:$0 sm:$0xff] }
 0x519   : > { %1834 = vst [vmem:[#allocation2 + $0x1] sm:$0xff] %v1832_v59  ;;  %5065 = vmatprep.mubr.f32.mxu1 %v1832_v59 }
 0x51a   : > { %5066 = vmatmul.mubr.f32.vlgmr.msra.gmra.mxu1 %v1833_v57 }
 0x51b   : > { %5104 = vmatpush3.msra.mxu1 %v1890_v36  ;;  %v2154_v36 = vld [vmem:[#allocation5 + $0x998] sm:$0xff] }
 0x51c   : > { %5105 = vmatprep.subr.mxu1 %v1889_v60 }
 0x51d   : > { %5106 = vmatpush3.msra.mxu1 %v1889_v60 }
 0x51e   : > { %5107 = vmatprep.subr.mxu1 %v1888_v61  ;;  %v1839_v15 = vld [vmem:[#allocation2 + $0xa] sm:$0xff] }
 0x51f   : > { %5108 = vmatpush3.msra.mxu1 %v1888_v61 }
 0x520   : > { %5109 = vmatprep.subr.mxu1 %v1887_v62  ;;  %v1836_v1 = vld [vmem:[#allocation2] sm:$0xff]  ;;  %v1837_v3 = vld [vmem:[#allocation2 + $0x8] sm:$0xff] }
 0x521   : > { %v1838_v2 = vld [vmem:[#allocation2 + $0x2] sm:$0xff]  ;;  %5110 = vmatpush3.msra.mxu1 %v1887_v62  ;;  %5100 = vmatprep.mubr.f32.mxu0 %v1836_v1 }
 0x522   : > { %5111 = vmatprep.subr.mxu1 %v1886_v63  ;;  %5135 = vmatprep.mubr.f32.mxu1 %v1838_v2 }
 0x523   : > { %5101 = vmatmul.mubr.f32.vlgmr.msra.gmra.mxu0 %v1837_v3  ;;  %5112 = vmatpush3.msra.mxu1 %v1886_v63 }
 0x524   : > { %5113 = vmatprep.subr.mxu1 %v1885_v4  ;;  %5139 = vmatpush3.msra.mxu0 %v2166_v16  ;;  %v2172_v16 = vld [vmem:[#allocation5 + $0xa20] sm:$0xff] }
 0x525   : > { %5114 = vmatpush3.msra.mxu1 %v1885_v4  ;;  %5140 = vmatprep.subr.mxu0 %v2165_v17 }
 0x526   : > { %5115 = vmatprep.subr.mxu1 %v1884_v5  ;;  %5141 = vmatpush3.msra.mxu0 %v2165_v17  ;;  %v2171_v17 = vld [vmem:[#allocation5 + $0xa18] sm:$0xff] }
 0x527   : > { %5116 = vmatpush3.msra.mxu1 %v1884_v5  ;;  %5142 = vmatprep.subr.mxu0 %v2164_v18  ;;  %v2182_v5 = vld [vmem:[#allocation5 + $0xa70] sm:$0xff] }
 0x528   : > { %5117 = vmatprep.subr.mxu1 %v1883_v6  ;;  %5143 = vmatpush3.msra.mxu0 %v2164_v18  ;;  %v2170_v18 = vld [vmem:[#allocation5 + $0xa10] sm:$0xff] }
 0x529   : > { %5118 = vmatpush3.msra.mxu1 %v1883_v6  ;;  %5144 = vmatprep.subr.mxu0 %v2163_v19  ;;  %v2181_v6 = vld [vmem:[#allocation5 + $0xa68] sm:$0xff] }
 0x52a   : > { %5119 = vmatprep.subr.mxu1 %v1882_v7  ;;  %5145 = vmatpush3.msra.mxu0 %v2163_v19  ;;  %v2169_v19 = vld [vmem:[#allocation5 + $0xa08] sm:$0xff] }
 0x52b   : > { %5120 = vmatpush3.msra.mxu1 %v1882_v7  ;;  %5146 = vmatprep.subr.mxu0 %v2162_v22  ;;  %v2180_v7 = vld [vmem:[#allocation5 + $0xa60] sm:$0xff] }
 0x52c   : > { %5121 = vmatprep.subr.mxu1 %v1881_v8  ;;  %5147 = vmatpush3.msra.mxu0 %v2162_v22  ;;  %v2490_v22 = vld [vmem:[#allocation9 + $0x1f8] sm:$0xff] }
 0x52d   : > { %5122 = vmatpush3.msra.mxu1 %v1881_v8  ;;  %5148 = vmatprep.subr.mxu0 %v2161_v24  ;;  %v2179_v8 = vld [vmem:[#allocation5 + $0xa58] sm:$0xff] }
 0x52e   : > { %5123 = vmatprep.subr.mxu1 %v1880_v9  ;;  %5149 = vmatpush3.msra.mxu0 %v2161_v24  ;;  %v2488_v24 = vld [vmem:[#allocation9 + $0x1e8] sm:$0xff] }
 0x52f   : > { %5124 = vmatpush3.msra.mxu1 %v1880_v9  ;;  %5150 = vmatprep.subr.mxu0 %v2160_v26 }
 0x530   : > { %5125 = vmatprep.subr.mxu1 %v1879_v10  ;;  %5151 = vmatpush3.msra.mxu0 %v2160_v26  ;;  %v2486_v26 = vld [vmem:[#allocation9 + $0x1d8] sm:$0xff] }
 0x531   : > { %5126 = vmatpush3.msra.mxu1 %v1879_v10  ;;  %5152 = vmatprep.subr.mxu0 %v2159_v28 }
 0x532   : > { %5127 = vmatprep.subr.mxu1 %v1878_v11  ;;  %5153 = vmatpush3.msra.mxu0 %v2159_v28  ;;  %v2484_v28 = vld [vmem:[#allocation9 + $0x1c8] sm:$0xff] }
 0x533   : > { %5128 = vmatpush3.msra.mxu1 %v1878_v11  ;;  %5154 = vmatprep.subr.mxu0 %v2158_v30  ;;  %v2178_v11 = vld [vmem:[#allocation5 + $0xa50] sm:$0xff] }
 0x534   : > { %5129 = vmatprep.subr.mxu1 %v1877_v12  ;;  %5155 = vmatpush3.msra.mxu0 %v2158_v30  ;;  %v2482_v30 = vld [vmem:[#allocation9 + $0x1b8] sm:$0xff] }
 0x535   : > { %5130 = vmatpush3.msra.mxu1 %v1877_v12  ;;  %5156 = vmatprep.subr.mxu0 %v2157_v32  ;;  %v2176_v12 = vld [vmem:[#allocation5 + $0xa40] sm:$0xff] }
 0x536   : > { %5131 = vmatprep.subr.mxu1 %v1876_v13  ;;  %5157 = vmatpush3.msra.mxu0 %v2157_v32  ;;  %v2481_v32 = vld [vmem:[#allocation9 + $0x1b0] sm:$0xff] }
 0x537   : > { %5132 = vmatpush3.msra.mxu1 %v1876_v13  ;;  %5158 = vmatprep.subr.mxu0 %v2156_v33  ;;  %v2175_v13 = vld [vmem:[#allocation5 + $0xa38] sm:$0xff] }
 0x538   : > { %5133 = vmatprep.subr.mxu1 %v1875_v14  ;;  %5159 = vmatpush3.msra.mxu0 %v2156_v33  ;;  %v2456_v33 = vld [vmem:[#allocation9 + $0xf0] sm:$0xff] }
 0x539   : > { %5134 = vmatpush3.msra.mxu1 %v1875_v14  ;;  %5160 = vmatprep.subr.mxu0 %v2155_v34  ;;  %v2174_v14 = vld [vmem:[#allocation5 + $0xa30] sm:$0xff] }
 0x53a   : > { %5136 = vmatmul.mubr.f32.vlgmr.msra.gmra.mxu1 %v1839_v15  ;;  %5173 = vmatprep.subr.mxu1 %v2149_v20  ;;  %v2173_v15 = vld [vmem:[#allocation5 + $0xa28] sm:$0xff] }
 0x53b   : > { %5174 = vmatpush3.msra.mxu1 %v2149_v20  ;;  %5161 = vmatpush3.msra.mxu0 %v2155_v34  ;;  %v2168_v20 = vld [vmem:[#allocation5 + $0xa00] sm:$0xff]  ;;  %v2455_v34 = vld [vmem:[#allocation9 + $0xe8] sm:$0xff] }
 0x53c   : > { %5175 = vmatprep.subr.mxu1 %v2148_v21  ;;  %5162 = vmatprep.subr.mxu0 %v2154_v36 }
 0x53d   : > { %5176 = vmatpush3.msra.mxu1 %v2148_v21  ;;  %5163 = vmatpush3.msra.mxu0 %v2154_v36  ;;  %v2454_v36 = vld [vmem:[#allocation9 + $0xe0] sm:$0xff] }
 0x53e   : > { %5177 = vmatprep.subr.mxu1 %v2147_v23  ;;  %5164 = vmatprep.subr.mxu0 %v2153_v40 }
 0x53f   : > { %5178 = vmatpush3.msra.mxu1 %v2147_v23  ;;  %5165 = vmatpush3.msra.mxu0 %v2153_v40  ;;  %v2489_v23 = vld [vmem:[#allocation9 + $0x1f0] sm:$0xff]  ;;  %v2453_v40 = vld [vmem:[#allocation9 + $0xd8] sm:$0xff] }
 0x540   : > { %5179 = vmatprep.subr.mxu1 %v2146_v25  ;;  %5166 = vmatprep.subr.mxu0 %v2152_v42 }
 0x541   : > { %5180 = vmatpush3.msra.mxu1 %v2146_v25  ;;  %5167 = vmatpush3.msra.mxu0 %v2152_v42  ;;  %v2487_v25 = vld [vmem:[#allocation9 + $0x1e0] sm:$0xff]  ;;  %v2478_v42 = vld [vmem:[#allocation9 + $0x198] sm:$0xff] }
 0x542   : > { %5181 = vmatprep.subr.mxu1 %v2145_v27  ;;  %5168 = vmatprep.subr.mxu0 %v2151_v44 }
 0x543   : > { %5182 = vmatpush3.msra.mxu1 %v2145_v27  ;;  %5169 = vmatpush3.msra.mxu0 %v2151_v44  ;;  %v2485_v27 = vld [vmem:[#allocation9 + $0x1d0] sm:$0xff] }
 0x544   : > { %5183 = vmatprep.subr.mxu1 %v2144_v29  ;;  %5208 = vmatprep.subr.mxu0 %v2183_v46  ;;  %v2477_v44 = vld [vmem:[#allocation9 + $0x190] sm:$0xff] }
 0x545   : > { %5184 = vmatpush3.msra.mxu1 %v2144_v29  ;;  %v2483_v29 = vld [vmem:[#allocation9 + $0x1c0] sm:$0xff] }
 0x546   : > { %5185 = vmatprep.subr.mxu1 %v2143_v31 }
 0x547   : > { %5186 = vmatpush3.msra.mxu1 %v2143_v31  ;;  %v2457_v31 = vld [vmem:[#allocation9 + $0xf8] sm:$0xff] }
 0x548   : > { %5187 = vmatprep.subr.mxu1 %v2142_v35 }
 0x549   : > { %5188 = vmatpush3.msra.mxu1 %v2142_v35  ;;  %v2480_v35 = vld [vmem:[#allocation9 + $0x1a8] sm:$0xff] }
 0x54a   : > { %5189 = vmatprep.subr.mxu1 %v2141_v38 }
 0x54b   : > { %5190 = vmatpush3.msra.mxu1 %v2141_v38  ;;  %v2479_v38 = vld [vmem:[#allocation9 + $0x1a0] sm:$0xff] }
 0x54c   : > { %5191 = vmatprep.subr.mxu1 %v2140_v41 }
 0x54d   : > { %5192 = vmatpush3.msra.mxu1 %v2140_v41  ;;  %v2452_v41 = vld [vmem:[#allocation9 + $0xd0] sm:$0xff] }
 0x54e   : > { %5193 = vmatprep.subr.mxu1 %v2139_v43 }
 0x54f   : > { %5194 = vmatpush3.msra.mxu1 %v2139_v43  ;;  %v2451_v43 = vld [vmem:[#allocation9 + $0xc8] sm:$0xff] }
 0x550   : > { %5195 = vmatprep.subr.mxu1 %v2138_v45 }
 0x551   : > { %5196 = vmatpush3.msra.mxu1 %v2138_v45  ;;  %v2450_v45 = vld [vmem:[#allocation9 + $0xc0] sm:$0xff] }
 0x552   : > { %5197 = vmatprep.subr.mxu1 %v2137_v47 }
 0x553   : > { %5198 = vmatpush3.msra.mxu1 %v2137_v47  ;;  %v2449_v47 = vld [vmem:[#allocation9 + $0xb8] sm:$0xff] }
 0x554   : > { %5199 = vmatprep.subr.mxu1 %v2136_v48 }
 0x555   : > { %5200 = vmatpush3.msra.mxu1 %v2136_v48  ;;  %v2475_v48 = vld [vmem:[#allocation9 + $0x180] sm:$0xff] }
 0x556   : > { %5201 = vmatprep.subr.mxu1 %v2135_v50 }
 0x557   : > { %5202 = vmatpush3.msra.mxu1 %v2135_v50  ;;  %v2448_v50 = vld [vmem:[#allocation9 + $0xb0] sm:$0xff] }
 0x558   : > { %5203 = vmatprep.subr.mxu1 %v2134_v52 }
 0x559   : > { %5204 = vmatpush3.msra.mxu1 %v2134_v52  ;;  %v2474_v52 = vld [vmem:[#allocation9 + $0x178] sm:$0xff] }
 0x55a   : > { %2525 = vmatprep.subr.mxu1 %v2490_v22  ;;  %v2429_v22 = vld [vmem:[#allocation9 + $0x18] sm:$0xff] }
 0x5da   : > { %v5067_v53 = vpop.f32.mrf.mxu1 }
 0x5dc   : > { %v1958_v55 = vpop.f32.mrf.mxu1 }
 0x5e3   : > { %v5102_v54 = vpop.f32.mrf.mxu0 }
 0x5e4   : > { %v2039_v57 = vadd.f32 %v5102_v54, %v5067_v53  ;;  %v2447_v53 = vld [vmem:[#allocation9 + $0xa8] sm:$0xff]  ;;  %v2473_v54 = vld [vmem:[#allocation9 + $0x170] sm:$0xff] }
 0x5e5   : > { %v2033_v56 = vpop.f32.mrf.mxu0 }
 0x5e6   : > { %v2034_v60 = vadd.f32 %v2033_v56, %v1958_v55  ;;  %v2446_v55 = vld [vmem:[#allocation9 + $0xa0] sm:$0xff]  ;;  %v2472_v56 = vld [vmem:[#allocation9 + $0x168] sm:$0xff] }
 0x5fa   : > { %v5137_v59 = vpop.f32.mrf.mxu1 }
 0x5fb   : > { %v2118_v61 = vadd.f32 %v5137_v59, %v2039_v57  ;;  %v2445_v57 = vld [vmem:[#allocation9 + $0x98] sm:$0xff]  ;;  %v2444_v59 = vld [vmem:[#allocation9 + $0x90] sm:$0xff] }
 0x5fc   : > { %v2108_v62 = vpop.f32.mrf.mxu1 }
 0x5fd   : > { %v2124_v63 = vadd.f32 %v3893_v58, %v2118_v61  ;;  %v2117_v1 = vadd.f32 %v2108_v62, %v2034_v60  ;;  %v2470_v60 = vld [vmem:[#allocation9 + $0x158] sm:$0xff]  ;;  %v2443_v61 = vld [vmem:[#allocation9 + $0x88] sm:$0xff]  ;;  %v2469_v62 = vld [vmem:[#allocation9 + $0x150] sm:$0xff] }
 0x5ff   : > { %v2126_v2 = vadd.f32 %v2124_v63, %v5712_v49  ;;  %v2123_v3 = vadd.f32 %v3893_v58, %v2117_v1  ;;  %v2471_v58 = vld [vmem:[#allocation9 + $0x160] sm:$0xff]  ;;  %v2468_v1 = vld [vmem:[#allocation9 + $0x148] sm:$0xff] }
 0x600   : > { %v2442_v63 = vld [vmem:[#allocation9 + $0x80] sm:$0xff] }
 0x601   : > { %2128 = vst [vmem:[#allocation2 + $0x9] sm:$0xff] %v2126_v2  ;;  %v2125_v4 = vadd.f32 %v2123_v3, %v5716_v51  ;;  %v2177_v51 = vld [vmem:[#allocation5 + $0xa48] sm:$0xff]  ;;  %v2466_v3 = vld [vmem:[#allocation9 + $0x138] sm:$0xff] }
 0x603   : > { %5170 = vmatprep.mubr.f32.mxu0 %v2125_v4  ;;  %2127 = vst [vmem:[#allocation2 + $0x1] sm:$0xff] %v2125_v4  ;;  %v2441_v4 = vld [vmem:[#allocation9 + $0x78] sm:$0xff] }
 0x604   : > { %5171 = vmatmul.mubr.f32.vlgmr.msra.gmra.mxu0 %v2126_v2  ;;  %v2467_v2 = vld [vmem:[#allocation9 + $0x140] sm:$0xff] }
 0x605   : > { %5209 = vmatpush3.msra.mxu0 %v2183_v46  ;;  %v2476_v46 = vld [vmem:[#allocation9 + $0x188] sm:$0xff] }
 0x606   : > { %5210 = vmatprep.subr.mxu0 %v2182_v5 }
 0x607   : > { %5211 = vmatpush3.msra.mxu0 %v2182_v5  ;;  %v2465_v5 = vld [vmem:[#allocation9 + $0x130] sm:$0xff] }
 0x608   : > { %5212 = vmatprep.subr.mxu0 %v2181_v6  ;;  %v2132_v21 = vld [vmem:[#allocation2 + $0xa] sm:$0xff] }
 0x609   : > { %5213 = vmatpush3.msra.mxu0 %v2181_v6  ;;  %v2440_v6 = vld [vmem:[#allocation9 + $0x70] sm:$0xff] }
 0x60a   : > { %5214 = vmatprep.subr.mxu0 %v2180_v7  ;;  %v2129_v9 = vld [vmem:[#allocation2] sm:$0xff]  ;;  %v2130_v49 = vld [vmem:[#allocation2 + $0x8] sm:$0xff] }
 0x60b   : > { %v2131_v10 = vld [vmem:[#allocation2 + $0x2] sm:$0xff]  ;;  %5215 = vmatpush3.msra.mxu0 %v2180_v7  ;;  %5205 = vmatprep.mubr.f32.mxu1 %v2129_v9 }
 0x60c   : > { %5216 = vmatprep.subr.mxu0 %v2179_v8  ;;  %5240 = vmatprep.mubr.f32.mxu0 %v2131_v10  ;;  %v2464_v7 = vld [vmem:[#allocation9 + $0x128] sm:$0xff]  ;;  %v2463_v9 = vld [vmem:[#allocation9 + $0x120] sm:$0xff] }
 0x60d   : > { %5206 = vmatmul.mubr.f32.vlgmr.msra.gmra.mxu1 %v2130_v49  ;;  %5217 = vmatpush3.msra.mxu0 %v2179_v8  ;;  %v2439_v8 = vld [vmem:[#allocation9 + $0x68] sm:$0xff]  ;;  %v2438_v10 = vld [vmem:[#allocation9 + $0x60] sm:$0xff]  ;;  %v2462_v49 = vld [vmem:[#allocation9 + $0x118] sm:$0xff] }
 0x60e   : > { %5218 = vmatprep.subr.mxu0 %v2178_v11  ;;  %2589 = vmatprep.mubr.f32.mxu1 %v5539_v0 }
 0x60f   : > { %5219 = vmatpush3.msra.mxu0 %v2178_v11  ;;  %2526 = vmatpush1.msra.mxu1 %v2489_v23  ;;  %v2437_v11 = vld [vmem:[#allocation9 + $0x58] sm:$0xff]  ;;  %v2428_v23 = vld [vmem:[#allocation9 + $0x10] sm:$0xff] }
 0x610   : > { %5220 = vmatprep.subr.mxu0 %v2177_v51  ;;  %2527 = vmatprep.subr.mxu1 %v2488_v24  ;;  %v2427_v24 = vld [vmem:[#allocation9 + $0x8] sm:$0xff] }
 0x611   : > { %5221 = vmatpush3.msra.mxu0 %v2177_v51  ;;  %2528 = vmatpush1.msra.mxu1 %v2487_v25  ;;  %v2461_v51 = vld [vmem:[#allocation9 + $0x110] sm:$0xff]  ;;  %v2426_v25 = vld [vmem:[#allocation9] sm:$0xff] }
 0x612   : > { %5222 = vmatprep.subr.mxu0 %v2176_v12  ;;  %2529 = vmatprep.subr.mxu1 %v2486_v26  ;;  %v2840_v26 = vld [vmem:[#allocation9 + $0x4f8] sm:$0xff] }
 0x613   : > { %5223 = vmatpush3.msra.mxu0 %v2176_v12  ;;  %2530 = vmatpush1.msra.mxu1 %v2485_v27  ;;  %v2436_v12 = vld [vmem:[#allocation9 + $0x50] sm:$0xff] }
 0x614   : > { %5224 = vmatprep.subr.mxu0 %v2175_v13  ;;  %2531 = vmatprep.subr.mxu1 %v2484_v28 }
 0x615   : > { %5225 = vmatpush3.msra.mxu0 %v2175_v13  ;;  %2532 = vmatpush1.msra.mxu1 %v2483_v29  ;;  %v2460_v13 = vld [vmem:[#allocation9 + $0x108] sm:$0xff] }
 0x616   : > { %5226 = vmatprep.subr.mxu0 %v2174_v14  ;;  %2533 = vmatprep.subr.mxu1 %v2482_v30 }
 0x617   : > { %5227 = vmatpush3.msra.mxu0 %v2174_v14  ;;  %2534 = vmatpush1.msra.mxu1 %v2481_v32  ;;  %v2435_v14 = vld [vmem:[#allocation9 + $0x48] sm:$0xff]  ;;  %v3894_v32 = vld [vmem:[#allocation7 + $0x6] ss:$0 sm:$0xff] }
 0x618   : > { %5228 = vmatprep.subr.mxu0 %v2173_v15  ;;  %2535 = vmatprep.subr.mxu1 %v2480_v35 }
 0x619   : > { %5229 = vmatpush3.msra.mxu0 %v2173_v15  ;;  %2536 = vmatpush1.msra.mxu1 %v2479_v38  ;;  %v2459_v15 = vld [vmem:[#allocation9 + $0x100] sm:$0xff] }
 0x61a   : > { %5230 = vmatprep.subr.mxu0 %v2172_v16  ;;  %2537 = vmatprep.subr.mxu1 %v2478_v42 }
 0x61b   : > { %5231 = vmatpush3.msra.mxu0 %v2172_v16  ;;  %2538 = vmatpush1.msra.mxu1 %v2477_v44  ;;  %v2434_v16 = vld [vmem:[#allocation9 + $0x40] sm:$0xff]  ;;  %v2522_v44 = vld [vmem:[#allocation9 + $0x2f0] sm:$0xff] }
 0x61c   : > { %5232 = vmatprep.subr.mxu0 %v2171_v17  ;;  %2539 = vmatprep.subr.mxu1 %v2476_v46  ;;  %v2520_v46 = vld [vmem:[#allocation9 + $0x2e0] sm:$0xff] }
 0x61d   : > { %5233 = vmatpush3.msra.mxu0 %v2171_v17  ;;  %2540 = vmatpush1.msra.mxu1 %v2475_v48  ;;  %v2433_v17 = vld [vmem:[#allocation9 + $0x38] sm:$0xff]  ;;  %v2518_v48 = vld [vmem:[#allocation9 + $0x2d0] sm:$0xff] }
 0x61e   : > { %5234 = vmatprep.subr.mxu0 %v2170_v18  ;;  %2541 = vmatprep.subr.mxu1 %v2474_v52  ;;  %v2514_v52 = vld [vmem:[#allocation9 + $0x2b0] sm:$0xff] }
 0x61f   : > { %5235 = vmatpush3.msra.mxu0 %v2170_v18  ;;  %2542 = vmatpush1.msra.mxu1 %v2473_v54  ;;  %v2523_v18 = vld [vmem:[#allocation9 + $0x2f8] sm:$0xff] }
 0x620   : > { %5236 = vmatprep.subr.mxu0 %v2169_v19  ;;  %2543 = vmatprep.subr.mxu1 %v2472_v56  ;;  %v2838_v56 = vld [vmem:[#allocation9 + $0x4e8] sm:$0xff] }
 0x621   : > { %5237 = vmatpush3.msra.mxu0 %v2169_v19  ;;  %2544 = vmatpush1.msra.mxu1 %v2471_v58  ;;  %v2432_v19 = vld [vmem:[#allocation9 + $0x30] sm:$0xff]  ;;  %v2837_v58 = vld [vmem:[#allocation9 + $0x4e0] sm:$0xff] }
 0x622   : > { %5238 = vmatprep.subr.mxu0 %v2168_v20  ;;  %2545 = vmatprep.subr.mxu1 %v2470_v60  ;;  %v2836_v60 = vld [vmem:[#allocation9 + $0x4d8] sm:$0xff] }
 0x623   : > { %5239 = vmatpush3.msra.mxu0 %v2168_v20  ;;  %2546 = vmatpush1.msra.mxu1 %v2469_v62  ;;  %v2431_v20 = vld [vmem:[#allocation9 + $0x28] sm:$0xff]  ;;  %v2835_v62 = vld [vmem:[#allocation9 + $0x4d0] sm:$0xff] }
 0x624   : > { %5241 = vmatmul.mubr.f32.vlgmr.msra.gmra.mxu0 %v2132_v21  ;;  %2602 = vmatprep.subr.mxu0 %v2457_v31  ;;  %v2430_v21 = vld [vmem:[#allocation9 + $0x20] sm:$0xff] }
 0x625   : > { %2666 = vmatprep.mubr.f32.mxu0 %v5539_v0  ;;  %2603 = vmatpush1.msra.mxu0 %v2456_v33 }
 0x626   : > { %2604 = vmatprep.subr.mxu0 %v2455_v34  ;;  %2547 = vmatprep.subr.mxu1 %v2468_v1  ;;  %v2509_v1 = vld [vmem:[#allocation9 + $0x288] sm:$0xff] }
 0x627   : > { %2605 = vmatpush1.msra.mxu0 %v2454_v36  ;;  %2548 = vmatpush1.msra.mxu1 %v2467_v2  ;;  %v2834_v2 = vld [vmem:[#allocation9 + $0x4c8] sm:$0xff] }
 0x628   : > { %2606 = vmatprep.subr.mxu0 %v2453_v40  ;;  %2549 = vmatprep.subr.mxu1 %v2466_v3  ;;  %v2508_v3 = vld [vmem:[#allocation9 + $0x280] sm:$0xff] }
 0x629   : > { %2607 = vmatpush1.msra.mxu0 %v2452_v41  ;;  %2550 = vmatpush1.msra.mxu1 %v2465_v5  ;;  %v2507_v5 = vld [vmem:[#allocation9 + $0x278] sm:$0xff] }
 0x62a   : > { %2608 = vmatprep.subr.mxu0 %v2451_v43  ;;  %2551 = vmatprep.subr.mxu1 %v2464_v7  ;;  %v2506_v7 = vld [vmem:[#allocation9 + $0x270] sm:$0xff] }
 0x62b   : > { %2609 = vmatpush1.msra.mxu0 %v2450_v45  ;;  %2552 = vmatpush1.msra.mxu1 %v2463_v9  ;;  %v2521_v45 = vld [vmem:[#allocation9 + $0x2e8] sm:$0xff] }
 0x62c   : > { %2610 = vmatprep.subr.mxu0 %v2449_v47  ;;  %2553 = vmatprep.subr.mxu1 %v2462_v49  ;;  %v2519_v47 = vld [vmem:[#allocation9 + $0x2d8] sm:$0xff]  ;;  %v2505_v9 = vld [vmem:[#allocation9 + $0x268] sm:$0xff]  ;;  %v2504_v49 = vld [vmem:[#allocation9 + $0x260] sm:$0xff] }
 0x62d   : > { %2611 = vmatpush1.msra.mxu0 %v2448_v50  ;;  %2554 = vmatpush1.msra.mxu1 %v2461_v51  ;;  %v2515_v50 = vld [vmem:[#allocation9 + $0x2b8] sm:$0xff] }
 0x62e   : > { %2612 = vmatprep.subr.mxu0 %v2447_v53  ;;  %2555 = vmatprep.subr.mxu1 %v2460_v13  ;;  %v2839_v53 = vld [vmem:[#allocation9 + $0x4f0] sm:$0xff]  ;;  %v2503_v51 = vld [vmem:[#allocation9 + $0x258] sm:$0xff] }
 0x62f   : > { %2613 = vmatpush1.msra.mxu0 %v2446_v55  ;;  %2556 = vmatpush1.msra.mxu1 %v2459_v15  ;;  %v2513_v55 = vld [vmem:[#allocation9 + $0x2a8] sm:$0xff]  ;;  %v2502_v13 = vld [vmem:[#allocation9 + $0x250] sm:$0xff] }
 0x630   : > { %2614 = vmatprep.subr.mxu0 %v2445_v57  ;;  %2679 = vmatprep.subr.mxu1 %v2523_v18  ;;  %v2512_v57 = vld [vmem:[#allocation9 + $0x2a0] sm:$0xff]  ;;  %v2501_v15 = vld [vmem:[#allocation9 + $0x248] sm:$0xff] }
 0x631   : > { %2615 = vmatpush1.msra.mxu0 %v2444_v59  ;;  %v2511_v59 = vld [vmem:[#allocation9 + $0x298] sm:$0xff]  ;;  %v2825_v18 = vld [vmem:[#allocation9 + $0x480] sm:$0xff] }
 0x632   : > { %2616 = vmatprep.subr.mxu0 %v2443_v61  ;;  %v2510_v61 = vld [vmem:[#allocation9 + $0x290] sm:$0xff] }
 0x633   : > { %2617 = vmatpush1.msra.mxu0 %v2442_v63 }
 0x634   : > { %2618 = vmatprep.subr.mxu0 %v2441_v4  ;;  %v2833_v4 = vld [vmem:[#allocation9 + $0x4c0] sm:$0xff] }
 0x635   : > { %2619 = vmatpush1.msra.mxu0 %v2440_v6  ;;  %v2832_v6 = vld [vmem:[#allocation9 + $0x4b8] sm:$0xff] }
 0x636   : > { %2620 = vmatprep.subr.mxu0 %v2439_v8  ;;  %v2831_v8 = vld [vmem:[#allocation9 + $0x4b0] sm:$0xff] }
 0x637   : > { %2621 = vmatpush1.msra.mxu0 %v2438_v10  ;;  %v2830_v10 = vld [vmem:[#allocation9 + $0x4a8] sm:$0xff] }
 0x638   : > { %2622 = vmatprep.subr.mxu0 %v2437_v11  ;;  %v2829_v11 = vld [vmem:[#allocation9 + $0x4a0] sm:$0xff] }
 0x639   : > { %2623 = vmatpush1.msra.mxu0 %v2436_v12  ;;  %v2828_v12 = vld [vmem:[#allocation9 + $0x498] sm:$0xff] }
 0x63a   : > { %2624 = vmatprep.subr.mxu0 %v2435_v14  ;;  %v2827_v14 = vld [vmem:[#allocation9 + $0x490] sm:$0xff] }
 0x63b   : > { %2625 = vmatpush1.msra.mxu0 %v2434_v16  ;;  %v2826_v16 = vld [vmem:[#allocation9 + $0x488] sm:$0xff] }
 0x63c   : > { %2626 = vmatprep.subr.mxu0 %v2433_v17  ;;  %v2500_v17 = vld [vmem:[#allocation9 + $0x240] sm:$0xff] }
 0x63d   : > { %2627 = vmatpush1.msra.mxu0 %v2432_v19  ;;  %v2499_v19 = vld [vmem:[#allocation9 + $0x238] sm:$0xff] }
 0x63e   : > { %2628 = vmatprep.subr.mxu0 %v2431_v20  ;;  %v2824_v20 = vld [vmem:[#allocation9 + $0x478] sm:$0xff] }
 0x63f   : > { %2629 = vmatpush1.msra.mxu0 %v2430_v21  ;;  %v2498_v21 = vld [vmem:[#allocation9 + $0x230] sm:$0xff] }
 0x640   : > { %2630 = vmatprep.subr.mxu0 %v2429_v22  ;;  %v2823_v22 = vld [vmem:[#allocation9 + $0x470] sm:$0xff] }
 0x641   : > { %2631 = vmatpush1.msra.mxu0 %v2428_v23  ;;  %v2497_v23 = vld [vmem:[#allocation9 + $0x228] sm:$0xff] }
 0x642   : > { %2632 = vmatprep.subr.mxu0 %v2427_v24  ;;  %v2822_v24 = vld [vmem:[#allocation9 + $0x468] sm:$0xff] }
 0x643   : > { %2633 = vmatpush1.msra.mxu0 %v2426_v25  ;;  %v2496_v25 = vld [vmem:[#allocation9 + $0x220] sm:$0xff] }
 0x644   : > { %2876 = vmatprep.subr.mxu0 %v2840_v26  ;;  %v2821_v26 = vld [vmem:[#allocation9 + $0x460] sm:$0xff] }
 0x6c4   : > { %v5172_v27 = vpop.f32.mrf.mxu0 }
 0x6c6   : > { %v2251_v29 = vpop.f32.mrf.mxu0 }
 0x6cd   : > { %v5207_v28 = vpop.f32.mrf.mxu1 }
 0x6ce   : > { %v2332_v31 = vadd.f32 %v5207_v28, %v5172_v27  ;;  %v2495_v27 = vld [vmem:[#allocation9 + $0x218] sm:$0xff] }
 0x6cf   : > { %v2326_v30 = vpop.f32.mrf.mxu1  ;;  %v2820_v28 = vld [vmem:[#allocation9 + $0x458] sm:$0xff] }
 0x6d0   : > { %v2327_v34 = vadd.f32 %v2326_v30, %v2251_v29  ;;  %v2494_v29 = vld [vmem:[#allocation9 + $0x210] sm:$0xff] }
 0x6d1   : > { %v2819_v30 = vld [vmem:[#allocation9 + $0x450] sm:$0xff] }
 0x6e4   : > { %v5242_v33 = vpop.f32.mrf.mxu0 }
 0x6e5   : > { %v2411_v35 = vadd.f32 %v5242_v33, %v2332_v31  ;;  %v2493_v31 = vld [vmem:[#allocation9 + $0x208] sm:$0xff]  ;;  %v2492_v33 = vld [vmem:[#allocation9 + $0x200] sm:$0xff] }
 0x6e6   : > { %v2401_v36 = vpop.f32.mrf.mxu0 }
 0x6e7   : > { %v2417_v38 = vadd.f32 %v3894_v32, %v2411_v35  ;;  %v2410_v40 = vadd.f32 %v2401_v36, %v2327_v34  ;;  %v2817_v34 = vld [vmem:[#allocation9 + $0x440] sm:$0xff]  ;;  %v2816_v35 = vld [vmem:[#allocation9 + $0x438] sm:$0xff] }
 0x6e8   : > { %v2807_v36 = vld [vmem:[#allocation9 + $0x3f8] sm:$0xff] }
 0x6e9   : > { %v2416_v41 = vadd.f32 %v3894_v32, %v2410_v40  ;;  %v5726_v42 = vadd.f32 %v2417_v38, %v5703_v37  ;;  %v2517_v37 = vld [vmem:[#allocation9 + $0x2c8] sm:$0xff]  ;;  %v2815_v38 = vld [vmem:[#allocation9 + $0x430] sm:$0xff] }
 0x6ea   : > { %v2818_v32 = vld [vmem:[#allocation9 + $0x448] sm:$0xff] }
 0x6eb   : > { %v5729_v43 = vadd.f32 %v2416_v41, %v5706_v39  ;;  %2421 = vst [vmem:[#allocation2 + $0x9] sm:$0xff] %v5726_v42  ;;  %v2516_v39 = vld [vmem:[#allocation9 + $0x2c0] sm:$0xff]  ;;  %v2806_v41 = vld [vmem:[#allocation9 + $0x3f0] sm:$0xff] }
 0x6ed   : > { %2420 = vst [vmem:[#allocation2 + $0x1] sm:$0xff] %v5729_v43  ;;  %2590 = vmatmul.mubr.f32.vlgmr.msra.gmra.mxu1 %v5729_v43 }
 0x6ee   : > { %2680 = vmatpush1.msra.mxu1 %v2522_v44  ;;  %2595 = vmatprep.mubr.f32.mxu1 %v5539_v0  ;;  %v2814_v44 = vld [vmem:[#allocation9 + $0x428] sm:$0xff] }
 0x6ef   : > { %2681 = vmatprep.subr.mxu1 %v2521_v45  ;;  %v2805_v45 = vld [vmem:[#allocation9 + $0x3e8] sm:$0xff] }
 0x6f0   : > { %2682 = vmatpush1.msra.mxu1 %v2520_v46  ;;  %v2813_v46 = vld [vmem:[#allocation9 + $0x420] sm:$0xff] }
 0x6f1   : > { %2683 = vmatprep.subr.mxu1 %v2519_v47  ;;  %2596 = vmatmul.mubr.f32.gmra.mxu1 %v5726_v42  ;;  %v2804_v47 = vld [vmem:[#allocation9 + $0x3e0] sm:$0xff] }
 0x6f2   : > { %2684 = vmatpush1.msra.mxu1 %v2518_v48  ;;  %2743 = vmatprep.mubr.f32.mxu1 %v5539_v0  ;;  %v2812_v48 = vld [vmem:[#allocation9 + $0x418] sm:$0xff] }
 0x6f3   : > { %2685 = vmatprep.subr.mxu1 %v2517_v37  ;;  %v2803_v37 = vld [vmem:[#allocation9 + $0x3d8] sm:$0xff] }
 0x6f4   : > { %2686 = vmatpush1.msra.mxu1 %v2516_v39  ;;  %v5737_v54 = vld [vmem:[#allocation2] sm:$0xff]  ;;  %v5741_v63 = vld [vmem:[#allocation2 + $0x8] sm:$0xff]  ;;  %v2811_v39 = vld [vmem:[#allocation9 + $0x410] sm:$0xff] }
 0x6f5   : > { %2687 = vmatprep.subr.mxu1 %v2515_v50  ;;  %2667 = vmatmul.mubr.f32.vlgmr.msra.gmra.mxu0 %v5737_v54  ;;  %v5744_v40 = vld [vmem:[#allocation2 + $0x2] sm:$0xff]  ;;  %v5748_v50 = vld [vmem:[#allocation2 + $0xa] sm:$0xff] }
 0x6f6   : > { %2688 = vmatpush1.msra.mxu1 %v2514_v52  ;;  %2877 = vmatpush1.msra.mxu0 %v2839_v53  ;;  %v2802_v52 = vld [vmem:[#allocation9 + $0x3d0] sm:$0xff]  ;;  %v2810_v53 = vld [vmem:[#allocation9 + $0x408] sm:$0xff] }
 0x6f7   : > { %2689 = vmatprep.subr.mxu1 %v2513_v55  ;;  %2878 = vmatprep.subr.mxu0 %v2838_v56  ;;  %v2801_v55 = vld [vmem:[#allocation9 + $0x3c8] sm:$0xff]  ;;  %v2809_v56 = vld [vmem:[#allocation9 + $0x400] sm:$0xff] }
 0x6f8   : > { %2690 = vmatpush1.msra.mxu1 %v2512_v57  ;;  %2879 = vmatpush1.msra.mxu0 %v2837_v58  ;;  %v2800_v57 = vld [vmem:[#allocation9 + $0x3c0] sm:$0xff]  ;;  %v2799_v58 = vld [vmem:[#allocation9 + $0x3b8] sm:$0xff] }
 0x6f9   : > { %2672 = vmatprep.mubr.f32.mxu0 %v5539_v0  ;;  %2691 = vmatprep.subr.mxu1 %v2511_v59  ;;  %v2873_v59 = vld [vmem:[#allocation9 + $0x5f8] sm:$0xff] }
 0x6fa   : > { %2880 = vmatprep.subr.mxu0 %v2836_v60  ;;  %2673 = vmatmul.mubr.f32.gmra.mxu0 %v5741_v63  ;;  %v2798_v60 = vld [vmem:[#allocation9 + $0x3b0] sm:$0xff] }
 0x6fb   : > { %2692 = vmatpush1.msra.mxu1 %v2510_v61  ;;  %2881 = vmatpush1.msra.mxu0 %v2835_v62  ;;  %v2872_v61 = vld [vmem:[#allocation9 + $0x5f0] sm:$0xff]  ;;  %v2797_v62 = vld [vmem:[#allocation9 + $0x3a8] sm:$0xff] }
 0x6fc   : > { %2693 = vmatprep.subr.mxu1 %v2509_v1  ;;  %2882 = vmatprep.subr.mxu0 %v2834_v2  ;;  %v2871_v1 = vld [vmem:[#allocation9 + $0x5e8] sm:$0xff]  ;;  %v2796_v2 = vld [vmem:[#allocation9 + $0x3a0] sm:$0xff] }
 0x6fd   : > { %2694 = vmatpush1.msra.mxu1 %v2508_v3  ;;  %2883 = vmatpush1.msra.mxu0 %v2833_v4  ;;  %v2870_v3 = vld [vmem:[#allocation9 + $0x5e0] sm:$0xff]  ;;  %v2795_v4 = vld [vmem:[#allocation9 + $0x398] sm:$0xff] }
 0x6fe   : > { %2695 = vmatprep.subr.mxu1 %v2507_v5  ;;  %2884 = vmatprep.subr.mxu0 %v2832_v6  ;;  %v2869_v5 = vld [vmem:[#allocation9 + $0x5d8] sm:$0xff]  ;;  %v2794_v6 = vld [vmem:[#allocation9 + $0x390] sm:$0xff] }
 0x6ff   : > { %2696 = vmatpush1.msra.mxu1 %v2506_v7  ;;  %2885 = vmatpush1.msra.mxu0 %v2831_v8  ;;  %v2868_v7 = vld [vmem:[#allocation9 + $0x5d0] sm:$0xff]  ;;  %v2793_v8 = vld [vmem:[#allocation9 + $0x388] sm:$0xff] }
 0x700   : > { %2697 = vmatprep.subr.mxu1 %v2505_v9  ;;  %2886 = vmatprep.subr.mxu0 %v2830_v10  ;;  %v2792_v9 = vld [vmem:[#allocation9 + $0x380] sm:$0xff] }
 0x701   : > { %2698 = vmatpush1.msra.mxu1 %v2504_v49  ;;  %2887 = vmatpush1.msra.mxu0 %v2829_v11  ;;  %v2866_v10 = vld [vmem:[#allocation9 + $0x5c0] sm:$0xff]  ;;  %v2791_v49 = vld [vmem:[#allocation9 + $0x378] sm:$0xff] }
 0x702   : > { %2699 = vmatprep.subr.mxu1 %v2503_v51  ;;  %2888 = vmatprep.subr.mxu0 %v2828_v12  ;;  %v2865_v11 = vld [vmem:[#allocation9 + $0x5b8] sm:$0xff]  ;;  %v2790_v51 = vld [vmem:[#allocation9 + $0x370] sm:$0xff] }
 0x703   : > { %2700 = vmatpush1.msra.mxu1 %v2502_v13  ;;  %2889 = vmatpush1.msra.mxu0 %v2827_v14  ;;  %v2864_v12 = vld [vmem:[#allocation9 + $0x5b0] sm:$0xff]  ;;  %v2789_v13 = vld [vmem:[#allocation9 + $0x368] sm:$0xff] }
 0x704   : > { %2701 = vmatprep.subr.mxu1 %v2501_v15  ;;  %2890 = vmatprep.subr.mxu0 %v2826_v16  ;;  %v2863_v14 = vld [vmem:[#allocation9 + $0x5a8] sm:$0xff]  ;;  %v2788_v15 = vld [vmem:[#allocation9 + $0x360] sm:$0xff]  ;;  %v2787_v16 = vld [vmem:[#allocation9 + $0x358] sm:$0xff] }
 0x705   : > { %2702 = vmatpush1.msra.mxu1 %v2500_v17  ;;  %2891 = vmatpush1.msra.mxu0 %v2825_v18  ;;  %v2861_v17 = vld [vmem:[#allocation9 + $0x598] sm:$0xff]  ;;  %v2786_v18 = vld [vmem:[#allocation9 + $0x350] sm:$0xff] }
 0x706   : > { %2703 = vmatprep.subr.mxu1 %v2499_v19  ;;  %2892 = vmatprep.subr.mxu0 %v2824_v20  ;;  %v2860_v19 = vld [vmem:[#allocation9 + $0x590] sm:$0xff]  ;;  %v2785_v20 = vld [vmem:[#allocation9 + $0x348] sm:$0xff] }
 0x707   : > { %2704 = vmatpush1.msra.mxu1 %v2498_v21  ;;  %2893 = vmatpush1.msra.mxu0 %v2823_v22  ;;  %v2859_v21 = vld [vmem:[#allocation9 + $0x588] sm:$0xff]  ;;  %v2784_v22 = vld [vmem:[#allocation9 + $0x340] sm:$0xff] }
 0x708   : > { %2705 = vmatprep.subr.mxu1 %v2497_v23  ;;  %2894 = vmatprep.subr.mxu0 %v2822_v24  ;;  %v2858_v23 = vld [vmem:[#allocation9 + $0x580] sm:$0xff]  ;;  %v2783_v24 = vld [vmem:[#allocation9 + $0x338] sm:$0xff] }
 0x709   : > { %2706 = vmatpush1.msra.mxu1 %v2496_v25  ;;  %2895 = vmatpush1.msra.mxu0 %v2821_v26  ;;  %v2857_v25 = vld [vmem:[#allocation9 + $0x578] sm:$0xff]  ;;  %v2782_v26 = vld [vmem:[#allocation9 + $0x330] sm:$0xff] }
 0x70a   : > { %2707 = vmatprep.subr.mxu1 %v2495_v27  ;;  %2896 = vmatprep.subr.mxu0 %v2820_v28  ;;  %v2856_v27 = vld [vmem:[#allocation9 + $0x570] sm:$0xff]  ;;  %v2781_v28 = vld [vmem:[#allocation9 + $0x328] sm:$0xff] }
 0x70b   : > { %2708 = vmatpush1.msra.mxu1 %v2494_v29  ;;  %2897 = vmatpush1.msra.mxu0 %v2819_v30  ;;  %v2855_v29 = vld [vmem:[#allocation9 + $0x568] sm:$0xff]  ;;  %v2780_v30 = vld [vmem:[#allocation9 + $0x320] sm:$0xff] }
 0x70c   : > { %2709 = vmatprep.subr.mxu1 %v2493_v31  ;;  %2898 = vmatprep.subr.mxu0 %v2818_v32  ;;  %v2854_v31 = vld [vmem:[#allocation9 + $0x560] sm:$0xff]  ;;  %v2779_v32 = vld [vmem:[#allocation9 + $0x318] sm:$0xff] }
 0x70d   : > { %2710 = vmatpush1.msra.mxu1 %v2492_v33  ;;  %2899 = vmatpush1.msra.mxu0 %v2817_v34  ;;  %v2853_v33 = vld [vmem:[#allocation9 + $0x558] sm:$0xff]  ;;  %v2778_v34 = vld [vmem:[#allocation9 + $0x310] sm:$0xff] }
 0x70e   : > { %2744 = vmatmul.mubr.f32.vlgmr.msra.gmra.mxu1 %v5744_v40  ;;  %2900 = vmatprep.subr.mxu0 %v2816_v35  ;;  %v2852_v35 = vld [vmem:[#allocation9 + $0x550] sm:$0xff] }
 0x70f   : > { %2953 = vmatprep.subr.mxu1 %v2807_v36  ;;  %2901 = vmatpush1.msra.mxu0 %v2815_v38  ;;  %v2777_v36 = vld [vmem:[#allocation9 + $0x308] sm:$0xff] }
 0x710   : > { %2954 = vmatpush1.msra.mxu1 %v2806_v41  ;;  %2902 = vmatprep.subr.mxu0 %v2814_v44  ;;  %v2851_v38 = vld [vmem:[#allocation9 + $0x548] sm:$0xff]  ;;  %v2776_v41 = vld [vmem:[#allocation9 + $0x300] sm:$0xff] }
 0x711   : > { %2955 = vmatprep.subr.mxu1 %v2805_v45  ;;  %2749 = vmatprep.mubr.f32.mxu1 %v5539_v0  ;;  %v2850_v44 = vld [vmem:[#allocation9 + $0x540] sm:$0xff]  ;;  %v2849_v45 = vld [vmem:[#allocation9 + $0x538] sm:$0xff] }
 0x712   : > { %2903 = vmatpush1.msra.mxu0 %v2813_v46  ;;  %2956 = vmatpush1.msra.mxu1 %v2804_v47  ;;  %v2848_v46 = vld [vmem:[#allocation9 + $0x530] sm:$0xff]  ;;  %v2847_v47 = vld [vmem:[#allocation9 + $0x528] sm:$0xff] }
 0x713   : > { %2750 = vmatmul.mubr.f32.gmra.mxu1 %v5748_v50  ;;  %2904 = vmatprep.subr.mxu0 %v2812_v48  ;;  %v2846_v48 = vld [vmem:[#allocation9 + $0x520] sm:$0xff] }
 0x714   : > { %2957 = vmatprep.subr.mxu1 %v2803_v37  ;;  %2905 = vmatpush1.msra.mxu0 %v2811_v39  ;;  %v2845_v37 = vld [vmem:[#allocation9 + $0x518] sm:$0xff] }
 0x715   : > { %2958 = vmatpush1.msra.mxu1 %v2802_v52  ;;  %2906 = vmatprep.subr.mxu0 %v2810_v53  ;;  %v5758_v39 = vld [vmem:[#allocation12 + $0x1f8] sm:$0xff]  ;;  %v2844_v52 = vld [vmem:[#allocation9 + $0x510] sm:$0xff]  ;;  %v2843_v53 = vld [vmem:[#allocation9 + $0x508] sm:$0xff] }
 0x716   : > { %2959 = vmatprep.subr.mxu1 %v2801_v55  ;;  %2907 = vmatpush1.msra.mxu0 %v2809_v56  ;;  %v5763_v55 = vld [vmem:[#allocation12 + $0x178] sm:$0xff]  ;;  %v5765_v56 = vld [vmem:[#allocation12 + $0x1f0] sm:$0xff] }
 0x717   : > { %2940 = vmatprep.mubr.f32.mxu0 %v5539_v0  ;;  %2960 = vmatpush1.msra.mxu1 %v2800_v57  ;;  %v5769_v57 = vld [vmem:[#allocation12 + $0x170] sm:$0xff] }
 0x718   : > { %2941 = vmatmul.mubr.f32.vlgmr.msra.gmra.mxu0 %v5729_v43  ;;  %2961 = vmatprep.subr.mxu1 %v2799_v58  ;;  %v2867_v43 = vld [vmem:[#allocation9 + $0x5c8] sm:$0xff] }
 0x719   : > { %3030 = vmatprep.subr.mxu0 %v2873_v59  ;;  %2962 = vmatpush1.msra.mxu1 %v2798_v60  ;;  %v5771_v58 = vld [vmem:[#allocation12 + $0x1e8] sm:$0xff]  ;;  %v5779_v59 = vld [vmem:[#allocation12 + $0x1e0] sm:$0xff] }
 0x71a   : > { %3031 = vmatpush1.msra.mxu0 %v2872_v61  ;;  %2963 = vmatprep.subr.mxu1 %v2797_v62  ;;  %v5783_v60 = vld [vmem:[#allocation12 + $0x160] sm:$0xff]  ;;  %v5785_v61 = vld [vmem:[#allocation12 + $0x1d8] sm:$0xff] }
 0x71b   : > { %3032 = vmatprep.subr.mxu0 %v2871_v1  ;;  %2946 = vmatprep.mubr.f32.mxu0 %v5539_v0  ;;  %v5787_v62 = vld [vmem:[#allocation12 + $0x158] sm:$0xff]  ;;  %v6257_v1 = vlaneseq }
 0x71c   : > { %2964 = vmatpush1.msra.mxu1 %v2796_v2  ;;  %3033 = vmatpush1.msra.mxu0 %v2870_v3  ;;  %v5794_v2 = vld [vmem:[#allocation12 + $0x150] sm:$0xff]  ;;  %v5798_v3 = vld [vmem:[#allocation12 + $0x1c8] sm:$0xff] }
 0x71d   : > { %2947 = vmatmul.mubr.f32.gmra.mxu0 %v5726_v42  ;;  %2965 = vmatprep.subr.mxu1 %v2795_v4  ;;  %v2862_v42 = vld [vmem:[#allocation9 + $0x5a0] sm:$0xff]  ;;  %vm365_vm0 = vcmp.lt.s32.totalorder %v6257_v1, 256 }
 0x71e   : > { %3034 = vmatprep.subr.mxu0 %v2869_v5  ;;  %2966 = vmatpush1.msra.mxu1 %v2794_v6  ;;  %367 = vst.msk [vmem:[#allocation4] ss:$8 sm:$0x3] %vm365_vm0, %v5539_v0  ;;  %370 = vst.msk [vmem:[#allocation3 + $0x20] ss:$8 sm:$0x3] %vm365_vm0, %v5539_v0 }
 0x71f   : > { %3035 = vmatpush1.msra.mxu0 %v2868_v7  ;;  %2967 = vmatprep.subr.mxu1 %v2793_v8  ;;  %v5806_v4 = vld [vmem:[#allocation12 + $0x1c0] sm:$0xff]  ;;  %v5812_v6 = vld [vmem:[#allocation12 + $0x1b8] sm:$0xff]  ;;  %v5821_v8 = vld [vmem:[#allocation12 + $0x130] sm:$0xff] }
 0x720   : > { %3036 = vmatprep.subr.mxu0 %v2867_v43  ;;  %2968 = vmatpush1.msra.mxu1 %v2792_v9  ;;  %v5809_v5 = vld [vmem:[#allocation12 + $0x140] sm:$0xff]  ;;  %6367 = vst [vmem:[#allocation20_spill] sm:$0xff] %v5812_v6  ;;  %v5815_v7 = vld [vmem:[#allocation12 + $0x138] sm:$0xff]  ;;  %6370 = vst [vmem:[#allocation23_spill] sm:$0xff] %v5821_v8 }
 0x721   : > { %3037 = vmatpush1.msra.mxu0 %v2866_v10  ;;  %2969 = vmatprep.subr.mxu1 %v2791_v49  ;;  %6366 = vst [vmem:[#allocation19_spill] sm:$0xff] %v5809_v5  ;;  %6368 = vst [vmem:[#allocation21_spill] sm:$0xff] %v5815_v7  ;;  %v5824_v43 = vld [vmem:[#allocation12 + $0x1a8] sm:$0xff]  ;;  %v5830_v10 = vld [vmem:[#allocation12 + $0x1a0] sm:$0xff] }
 0x722   : > { %3038 = vmatprep.subr.mxu0 %v2865_v11  ;;  %2970 = vmatpush1.msra.mxu1 %v2790_v51  ;;  %6371 = vst [vmem:[#allocation24_spill] sm:$0xff] %v5824_v43  ;;  %v5827_v9 = vld [vmem:[#allocation12 + $0x128] sm:$0xff]  ;;  %6373 = vst [vmem:[#allocation26_spill] sm:$0xff] %v5830_v10  ;;  %v5833_v49 = vld [vmem:[#allocation12 + $0x120] sm:$0xff] }
 0x723   : > { %3039 = vmatpush1.msra.mxu0 %v2864_v12  ;;  %2971 = vmatprep.subr.mxu1 %v2789_v13  ;;  %6372 = vst [vmem:[#allocation25_spill] sm:$0xff] %v5827_v9  ;;  %6374 = vst [vmem:[#allocation27_spill] sm:$0xff] %v5833_v49  ;;  %v5838_v11 = vld [vmem:[#allocation12 + $0x198] sm:$0xff]  ;;  %v5844_v12 = vld [vmem:[#allocation12 + $0x190] sm:$0xff] }
 0x724   : > { %3040 = vmatprep.subr.mxu0 %v2863_v14  ;;  %2972 = vmatpush1.msra.mxu1 %v2788_v15  ;;  %6375 = vst [vmem:[#allocation28_spill] sm:$0xff] %v5838_v11  ;;  %v5841_v51 = vld [vmem:[#allocation12 + $0x118] sm:$0xff]  ;;  %6377 = vst [vmem:[#allocation30_spill] sm:$0xff] %v5844_v12  ;;  %v5847_v13 = vld [vmem:[#allocation12 + $0x110] sm:$0xff] }
 0x725   : > { %3041 = vmatpush1.msra.mxu0 %v2862_v42  ;;  %2973 = vmatprep.subr.mxu1 %v2787_v16  ;;  %6376 = vst [vmem:[#allocation29_spill] sm:$0xff] %v5841_v51  ;;  %6378 = vst [vmem:[#allocation31_spill] sm:$0xff] %v5847_v13  ;;  %v5850_v14 = vld [vmem:[#allocation12 + $0x188] sm:$0xff]  ;;  %v5856_v42 = vld [vmem:[#allocation12 + $0x180] sm:$0xff] }
 0x726   : > { %3042 = vmatprep.subr.mxu0 %v2861_v17  ;;  %2974 = vmatpush1.msra.mxu1 %v2786_v18  ;;  %6379 = vst [vmem:[#allocation32_spill] sm:$0xff] %v5850_v14  ;;  %v5853_v15 = vld [vmem:[#allocation12 + $0x108] sm:$0xff]  ;;  %6381 = vst [vmem:[#allocation34_spill] sm:$0xff] %v5856_v42  ;;  %v5859_v16 = vld [vmem:[#allocation12 + $0x100] sm:$0xff] }
 0x727   : > { %3043 = vmatpush1.msra.mxu0 %v2860_v19  ;;  %2975 = vmatprep.subr.mxu1 %v2785_v20  ;;  %6380 = vst [vmem:[#allocation33_spill] sm:$0xff] %v5853_v15  ;;  %6382 = vst [vmem:[#allocation35_spill] sm:$0xff] %v5859_v16  ;;  %v5862_v17 = vld [vmem:[#allocation12 + $0x2f8] sm:$0xff]  ;;  %v5870_v20 = vld [vmem:[#allocation12 + $0xf0] sm:$0xff] }
 0x728   : > { %3044 = vmatprep.subr.mxu0 %v2859_v21  ;;  %2976 = vmatpush1.msra.mxu1 %v2784_v22  ;;  %6383 = vst [vmem:[#allocation36_spill] sm:$0xff] %v5862_v17  ;;  %v5865_v18 = vld [vmem:[#allocation12 + $0xf8] sm:$0xff]  ;;  %v5873_v21 = vld [vmem:[#allocation12 + $0x70] sm:$0xff]  ;;  %v5876_v22 = vld [vmem:[#allocation12 + $0xe8] sm:$0xff] }
 0x729   : > { %3045 = vmatpush1.msra.mxu0 %v2858_v23  ;;  %2977 = vmatprep.subr.mxu1 %v2783_v24  ;;  %v5868_v19 = vld [vmem:[#allocation12 + $0x78] sm:$0xff]  ;;  %v5878_v23 = vld [vmem:[#allocation12 + $0x68] sm:$0xff]  ;;  %v5881_v24 = vld [vmem:[#allocation12 + $0xe0] sm:$0xff] }
 0x72a   : > { %3046 = vmatprep.subr.mxu0 %v2857_v25  ;;  %2978 = vmatpush1.msra.mxu1 %v2782_v26  ;;  %v5886_v25 = vld [vmem:[#allocation12 + $0x60] sm:$0xff]  ;;  %v5889_v26 = vld [vmem:[#allocation12 + $0xd8] sm:$0xff] }
 0x72b   : > { %3047 = vmatpush1.msra.mxu0 %v2856_v27  ;;  %2979 = vmatprep.subr.mxu1 %v2781_v28  ;;  %v5892_v27 = vld [vmem:[#allocation12 + $0x58] sm:$0xff]  ;;  %v5895_v28 = vld [vmem:[#allocation12 + $0xd0] sm:$0xff]  ;;  %v5955_v1 = vld [vmem:[#allocation12 + $0x80] sm:$0xff] }
 0x72c   : > { %3048 = vmatprep.subr.mxu0 %v2855_v29  ;;  %2980 = vmatpush1.msra.mxu1 %v2780_v30  ;;  %v5898_v29 = vld [vmem:[#allocation12 + $0x50] sm:$0xff]  ;;  %v5901_v30 = vld [vmem:[#allocation12 + $0xc8] sm:$0xff]  ;;  %6390 = vst [vmem:[#allocation43_spill] sm:$0xff] %v5955_v1 }
 0x72d   : > { %3049 = vmatpush1.msra.mxu0 %v2854_v31  ;;  %2981 = vmatprep.subr.mxu1 %v2779_v32  ;;  %v5904_v31 = vld [vmem:[#allocation12 + $0x48] sm:$0xff]  ;;  %v5907_v32 = vld [vmem:[#allocation12 + $0xc0] sm:$0xff] }
 0x72e   : > { %3050 = vmatprep.subr.mxu0 %v2853_v33  ;;  %2982 = vmatpush1.msra.mxu1 %v2778_v34  ;;  %v5910_v33 = vld [vmem:[#allocation12 + $0x40] sm:$0xff]  ;;  %v5913_v34 = vld [vmem:[#allocation12 + $0xb8] sm:$0xff] }
 0x72f   : > { %3051 = vmatpush1.msra.mxu0 %v2852_v35  ;;  %2983 = vmatprep.subr.mxu1 %v2777_v36  ;;  %v5916_v35 = vld [vmem:[#allocation12 + $0x38] sm:$0xff]  ;;  %v5919_v36 = vld [vmem:[#allocation12 + $0xb0] sm:$0xff] }
 0x730   : > { %3052 = vmatprep.subr.mxu0 %v2851_v38  ;;  %2984 = vmatpush1.msra.mxu1 %v2776_v41  ;;  %v5922_v38 = vld [vmem:[#allocation12 + $0x30] sm:$0xff]  ;;  %v5925_v41 = vld [vmem:[#allocation12 + $0xa8] sm:$0xff] }
 0x731   : > { %3017 = vmatprep.mubr.f32.mxu1 %v5539_v0  ;;  %3053 = vmatpush1.msra.mxu0 %v2850_v44  ;;  %v5928_v44 = vld [vmem:[#allocation12 + $0x28] sm:$0xff] }
 0x732   : > { %3018 = vmatmul.mubr.f32.vlgmr.msra.gmra.mxu1 %v5737_v54  ;;  %3054 = vmatprep.subr.mxu0 %v2849_v45  ;;  %v2842_v54 = vld [vmem:[#allocation9 + $0x500] sm:$0xff] }
 0x733   : > { %3055 = vmatpush1.msra.mxu0 %v2848_v46  ;;  %3023 = vmatprep.mubr.f32.mxu1 %v5539_v0  ;;  %v5931_v45 = vld [vmem:[#allocation12 + $0xa0] sm:$0xff] }
 0x734   : > { %3056 = vmatprep.subr.mxu0 %v2847_v47  ;;  %3094 = vmatprep.mubr.f32.mxu0 %v5539_v0  ;;  %v5934_v46 = vld [vmem:[#allocation12 + $0x20] sm:$0xff]  ;;  %v5937_v47 = vld [vmem:[#allocation12 + $0x98] sm:$0xff] }
 0x735   : > { %3057 = vmatpush1.msra.mxu0 %v2846_v48  ;;  %4280 = vmatprep.subr.mxu1 %v5758_v39  ;;  %6384 = vst [vmem:[#allocation37_spill] sm:$0xff] %v5937_v47  ;;  %v5940_v48 = vld [vmem:[#allocation12 + $0x18] sm:$0xff] }
 0x736   : > { %3024 = vmatmul.mubr.f32.gmra.mxu1 %v5741_v63  ;;  %3058 = vmatprep.subr.mxu0 %v2845_v37  ;;  %v5777_v63 = vld [vmem:[#allocation12 + $0x168] sm:$0xff]  ;;  %6385 = vst [vmem:[#allocation38_spill] sm:$0xff] %v5940_v48  ;;  %v5943_v37 = vld [vmem:[#allocation12 + $0x90] sm:$0xff] }
 0x737   : > { %3059 = vmatpush1.msra.mxu0 %v2844_v52  ;;  %4281 = vmatpush3.msra.mxu1 %v5763_v55  ;;  %6386 = vst [vmem:[#allocation39_spill] sm:$0xff] %v5943_v37  ;;  %v5946_v52 = vld [vmem:[#allocation12 + $0x10] sm:$0xff] }
 0x738   : > { %3060 = vmatprep.subr.mxu0 %v2843_v53  ;;  %4282 = vmatprep.subr.mxu1 %v5765_v56  ;;  %6387 = vst [vmem:[#allocation40_spill] sm:$0xff] %v5946_v52  ;;  %v5949_v53 = vld [vmem:[#allocation12 + $0x88] sm:$0xff] }
 0x739   : > { %3061 = vmatpush1.msra.mxu0 %v2842_v54  ;;  %4283 = vmatpush3.msra.mxu1 %v5769_v57  ;;  %6388 = vst [vmem:[#allocation41_spill] sm:$0xff] %v5949_v53  ;;  %v5952_v54 = vld [vmem:[#allocation12 + $0x8] sm:$0xff] }
 0x73a   : > { %3095 = vmatmul.mubr.f32.vlgmr.msra.gmra.mxu0 %v5744_v40  ;;  %4284 = vmatprep.subr.mxu1 %v5771_v58  ;;  %v5791_v40 = vld [vmem:[#allocation12 + $0x1d0] sm:$0xff]  ;;  %6389 = vst [vmem:[#allocation42_spill] sm:$0xff] %v5952_v54 }
 0x73b   : > { %3100 = vmatprep.mubr.f32.mxu0 %v5539_v0  ;;  %4285 = vmatpush3.msra.mxu1 %v5777_v63  ;;  %v5818_v0 = vld [vmem:[#allocation12 + $0x1b0] sm:$0xff] }
 0x73c   : > { %4286 = vmatprep.subr.mxu1 %v5779_v59  ;;  %6369 = vst [vmem:[#allocation22_spill] sm:$0xff] %v5818_v0  ;;  %4318 = vmatprep.subr.mxu0 %v5865_v18 }
 0x73d   : > { %4287 = vmatpush3.msra.mxu1 %v5783_v60  ;;  %4319 = vmatpush3.msra.mxu0 %v5868_v19 }
 0x73e   : > { %3101 = vmatmul.mubr.f32.gmra.mxu0 %v5748_v50  ;;  %4288 = vmatprep.subr.mxu1 %v5785_v61  ;;  %v5803_v50 = vld [vmem:[#allocation12 + $0x148] sm:$0xff] }
 0x73f   : > { %4289 = vmatpush3.msra.mxu1 %v5787_v62  ;;  %4320 = vmatprep.subr.mxu0 %v5870_v20 }
 0x740   : > { %4290 = vmatprep.subr.mxu1 %v5791_v40  ;;  %4321 = vmatpush3.msra.mxu0 %v5873_v21 }
 0x741   : > { %4291 = vmatpush3.msra.mxu1 %v5794_v2  ;;  %4322 = vmatprep.subr.mxu0 %v5876_v22 }
 0x742   : > { %4292 = vmatprep.subr.mxu1 %v5798_v3  ;;  %4323 = vmatpush3.msra.mxu0 %v5878_v23 }
 0x743   : > { %4293 = vmatpush3.msra.mxu1 %v5803_v50  ;;  %4324 = vmatprep.subr.mxu0 %v5881_v24 }
 0x744   : > { %4294 = vmatprep.subr.mxu1 %v5806_v4  ;;  %4325 = vmatpush3.msra.mxu0 %v5886_v25 }
 0x745   : > { %4295 = vmatpush3.msra.mxu1 %v5809_v5  ;;  %4326 = vmatprep.subr.mxu0 %v5889_v26 }
 0x746   : > { %4296 = vmatprep.subr.mxu1 %v5812_v6  ;;  %4327 = vmatpush3.msra.mxu0 %v5892_v27 }
 0x747   : > { %4297 = vmatpush3.msra.mxu1 %v5815_v7  ;;  %4328 = vmatprep.subr.mxu0 %v5895_v28 }
 0x748   : > { %4298 = vmatprep.subr.mxu1 %v5818_v0  ;;  %4329 = vmatpush3.msra.mxu0 %v5898_v29 }
 0x749   : > { %4299 = vmatpush3.msra.mxu1 %v5821_v8  ;;  %4330 = vmatprep.subr.mxu0 %v5901_v30 }
 0x74a   : > { %4300 = vmatprep.subr.mxu1 %v5824_v43  ;;  %4331 = vmatpush3.msra.mxu0 %v5904_v31 }
 0x74b   : > { %4301 = vmatpush3.msra.mxu1 %v5827_v9  ;;  %4332 = vmatprep.subr.mxu0 %v5907_v32 }
 0x74c   : > { %4302 = vmatprep.subr.mxu1 %v5830_v10  ;;  %4333 = vmatpush3.msra.mxu0 %v5910_v33 }
 0x74d   : > { %4303 = vmatpush3.msra.mxu1 %v5833_v49  ;;  %4334 = vmatprep.subr.mxu0 %v5913_v34 }
 0x74e   : > { %4304 = vmatprep.subr.mxu1 %v5838_v11  ;;  %4335 = vmatpush3.msra.mxu0 %v5916_v35 }
 0x74f   : > { %4305 = vmatpush3.msra.mxu1 %v5841_v51  ;;  %4336 = vmatprep.subr.mxu0 %v5919_v36 }
 0x750   : > { %4306 = vmatprep.subr.mxu1 %v5844_v12  ;;  %4337 = vmatpush3.msra.mxu0 %v5922_v38 }
 0x751   : > { %4307 = vmatpush3.msra.mxu1 %v5847_v13  ;;  %4338 = vmatprep.subr.mxu0 %v5925_v41  ;;  %v6392_v13 = vlaneseq }
 0x752   : > { %4308 = vmatprep.subr.mxu1 %v5850_v14  ;;  %4339 = vmatpush3.msra.mxu0 %v5928_v44 }
 0x753   : > { %4309 = vmatpush3.msra.mxu1 %v5853_v15  ;;  %4340 = vmatprep.subr.mxu0 %v5931_v45  ;;  %v5963_v12 = vshrl.u32 %v6392_v13, 7 }
 0x754   : > { %4310 = vmatprep.subr.mxu1 %v5856_v42  ;;  %4341 = vmatpush3.msra.mxu0 %v5934_v46 }
 0x755   : > { %4311 = vmatpush3.msra.mxu1 %v5859_v16  ;;  %4342 = vmatprep.subr.mxu0 %v5937_v47  ;;  %v5958_v16 = vld [vmem:[#allocation12] sm:$0xff]  ;;  %v6283_v49 = vsub.s32 0, %v5963_v12  ;;  %v6284_v10 = vsub.s32 1, %v5963_v12 }
 0x756   : > { %4356 = vmatprep.subr.mxu1 %v5862_v17  ;;  %4343 = vmatpush3.msra.mxu0 %v5940_v48  ;;  %6391 = vst [vmem:[#allocation44_spill] sm:$0xff] %v5958_v16  ;;  %v2524_v17 = vld [vmem:[#allocation10] ss:$2 sm:$0x3] }
 0x757   : > { %4344 = vmatprep.subr.mxu0 %v5943_v37  ;;  %v2768_v13 = vrot.slane %v2524_v17, %v6284_v10  ;;  %v6037_v10 = vld [vmem:[#allocation12 + $0x230] sm:$0xff] }
 0x758   : > { %4345 = vmatpush3.msra.mxu0 %v5946_v52  ;;  %6414 = vst [vmem:[#allocation66_spill] sm:$0xff] %v6037_v10 }
 0x759   : > { %4346 = vmatprep.subr.mxu0 %v5949_v53 }
 0x75a   : > { %4347 = vmatpush3.msra.mxu0 %v5952_v54 }
 0x75b   : > { %4348 = vmatprep.subr.mxu0 %v5955_v1 }
 0x75c   : > { %4349 = vmatpush3.msra.mxu0 %v5958_v16  ;;  %v2764_v16 = vrot.slane %v2524_v17, %v6283_v49  ;;  %v5976_v49 = vld [vmem:[#allocation12 + $0x278] sm:$0xff] }
 0x75d   : > { %4394 = vmatprep.subr.mxu0 %v5758_v39  ;;  %6394 = vst [vmem:[#allocation46_spill] sm:$0xff] %v5976_v49  ;;  %v6004_v17 = vld [vmem:[#allocation12 + $0x2d8] sm:$0xff] }
 0x75e   : > { %6403 = vst [vmem:[#allocation55_spill] sm:$0xff] %v6004_v17 }
 0x7ad   : > { %v2591_v42 = vpop.f32.mrf.mxu1 }
 0x7af   : > { %v2593_v15 = vpop.f32.mrf.mxu1 }
 0x7b1   : > { %v2597_v51 = vpop.f32.mrf.mxu1 }
 0x7b3   : > { %v2599_v9 = vpop.f32.mrf.mxu1 }
 0x7b5   : > { %v2668_v14 = vpop.f32.mrf.mxu0 }
 0x7b6   : > { %v2669_v1 = vadd.f32 %v2668_v14, %v2591_v42 }
 0x7b7   : > { %v2670_v11 = vpop.f32.mrf.mxu0 }
 0x7b8   : > { %v2671_v54 = vadd.f32 %v2670_v11, %v2593_v15  ;;  %v5980_v11 = vld [vmem:[#allocation12 + $0x2f0] sm:$0xff] }
 0x7b9   : > { %6395 = vst [vmem:[#allocation47_spill] sm:$0xff] %v5980_v11 }
 0x7ba   : > { %v2674_v43 = vpop.f32.mrf.mxu0 }
 0x7bb   : > { %v2675_v37 = vadd.f32 %v2674_v43, %v2597_v51  ;;  %v5985_v43 = vld [vmem:[#allocation12 + $0x270] sm:$0xff]  ;;  %v5998_v51 = vld [vmem:[#allocation12 + $0x2e0] sm:$0xff] }
 0x7bc   : > { %v2676_v0 = vpop.f32.mrf.mxu0  ;;  %6397 = vst [vmem:[#allocation49_spill] sm:$0xff] %v5985_v43  ;;  %6401 = vst [vmem:[#allocation53_spill] sm:$0xff] %v5998_v51 }
 0x7bd   : > { %v2677_v42 = vadd.f32 %v2676_v0, %v2599_v9  ;;  %v5994_v9 = vld [vmem:[#allocation12 + $0x268] sm:$0xff] }
 0x7be   : > { %6400 = vst [vmem:[#allocation52_spill] sm:$0xff] %v5994_v9 }
 0x7ce   : > { %v2745_v39 = vpop.f32.mrf.mxu1 }
 0x7cf   : > { %v2756_v8 = vadd.f32 %v2745_v39, %v2669_v1  ;;  %v6019_v39 = vld [vmem:[#allocation12 + $0x248] sm:$0xff] }
 0x7d0   : > { %v2747_v53 = vpop.f32.mrf.mxu1  ;;  %6408 = vst [vmem:[#allocation60_spill] sm:$0xff] %v6019_v39 }
 0x7d1   : > { %v5971_v52 = vadd.f32 %v2764_v16, %v2756_v8  ;;  %v2757_v7 = vadd.f32 %v2747_v53, %v2671_v54  ;;  %v6013_v53 = vld [vmem:[#allocation12 + $0x250] sm:$0xff]  ;;  %v6016_v54 = vld [vmem:[#allocation12 + $0x2c8] sm:$0xff] }
 0x7d2   : > { %6406 = vst [vmem:[#allocation58_spill] sm:$0xff] %v6013_v53  ;;  %6407 = vst [vmem:[#allocation59_spill] sm:$0xff] %v6016_v54 }
 0x7d3   : > { %6393 = vst [vmem:[#allocation45_spill] sm:$0xff] %v5971_v52  ;;  %3126 = vst [vmem:[#allocation3] sm:$0xff] %v5971_v52  ;;  %v5974_v6 = vadd.f32 %v2768_v13, %v2757_v7  ;;  %v2751_v14 = vpop.f32.mrf.mxu1  ;;  %v5988_v7 = vld [vmem:[#allocation12 + $0x2e8] sm:$0xff] }
 0x7d4   : > { %v2758_v48 = vadd.f32 %v2751_v14, %v2675_v37  ;;  %6398 = vst [vmem:[#allocation50_spill] sm:$0xff] %v5988_v7  ;;  %v6010_v37 = vld [vmem:[#allocation12 + $0x2d0] sm:$0xff]  ;;  %v6025_v14 = vld [vmem:[#allocation12 + $0x240] sm:$0xff] }
 0x7d5   : > { %3127 = vst [vmem:[#allocation3 + $0x8] sm:$0xff] %v5974_v6  ;;  %v2753_v1 = vpop.f32.mrf.mxu1  ;;  %3326 = vmatprep.mubr.f32.mxu1 %v5974_v6  ;;  %6405 = vst [vmem:[#allocation57_spill] sm:$0xff] %v6010_v37 }
 0x7d6   : > { %v5982_v8 = vadd.f32 %v2764_v16, %v2758_v48  ;;  %v2759_v15 = vadd.f32 %v2753_v1, %v2677_v42  ;;  %3327 = vmatmul.mubr.f32.vlgmr.msra.gmra.mxu1 %v5971_v52  ;;  %v6001_v16 = vld [vmem:[#allocation12 + $0x260] sm:$0xff]  ;;  %v6007_v48 = vld [vmem:[#allocation12 + $0x258] sm:$0xff]  ;;  %6410 = vst [vmem:[#allocation62_spill] sm:$0xff] %v6025_v14 }
 0x7d7   : > { %4357 = vmatpush3.msra.mxu1 %v5976_v49  ;;  %6402 = vst [vmem:[#allocation54_spill] sm:$0xff] %v6001_v16  ;;  %6404 = vst [vmem:[#allocation56_spill] sm:$0xff] %v6007_v48  ;;  %v6028_v42 = vld [vmem:[#allocation12 + $0x2b8] sm:$0xff] }
 0x7d8   : > { %6396 = vst [vmem:[#allocation48_spill] sm:$0xff] %v5982_v8  ;;  %v5990_v0 = vadd.f32 %v2768_v13, %v2759_v15  ;;  %4358 = vmatprep.subr.mxu1 %v5980_v11  ;;  %v6022_v13 = vld [vmem:[#allocation12 + $0x2c0] sm:$0xff]  ;;  %6411 = vst [vmem:[#allocation63_spill] sm:$0xff] %v6028_v42  ;;  %v6031_v1 = vld [vmem:[#allocation12 + $0x238] sm:$0xff] }
 0x7d9   : > { %4359 = vmatpush3.msra.mxu1 %v5985_v43  ;;  %6409 = vst [vmem:[#allocation61_spill] sm:$0xff] %v6022_v13  ;;  %6412 = vst [vmem:[#allocation64_spill] sm:$0xff] %v6031_v1  ;;  %v6034_v15 = vld [vmem:[#allocation12 + $0x2b0] sm:$0xff]  ;;  %v6428_v43 = vsub.s32 1, %v5963_v12 }
 0x7da   : > { %6399 = vst [vmem:[#allocation51_spill] sm:$0xff] %v5990_v0  ;;  %3331 = vmatprep.mubr.f32.mxu1 %v5990_v0  ;;  %4360 = vmatprep.subr.mxu1 %v5988_v7  ;;  %6413 = vst [vmem:[#allocation65_spill] sm:$0xff] %v6034_v15 }
 0x7db   : > { %3332 = vmatmul.mubr.f32.gmra.mxu1 %v5982_v8 }
 0x7dc   : > { %4361 = vmatpush3.msra.mxu1 %v5994_v9 }
 0x7dd   : > { %4362 = vmatprep.subr.mxu1 %v5998_v51  ;;  %v6427_v51 = vsub.s32 0, %v5963_v12 }
 0x7de   : > { %4363 = vmatpush3.msra.mxu1 %v6001_v16 }
 0x7df   : > { %4364 = vmatprep.subr.mxu1 %v6004_v17 }
 0x7e0   : > { %4365 = vmatpush3.msra.mxu1 %v6007_v48  ;;  %v6070_v48 = vld [vmem:[#allocation12 + $0x280] sm:$0xff] }
 0x7e1   : > { %4366 = vmatprep.subr.mxu1 %v6010_v37  ;;  %v6064_v37 = vld [vmem:[#allocation12 + $0x288] sm:$0xff]  ;;  %6425 = vst [vmem:[#allocation77_spill] sm:$0xff] %v6070_v48 }
 0x7e2   : > { %4367 = vmatpush3.msra.mxu1 %v6013_v53  ;;  %v2942_v53 = vpop.f32.mrf.mxu0  ;;  %6423 = vst [vmem:[#allocation75_spill] sm:$0xff] %v6064_v37 }
 0x7e3   : > { %4368 = vmatprep.subr.mxu1 %v6016_v54  ;;  %v6040_v54 = vld [vmem:[#allocation12 + $0x2a8] sm:$0xff] }
 0x7e4   : > { %4369 = vmatpush3.msra.mxu1 %v6019_v39  ;;  %6415 = vst [vmem:[#allocation67_spill] sm:$0xff] %v6040_v54  ;;  %v6043_v39 = vld [vmem:[#allocation12 + $0x228] sm:$0xff] }
 0x7e5   : > { %4370 = vmatprep.subr.mxu1 %v6022_v13  ;;  %6416 = vst [vmem:[#allocation68_spill] sm:$0xff] %v6043_v39  ;;  %v6046_v13 = vld [vmem:[#allocation12 + $0x2a0] sm:$0xff] }
 0x7e6   : > { %4371 = vmatpush3.msra.mxu1 %v6025_v14  ;;  %6417 = vst [vmem:[#allocation69_spill] sm:$0xff] %v6046_v13  ;;  %v6049_v14 = vld [vmem:[#allocation12 + $0x220] sm:$0xff] }
 0x7e7   : > { %4372 = vmatprep.subr.mxu1 %v6028_v42  ;;  %6418 = vst [vmem:[#allocation70_spill] sm:$0xff] %v6049_v14  ;;  %v6052_v42 = vld [vmem:[#allocation12 + $0x298] sm:$0xff] }
 0x7e8   : > { %4373 = vmatpush3.msra.mxu1 %v6031_v1  ;;  %6419 = vst [vmem:[#allocation71_spill] sm:$0xff] %v6052_v42  ;;  %v6055_v1 = vld [vmem:[#allocation12 + $0x218] sm:$0xff] }
 0x7e9   : > { %4374 = vmatprep.subr.mxu1 %v6034_v15  ;;  %6420 = vst [vmem:[#allocation72_spill] sm:$0xff] %v6055_v1  ;;  %v6058_v15 = vld [vmem:[#allocation12 + $0x290] sm:$0xff] }
 0x7ea   : > { %4375 = vmatpush3.msra.mxu1 %v6037_v10  ;;  %6421 = vst [vmem:[#allocation73_spill] sm:$0xff] %v6058_v15  ;;  %v6061_v10 = vld [vmem:[#allocation12 + $0x210] sm:$0xff] }
 0x7eb   : > { %4376 = vmatprep.subr.mxu1 %v6040_v54  ;;  %6422 = vst [vmem:[#allocation74_spill] sm:$0xff] %v6061_v10  ;;  %v2944_v54 = vpop.f32.mrf.mxu0 }
 0x7ec   : > { %4377 = vmatpush3.msra.mxu1 %v6043_v39  ;;  %v6067_v39 = vld [vmem:[#allocation12 + $0x208] sm:$0xff] }
 0x7ed   : > { %4378 = vmatprep.subr.mxu1 %v6046_v13  ;;  %6424 = vst [vmem:[#allocation76_spill] sm:$0xff] %v6067_v39 }
 0x7ee   : > { %4379 = vmatpush3.msra.mxu1 %v6049_v14  ;;  %v6073_v14 = vld [vmem:[#allocation12 + $0x200] sm:$0xff] }
 0x7ef   : > { %4380 = vmatprep.subr.mxu1 %v6052_v42  ;;  %6426 = vst [vmem:[#allocation78_spill] sm:$0xff] %v6073_v14  ;;  %v2948_v42 = vpop.f32.mrf.mxu0 }
 0x7f0   : > { %4381 = vmatpush3.msra.mxu1 %v6055_v1  ;;  %v2875_v1 = vld [vmem:[#allocation10 + $0x1] ss:$2 sm:$0x3] }
 0x7f1   : > { %4382 = vmatprep.subr.mxu1 %v6058_v15  ;;  %v2950_v15 = vpop.f32.mrf.mxu0  ;;  %v3115_v9 = vrot.slane %v2875_v1, %v6427_v51  ;;  %v3119_v11 = vrot.slane %v2875_v1, %v6428_v43  ;;  %v6463_v43 = vld [vmem:[#allocation34_spill] sm:$0xff] }
 0x7f2   : > { %v3019_v13 = vpop.f32.mrf.mxu1  ;;  %4383 = vmatpush3.msra.mxu1 %v6061_v10  ;;  %v6472_v1 = vld [vmem:[#allocation62_spill] sm:$0xff] }
 0x7f3   : > { %4384 = vmatprep.subr.mxu1 %v6064_v37  ;;  %v3020_v10 = vadd.f32 %v3019_v13, %v2942_v53 }
 0x7f4   : > { %v3021_v17 = vpop.f32.mrf.mxu1  ;;  %4385 = vmatpush3.msra.mxu1 %v6067_v39 }
 0x7f5   : > { %4386 = vmatprep.subr.mxu1 %v6070_v48  ;;  %v3022_v7 = vadd.f32 %v3021_v17, %v2944_v54  ;;  %v6468_v54 = vld [vmem:[#allocation58_spill] sm:$0xff] }
 0x7f6   : > { %4387 = vmatpush3.msra.mxu1 %v6073_v14  ;;  %v3025_v16 = vpop.f32.mrf.mxu1 }
 0x7f7   : > { %4432 = vmatprep.subr.mxu1 %v5865_v18  ;;  %v3026_v48 = vadd.f32 %v3025_v16, %v2948_v42  ;;  %v6466_v16 = vld [vmem:[#allocation56_spill] sm:$0xff] }
 0x7f8   : > { %v3027_v39 = vpop.f32.mrf.mxu1  ;;  %v6470_v42 = vld [vmem:[#allocation60_spill] sm:$0xff] }
 0x7f9   : > { %v3028_v18 = vadd.f32 %v3027_v39, %v2950_v15 }
 0x7fa   : > { %v3096_v37 = vpop.f32.mrf.mxu0 }
 0x7fb   : > { %v3107_v8 = vadd.f32 %v3096_v37, %v3020_v10  ;;  %v6467_v37 = vld [vmem:[#allocation57_spill] sm:$0xff] }
 0x7fc   : > { %v3098_v49 = vpop.f32.mrf.mxu0 }
 0x7fd   : > { %v6083_v0 = vadd.f32 %v3115_v9, %v3107_v8  ;;  %v3108_v14 = vadd.f32 %v3098_v49, %v3022_v7  ;;  %v6464_v7 = vld [vmem:[#allocation55_spill] sm:$0xff] }
 0x7fe   : > { %v3102_v52 = vpop.f32.mrf.mxu0 }
 0x7ff   : > { %v3135_v5 = vrot.slane %v6083_v0, 7  ;;  %v3123_v53 = vadd.f32 %v3119_v11, %v3108_v14  ;;  %v3109_v13 = vadd.f32 %v3102_v52, %v3026_v48  ;;  %v3158_v48 = vld [vmem:[#allocation3 + $0x8] sm:$0xfe] }
 0x800   : > { %v3104_v47 = vpop.f32.mrf.mxu0  ;;  %v3657_v39 = vrot.slane %v3158_v48, 1  ;;  %v6469_v14 = vld [vmem:[#allocation59_spill] sm:$0xff] }
 0x801   : > { %3147 = vst [vmem:[#allocation4] sm:$0xfe] %v3135_v5  ;;  %v3136_v51 = vrot.slane %v3123_v53, 7  ;;  %v6086_v17 = vadd.f32 %v3115_v9, %v3109_v13  ;;  %v3110_v10 = vadd.f32 %v3104_v47, %v3028_v18  ;;  %3476 = vmatprep.mubr.f32.mxu1 %v3123_v53  ;;  %v6465_v9 = vld [vmem:[#allocation35_spill] sm:$0xff]  ;;  %v6475_v13 = vld [vmem:[#allocation65_spill] sm:$0xff] }
 0x802   : > { %3477 = vmatmul.mubr.f32.vlgmr.msra.gmra.mxu1 %v6083_v0  ;;  %v6473_v18 = vld [vmem:[#allocation63_spill] sm:$0xff] }
 0x803   : > { %3148 = vst [vmem:[#allocation4 + $0x8] sm:$0xfe] %v3136_v51  ;;  %v3137_v12 = vrot.slane %v6086_v17, 7  ;;  %v6090_v49 = vadd.f32 %v3119_v11, %v3110_v10  ;;  %4433 = vmatpush3.msra.mxu1 %v5868_v19  ;;  %v6462_v11 = vld [vmem:[#allocation54_spill] sm:$0xff]  ;;  %v6478_v10 = vld [vmem:[#allocation68_spill] sm:$0xff] }
 0x804   : > { %4434 = vmatprep.subr.mxu1 %v5870_v20  ;;  %v6444_v20 = vld [vmem:[#allocation26_spill] sm:$0xff] }
 0x805   : > { %v3138_v52 = vsel %vm3134_vm1, %v3135_v5, %v3137_v12  ;;  %v3139_v8 = vrot.slane %v6090_v49, 7  ;;  %4435 = vmatpush3.msra.mxu1 %v5873_v21  ;;  %3481 = vmatprep.mubr.f32.mxu1 %v6090_v49  ;;  %v3162_v21 = vld [vmem:[#allocation3 + $0x28] sm:$0x1]  ;;  %v6479_v12 = vld [vmem:[#allocation69_spill] sm:$0xff] }
 0x806   : > { %4436 = vmatprep.subr.mxu1 %v5876_v22  ;;  %3482 = vmatmul.mubr.f32.gmra.mxu1 %v6086_v17  ;;  %v6445_v22 = vld [vmem:[#allocation45_spill] sm:$0xff] }
 0x807   : > { %v3140_v47 = vsel %vm3134_vm1, %v3136_v51, %v3139_v8  ;;  %4437 = vmatpush3.msra.mxu1 %v5878_v23  ;;  %3636 = vmatprep.mubr.f32.mxu1 %v5974_v6  ;;  %v6443_v6 = vld [vmem:[#allocation44_spill] sm:$0xff]  ;;  %v6476_v51 = vld [vmem:[#allocation66_spill] sm:$0xff]  ;;  %v3161_v8 = vld [vmem:[#allocation3 + $0x20] sm:$0x1] }
 0x808   : > { %4438 = vmatprep.subr.mxu1 %v5881_v24  ;;  %v3153_v19 = vld [vmem:[#allocation4] sm:$0xff] }
 0x809   : > { %4439 = vmatpush3.msra.mxu1 %v5886_v25  ;;  %v6446_v23 = vld [vmem:[#allocation36_spill] sm:$0xff]  ;;  %v6447_v24 = vld [vmem:[#allocation27_spill] sm:$0xff] }
 0x80a   : > { %4440 = vmatprep.subr.mxu1 %v5889_v26  ;;  %v3154_v5 = vld [vmem:[#allocation4 + $0x8] sm:$0xff]  ;;  %v6448_v25 = vld [vmem:[#allocation51_spill] sm:$0xff]  ;;  %v6449_v26 = vld [vmem:[#allocation46_spill] sm:$0xff] }
 0x80b   : > { %4441 = vmatpush3.msra.mxu1 %v5892_v27  ;;  %3401 = vmatprep.mubr.f32.mxu0 %v3154_v5  ;;  %v6450_v27 = vld [vmem:[#allocation28_spill] sm:$0xff]  ;;  %v6483_v5 = vld [vmem:[#allocation73_spill] sm:$0xff] }
 0x80c   : > { %4442 = vmatprep.subr.mxu1 %v5895_v28  ;;  %3402 = vmatmul.mubr.f32.vlgmr.msra.gmra.mxu0 %v3153_v19  ;;  %v3658_v28 = vrot.slane %v6448_v25, 1  ;;  %v6484_v19 = vld [vmem:[#allocation74_spill] sm:$0xff] }
 0x80d   : > { %4395 = vmatpush3.msra.mxu0 %v5763_v55  ;;  %4443 = vmatpush3.msra.mxu1 %v5898_v29  ;;  %v6429_v55 = vld [vmem:[#allocation37_spill] sm:$0xff]  ;;  %v3662_v29 = vrot.slane %v3162_v21, 1 }
 0x80e   : > { %4396 = vmatprep.subr.mxu0 %v5765_v56  ;;  %4444 = vmatprep.subr.mxu1 %v5901_v30  ;;  %v6430_v56 = vld [vmem:[#allocation19_spill] sm:$0xff]  ;;  %v3659_v15 = vsel %vm3653_vm2, %v3657_v39, %v3658_v28 }
 0x80f   : > { %4397 = vmatpush3.msra.mxu0 %v5769_v57  ;;  %4445 = vmatpush3.msra.mxu1 %v5904_v31  ;;  %v6431_v57 = vld [vmem:[#allocation38_spill] sm:$0xff]  ;;  %v6451_v30 = vld [vmem:[#allocation47_spill] sm:$0xff]  ;;  %v6452_v31 = vld [vmem:[#allocation29_spill] sm:$0xff] }
 0x810   : > { %4398 = vmatprep.subr.mxu0 %v5771_v58  ;;  %4446 = vmatprep.subr.mxu1 %v5907_v32  ;;  %v6432_v58 = vld [vmem:[#allocation20_spill] sm:$0xff]  ;;  %v6453_v32 = vld [vmem:[#allocation49_spill] sm:$0xff] }
 0x811   : > { %3406 = vmatprep.mubr.f32.mxu0 %v3140_v47  ;;  %4399 = vmatpush3.msra.mxu0 %v5777_v63  ;;  %v6433_v63 = vld [vmem:[#allocation39_spill] sm:$0xff]  ;;  %v6482_v47 = vld [vmem:[#allocation72_spill] sm:$0xff] }
 0x812   : > { %4447 = vmatpush3.msra.mxu1 %v5910_v33  ;;  %3407 = vmatmul.mubr.f32.gmra.mxu0 %v3138_v52  ;;  %v6454_v33 = vld [vmem:[#allocation30_spill] sm:$0xff]  ;;  %v6481_v52 = vld [vmem:[#allocation71_spill] sm:$0xff] }
 0x813   : > { %4400 = vmatprep.subr.mxu0 %v5779_v59  ;;  %4448 = vmatprep.subr.mxu1 %v5913_v34  ;;  %v6434_v59 = vld [vmem:[#allocation21_spill] sm:$0xff]  ;;  %v6455_v34 = vld [vmem:[#allocation48_spill] sm:$0xff] }
 0x814   : > { %4401 = vmatpush3.msra.mxu0 %v5783_v60  ;;  %3561 = vmatprep.mubr.f32.mxu0 %v3123_v53  ;;  %v6435_v60 = vld [vmem:[#allocation40_spill] sm:$0xff] }
 0x815   : > { %4449 = vmatpush3.msra.mxu1 %v5916_v35  ;;  %4402 = vmatprep.subr.mxu0 %v5785_v61  ;;  %v6436_v61 = vld [vmem:[#allocation22_spill] sm:$0xff]  ;;  %v6474_v53 = vld [vmem:[#allocation64_spill] sm:$0xff] }
 0x816   : > { %4450 = vmatprep.subr.mxu1 %v5919_v36  ;;  %4403 = vmatpush3.msra.mxu0 %v5787_v62  ;;  %v6437_v62 = vld [vmem:[#allocation41_spill] sm:$0xff]  ;;  %v6456_v35 = vld [vmem:[#allocation50_spill] sm:$0xff]  ;;  %v6457_v36 = vld [vmem:[#allocation31_spill] sm:$0xff] }
 0x817   : > { %4451 = vmatpush3.msra.mxu1 %v5922_v38  ;;  %4404 = vmatprep.subr.mxu0 %v5791_v40  ;;  %v6438_v40 = vld [vmem:[#allocation23_spill] sm:$0xff]  ;;  %v6458_v38 = vld [vmem:[#allocation52_spill] sm:$0xff] }
 0x818   : > { %4452 = vmatprep.subr.mxu1 %v5925_v41  ;;  %4405 = vmatpush3.msra.mxu0 %v5794_v2  ;;  %v6439_v2 = vld [vmem:[#allocation42_spill] sm:$0xff]  ;;  %v3663_v41 = vsel %vm3653_vm2, %v3658_v28, %v3662_v29 }
 0x819   : > { %4453 = vmatpush3.msra.mxu1 %v5928_v44  ;;  %4406 = vmatprep.subr.mxu0 %v5798_v3  ;;  %v6440_v3 = vld [vmem:[#allocation24_spill] sm:$0xff]  ;;  %v3895_v28 = vld [vmem:[#allocation13] ss:$0 sm:$0xff] }
 0x81a   : > { %4454 = vmatprep.subr.mxu1 %v5931_v45  ;;  %4407 = vmatpush3.msra.mxu0 %v5803_v50  ;;  %v6441_v50 = vld [vmem:[#allocation43_spill] sm:$0xff]  ;;  %v6459_v44 = vld [vmem:[#allocation32_spill] sm:$0xff]  ;;  %v6460_v45 = vld [vmem:[#allocation53_spill] sm:$0xff] }
 0x81b   : > { %4455 = vmatpush3.msra.mxu1 %v5934_v46  ;;  %4408 = vmatprep.subr.mxu0 %v5806_v4  ;;  %v6442_v4 = vld [vmem:[#allocation25_spill] sm:$0xff] }
 0x81c   : > { %4456 = vmatprep.subr.mxu1 %v6429_v55  ;;  %4409 = vmatpush3.msra.mxu0 %v6430_v56  ;;  %v6461_v46 = vld [vmem:[#allocation33_spill] sm:$0xff]  ;;  %v3655_v55 = vrot.slane %v6455_v34, 1  ;;  %v3660_v56 = vrot.slane %v3161_v8, 1 }
 0x81d   : > { %4457 = vmatpush3.msra.mxu1 %v6431_v57  ;;  %4410 = vmatprep.subr.mxu0 %v6432_v58  ;;  %v6485_v57 = vld [vmem:[#allocation75_spill] sm:$0xff]  ;;  %v6486_v58 = vld [vmem:[#allocation76_spill] sm:$0xff] }
 0x81e   : > { %4458 = vmatprep.subr.mxu1 %v6433_v63  ;;  %4411 = vmatpush3.msra.mxu0 %v6434_v59  ;;  %v6487_v63 = vld [vmem:[#allocation77_spill] sm:$0xff]  ;;  %v6488_v59 = vld [vmem:[#allocation78_spill] sm:$0xff] }
 0x81f   : > { %4459 = vmatpush3.msra.mxu1 %v6435_v60  ;;  %4412 = vmatprep.subr.mxu0 %v6436_v61  ;;  %v3661_v60 = vsel %vm3653_vm2, %v3655_v55, %v3660_v56  ;;  %v3157_v61 = vld [vmem:[#allocation3] sm:$0xfe] }
 0x820   : > { %4460 = vmatprep.subr.mxu1 %v6437_v62  ;;  %4413 = vmatpush3.msra.mxu0 %v6438_v40  ;;  %v3654_v62 = vrot.slane %v3157_v61, 1 }
 0x821   : > { %4461 = vmatpush3.msra.mxu1 %v6439_v2  ;;  %4414 = vmatprep.subr.mxu0 %v6440_v3 }
 0x822   : > { %4462 = vmatprep.subr.mxu1 %v6441_v50  ;;  %4415 = vmatpush3.msra.mxu0 %v6442_v4  ;;  %v3656_v40 = vsel %vm3653_vm2, %v3654_v62, %v3655_v55 }
 0x823   : > { %4463 = vmatpush3.msra.mxu1 %v6443_v6  ;;  %4416 = vmatprep.subr.mxu0 %v6444_v20 }
 0x824   : > { %3637 = vmatmul.mubr.f32.vlgmr.msra.gmra.mxu1 %v6445_v22  ;;  %5243 = vmatprep.subr.mxu1 %v6446_v23 }
 0x825   : > { %4417 = vmatpush3.msra.mxu0 %v6447_v24  ;;  %3641 = vmatprep.mubr.f32.mxu1 %v6448_v25 }
 0x826   : > { %5259 = vmatpush3.msra.mxu1 %v6449_v26  ;;  %4418 = vmatprep.subr.mxu0 %v6450_v27 }
 0x827   : > { %5244 = vmatprep.subr.mxu1 %v6451_v30  ;;  %4419 = vmatpush3.msra.mxu0 %v6452_v31 }
 0x828   : > { %5260 = vmatpush3.msra.mxu1 %v6453_v32  ;;  %4420 = vmatprep.subr.mxu0 %v6454_v33 }
 0x829   : > { %3642 = vmatmul.mubr.f32.gmra.mxu1 %v6455_v34  ;;  %5245 = vmatprep.subr.mxu1 %v6456_v35 }
 0x82a   : > { %4421 = vmatpush3.msra.mxu0 %v6457_v36  ;;  %5261 = vmatpush3.msra.mxu1 %v6458_v38 }
 0x82b   : > { %3737 = vmatprep.mubr.f32.mxu1 %v3663_v41  ;;  %4422 = vmatprep.subr.mxu0 %v6459_v44 }
 0x82c   : > { %5246 = vmatprep.subr.mxu1 %v6460_v45  ;;  %4423 = vmatpush3.msra.mxu0 %v6461_v46 }
 0x82d   : > { %5262 = vmatpush3.msra.mxu1 %v6462_v11  ;;  %4424 = vmatprep.subr.mxu0 %v6463_v43 }
 0x82e   : > { %5247 = vmatprep.subr.mxu1 %v6464_v7  ;;  %4425 = vmatpush3.msra.mxu0 %v6465_v9 }
 0x82f   : > { %5263 = vmatpush3.msra.mxu1 %v6466_v16  ;;  %3562 = vmatmul.mubr.f32.vlgmr.msra.gmra.mxu0 %v6083_v0  ;;  %v6471_v0 = vld [vmem:[#allocation61_spill] sm:$0xff] }
 0x830   : > { %4470 = vmatprep.subr.mxu0 %v6446_v23  ;;  %5248 = vmatprep.subr.mxu1 %v6467_v37 }
 0x831   : > { %3566 = vmatprep.mubr.f32.mxu0 %v6090_v49  ;;  %4471 = vmatpush3.msra.mxu0 %v6449_v26  ;;  %v6480_v49 = vld [vmem:[#allocation70_spill] sm:$0xff] }
 0x832   : > { %5264 = vmatpush3.msra.mxu1 %v6468_v54  ;;  %4472 = vmatprep.subr.mxu0 %v6451_v30 }
 0x833   : > { %5249 = vmatprep.subr.mxu1 %v6469_v14  ;;  %4473 = vmatpush3.msra.mxu0 %v6453_v32 }
 0x834   : > { %5265 = vmatpush3.msra.mxu1 %v6470_v42  ;;  %3567 = vmatmul.mubr.f32.gmra.mxu0 %v6086_v17  ;;  %v6477_v17 = vld [vmem:[#allocation67_spill] sm:$0xff] }
 0x835   : > { %4474 = vmatprep.subr.mxu0 %v6456_v35  ;;  %5250 = vmatprep.subr.mxu1 %v6471_v0 }
 0x836   : > { %4475 = vmatpush3.msra.mxu0 %v6458_v38  ;;  %5266 = vmatpush3.msra.mxu1 %v6472_v1 }
 0x837   : > { %3732 = vmatprep.mubr.f32.mxu0 %v3659_v15  ;;  %4476 = vmatprep.subr.mxu0 %v6460_v45 }
 0x838   : > { %5251 = vmatprep.subr.mxu1 %v6473_v18  ;;  %4477 = vmatpush3.msra.mxu0 %v6462_v11 }
 0x839   : > { %5267 = vmatpush3.msra.mxu1 %v6474_v53  ;;  %4478 = vmatprep.subr.mxu0 %v6464_v7 }
 0x83a   : > { %5252 = vmatprep.subr.mxu1 %v6475_v13  ;;  %4479 = vmatpush3.msra.mxu0 %v6466_v16 }
 0x83b   : > { %5268 = vmatpush3.msra.mxu1 %v6476_v51  ;;  %4480 = vmatprep.subr.mxu0 %v6467_v37 }
 0x83c   : > { %5253 = vmatprep.subr.mxu1 %v6477_v17  ;;  %4481 = vmatpush3.msra.mxu0 %v6468_v54 }
 0x83d   : > { %5269 = vmatpush3.msra.mxu1 %v6478_v10  ;;  %4482 = vmatprep.subr.mxu0 %v6469_v14 }
 0x83e   : > { %5254 = vmatprep.subr.mxu1 %v6479_v12  ;;  %4483 = vmatpush3.msra.mxu0 %v6470_v42 }
 0x83f   : > { %5270 = vmatpush3.msra.mxu1 %v6480_v49  ;;  %4484 = vmatprep.subr.mxu0 %v6471_v0 }
 0x840   : > { %5255 = vmatprep.subr.mxu1 %v6481_v52  ;;  %4485 = vmatpush3.msra.mxu0 %v6472_v1 }
 0x841   : > { %5271 = vmatpush3.msra.mxu1 %v6482_v47  ;;  %4486 = vmatprep.subr.mxu0 %v6473_v18 }
 0x842   : > { %5256 = vmatprep.subr.mxu1 %v6483_v5  ;;  %4487 = vmatpush3.msra.mxu0 %v6474_v53 }
 0x843   : > { %5272 = vmatpush3.msra.mxu1 %v6484_v19  ;;  %4488 = vmatprep.subr.mxu0 %v6475_v13 }
 0x844   : > { %5257 = vmatprep.subr.mxu1 %v6485_v57  ;;  %4489 = vmatpush3.msra.mxu0 %v6476_v51 }
 0x845   : > { %5273 = vmatpush3.msra.mxu1 %v6486_v58  ;;  %4490 = vmatprep.subr.mxu0 %v6477_v17 }
 0x846   : > { %5258 = vmatprep.subr.mxu1 %v6487_v63  ;;  %4491 = vmatpush3.msra.mxu0 %v6478_v10 }
 0x847   : > { %5274 = vmatpush3.msra.mxu1 %v6488_v59  ;;  %4492 = vmatprep.subr.mxu0 %v6479_v12 }
 0x848   : > { %3738 = vmatmul.mubr.f32.vlgmr.msra.gmra.mxu1 %v3661_v60  ;;  %4493 = vmatpush3.msra.mxu0 %v6480_v49 }
 0x849   : > { %4494 = vmatprep.subr.mxu0 %v6481_v52 }
 0x84a   : > { %4495 = vmatpush3.msra.mxu0 %v6482_v47 }
 0x84b   : > { %4496 = vmatprep.subr.mxu0 %v6483_v5 }
 0x84c   : > { %4497 = vmatpush3.msra.mxu0 %v6484_v19 }
 0x84d   : > { %4498 = vmatprep.subr.mxu0 %v6485_v57 }
 0x84e   : > { %4499 = vmatpush3.msra.mxu0 %v6486_v58 }
 0x84f   : > { %4500 = vmatprep.subr.mxu0 %v6487_v63 }
 0x850   : > { %4501 = vmatpush3.msra.mxu0 %v6488_v59 }
 0x851   : > { %3733 = vmatmul.mubr.f32.vlgmr.msra.gmra.mxu0 %v3656_v40 }
 0x896   : > { %v4312_v2 = vpop.f32.mrf.mxu1 }
 0x898   : > { %v4313_v3 = vpop.f32.mrf.mxu1 }
 0x899   : > { %v4314_v23 = vadd.f32 %v4313_v3, %v4312_v2 }
 0x89b   : > { %v4315_v50 = vpop.f32.mrf.mxu1 }
 0x89d   : > { %v4316_v4 = vpop.f32.mrf.mxu1 }
 0x89e   : > { %v4317_v33 = vadd.f32 %v4316_v4, %v4315_v50 }
 0x8c2   : > { %v4388_v6 = vpop.f32.mrf.mxu1 }
 0x8c4   : > { %v4389_v20 = vpop.f32.mrf.mxu1 }
 0x8c5   : > { %v4390_v26 = vadd.f32 %v4389_v20, %v4388_v6 }
 0x8c6   : > { %v4391_v25 = vpop.f32.mrf.mxu1 }
 0x8c8   : > { %v4392_v31 = vpop.f32.mrf.mxu1 }
 0x8c9   : > { %v4393_v36 = vadd.f32 %v4392_v31, %v4391_v25 }
 0x8cc   : > { %v4350_v21 = vpop.f32.mrf.mxu0 }
 0x8ce   : > { %v4351_v22 = vpop.f32.mrf.mxu0 }
 0x8cf   : > { %v4352_v24 = vadd.f32 %v4351_v22, %v4350_v21 }
 0x8d1   : > { %v3404_v27 = vadd.f32 %v4352_v24, %v4314_v23 }
 0x8d2   : > { %v4353_v29 = vpop.f32.mrf.mxu0 }
 0x8d3   : > { %v3487_v30 = vadd.f32 %v4390_v26, %v3404_v27 }
 0x8d4   : > { %v4354_v32 = vpop.f32.mrf.mxu0 }
 0x8d5   : > { %v3495_v34 = vadd.f32 %v3895_v28, %v3487_v30  ;;  %v4355_v35 = vadd.f32 %v4354_v32, %v4353_v29 }
 0x8d7   : > { %3747 = vst [vmem:[%s6238_s30] sm:$0xff] %v3495_v34  ;;  %v3409_v38 = vadd.f32 %v4355_v35, %v4317_v33 }
 0x8d9   : > { %v3488_v41 = vadd.f32 %v4393_v36, %v3409_v38 }
 0x8db   : > { %v3496_v44 = vadd.f32 %v3895_v28, %v3488_v41 }
 0x8dd   : > { %3748 = vst [vmem:[%s6238_s30 + $0x8] sm:$0xff] %v3496_v44 }
 0x8e4   : > { %v4464_v46 = vpop.f32.mrf.mxu1 }
 0x8e6   : > { %v4465_v43 = vpop.f32.mrf.mxu1 }
 0x8e7   : > { %v4466_v13 = vadd.f32 %v4465_v43, %v4464_v46 }
 0x8e9   : > { %v4467_v9 = vpop.f32.mrf.mxu1 }
 0x8eb   : > { %v4468_v48 = vpop.f32.mrf.mxu1 }
 0x8ec   : > { %v4469_v39 = vadd.f32 %v4468_v48, %v4467_v9 }
 0x8ef   : > { %v4426_v45 = vpop.f32.mrf.mxu0 }
 0x8f1   : > { %v4427_v11 = vpop.f32.mrf.mxu0 }
 0x8f2   : > { %v4428_v18 = vadd.f32 %v4427_v11, %v4426_v45 }
 0x8f4   : > { %v4429_v7 = vpop.f32.mrf.mxu0  ;;  %v3639_v17 = vadd.f32 %v4466_v13, %v4428_v18 }
 0x8f6   : > { %v4430_v16 = vpop.f32.mrf.mxu0 }
 0x8f7   : > { %v4431_v37 = vadd.f32 %v4430_v16, %v4429_v7 }
 0x8f9   : > { %v3644_v42 = vadd.f32 %v4469_v39, %v4431_v37 }
 0x908   : > { %v4505_v54 = vpop.f32.mrf.mxu1 }
 0x90a   : > { %v4506_v14 = vpop.f32.mrf.mxu1 }
 0x90b   : > { %v4507_v0 = vadd.f32 %v4506_v14, %v4505_v54 }
 0x90d   : > { %v3744_v1 = vadd.f32 %v4507_v0, %v3644_v42 }
 0x90f   : > { %v3746_v15 = vadd.f32 %v3895_v28, %v3744_v1 }
 0x911   : > { %3897 = vst [vmem:[%s6238_s30 + $0x18] sm:$0xff] %v3746_v15  ;;  %v4502_v53 = vpop.f32.mrf.mxu0 }
 0x913   : > { %v4503_v51 = vpop.f32.mrf.mxu0 }
 0x914   : > { %v4504_v10 = vadd.f32 %v4503_v51, %v4502_v53 }
 0x916   : > { %v3743_v12 = vadd.f32 %v4504_v10, %v3639_v17 }
 0x918   : > { %v3745_v49 = vadd.f32 %v3895_v28, %v3743_v12 }
 0x91a   : > { %3896 = vst [vmem:[%s6238_s30 + $0x10] sm:$0xff] %v3745_v49 }
 0x91b PF: > { %s21_s24 = sadd.s32 1, %s5527_s24  }
 0x91c   : > { %p18_p9 = scmp.ge.s32.totalorder %s21_s24, 4  }
 0x91e   :  { %20 = sbr.rel (!%p18_p9) target bundleno = 4 (0x4), region = 133 }
 0x923   :  { %3773 = vsyncpa [#allocation6], 1 }
 0x924   :  { %3775 = vsyncpa [#allocation6 + $0x1], 1 }
 0x925   :  { %3776 = vsyncpa [#allocation8], 1 }
 0x926   :  { %3777 = vsyncpa [#allocation11], 1 }
 0x927   :  { %3778 = vsyncpa [#allocation14], 1 }

</bundles_post_ra>
